<compile_context>
chip_gen: v7x
topology: tpu7x:2x2x1
jax: 0.10.0
libtpu: 0.0.40
codegen_flags: <defaults>
</compile_context>

<pallas_src>
import jax
import jax.numpy as jnp
from jax.experimental import pallas as pl
from jax.experimental.pallas import tpu as pltpu

# Module configuration (small shapes implied by the forward pass).
KS = 3          # conv kernel size
C_IN = 4        # nf_in
HID = 32        # nf_hidden
NF_OUT = 8      # nf_out
T = 32          # sequence length
B = 32          # batch
TB = 16         # batch items per grid step (conv matmul M = TB*T = 512 rows)
OUT_PAD = 128   # lane-dense padded output channels
BN_EPS = 1e-5
NEG = -1e30     # "minus infinity" for invalid time slots (kept finite)

# Packed-weight layout (rows of the (W_ROWS, HID) array).
K1_PAD = 16                      # conv1 im2col K (KS*C_IN = 12) padded to 16
W2_ROW = K1_PAD                  # conv2 taps: rows 16..112
W3_ROW = W2_ROW + KS * HID       # conv3 taps: rows 112..208
VEC_ROW = W3_ROW + KS * HID      # b1,sc1,sh1,b2,sc2,sh2,b3,sc3,sh3: rows 208..217
W_ROWS = VEC_ROW + 16            # 224 (vec block padded to a full sublane tile)

# Valid (unpadded) lengths at each stage, mirroring the torch shapes.
L1 = T - KS + 1          # conv1 out
L1P = L1 // 2            # pool1 out
L2 = L1P - KS + 1        # conv2 out
L2P = L2 // 2            # pool2 out
L3 = L2P - KS + 1        # conv3 out (final time length before the max)


def make_kernel(tb):
    m0 = tb * T

    def rollup(v, k):
        # out[r, :] = v[(r + k) % m0, :].  Rows that wrap across an item / tile
        # boundary only ever land in invalid tail slots (asserted host-side).
        return pltpu.roll(v, shift=(m0 - k) % m0, axis=0)

    def kernel(x_ref, w_ref, p_ref, out_ref):
        def vec(j):                                    # packed (1, HID) rows
            return w_ref[VEC_ROW + j:VEC_ROW + j + 1, :]

        def relu_bn(z, j):                             # +bias, ReLU, eval-BN
            z = jnp.maximum(z + vec(j), 0.0)
            return z * vec(j + 1) + vec(j + 2)

        def conv_taps(v, base, stride):                # valid Conv1d, tap-summed
            z = jnp.dot(v, w_ref[base:base + HID, :],
                        preferred_element_type=jnp.float32)
            for k in range(1, KS):
                z = z + jnp.dot(rollup(v, stride * k),
                                w_ref[base + k * HID:base + (k + 1) * HID, :],
                                preferred_element_type=jnp.float32)
            return z

        # conv1: taps im2col-fused host-side -> one (m0, 16) @ (16, HID) dot.
        z1 = jnp.dot(x_ref[...], w_ref[0:K1_PAD, :],
                     preferred_element_type=jnp.float32)
        a1 = relu_bn(z1, 0)                            # valid rows t  <  L1
        p1 = jnp.maximum(a1, rollup(a1, 1))            # valid rows 2j, j < L1P
        a2 = relu_bn(conv_taps(p1, W2_ROW, 2), 3)      # valid rows 2j, j < L2
        p2 = jnp.maximum(a2, rollup(a2, 2))            # valid rows 4i, i < L2P
        a3 = relu_bn(conv_taps(p2, W3_ROW, 4), 6)      # valid rows 4i, i < L3

        # 1x1 conv_predict (output lanes zero-padded to 128) + fused
        # bias / (-1e30 on invalid time slots) mask, then max over time.
        q = jnp.dot(a3, p_ref[0:HID, :], preferred_element_type=jnp.float32)
        q = q.reshape(tb, T, OUT_PAD) + p_ref[HID:HID + T, :]
        out_ref[...] = jnp.max(q, axis=1)

    return kernel


def cnnet_forward(x, params, *, tb=TB):
    bsz, t, cin = x.shape
    assert t == T and cin == C_IN and bsz % tb == 0 and (tb * T) % 8 == 0
    assert L3 >= 1
    # Roll-wraparound safety: every row that a *valid* downstream value reads
    # after a roll must stay inside its own batch item (row index < T).
    assert 2 * (L1P - 1) + 1 < T                  # pool1 reads a1[2j+1]
    assert 2 * (L2 - 1) + 2 * (KS - 1) < T        # conv2 taps read p1[2(j+k)]
    assert 4 * (L2P - 1) + 2 < T                  # pool2 reads a2[4i+2]
    assert 4 * (L3 - 1) + 4 * (KS - 1) < T        # conv3 taps read p2[4(i+k)]

    xf = x.astype(jnp.float32)
    # Host-side im2col for conv1 (KS shifted time views concatenated along
    # channels, zero-padded to K1_PAD lanes); rows ordered (batch, time).
    xpad = jnp.pad(xf, ((0, 0), (0, KS - 1), (0, 0)))
    pieces = [xpad[:, k:k + T, :] for k in range(KS)]
    pieces.append(jnp.zeros((bsz, T, K1_PAD - KS * C_IN), jnp.float32))
    x_im2col = jnp.concatenate(pieces, axis=2).reshape(bsz * T, K1_PAD)

    # One packed array for all HID-wide weights / per-channel vectors.
    w_pack = jnp.zeros((W_ROWS, HID), jnp.float32)
    w_pack = w_pack.at[0:KS * C_IN].set(params["w1"].reshape(KS * C_IN, HID))
    w_pack = w_pack.at[W2_ROW:W2_ROW + KS * HID].set(
        params["w2"].reshape(KS * HID, HID))
    w_pack = w_pack.at[W3_ROW:W3_ROW + KS * HID].set(
        params["w3"].reshape(KS * HID, HID))
    vecs = jnp.concatenate(
        [params["b1"], params["bn1_scale"], params["bn1_shift"],
         params["b2"], params["bn2_scale"], params["bn2_shift"],
         params["b3"], params["bn3_scale"], params["bn3_shift"]], axis=0)
    w_pack = w_pack.at[VEC_ROW:VEC_ROW + 9].set(vecs)

    # conv_predict weight (lane-padded) + fused bias / valid-time mask rows.
    # Valid conv3 outputs sit at rows t = 4*i (two stride-2 pools), i < L3.
    p_pack = jnp.zeros((HID + T, OUT_PAD), jnp.float32)
    p_pack = p_pack.at[0:HID, :NF_OUT].set(params["wp"])
    bias_row = jnp.zeros((OUT_PAD,), jnp.float32).at[:NF_OUT].set(params["bp"][0])
    neg_row = jnp.full((OUT_PAD,), NEG, jnp.float32)
    tmask = [bias_row if (r % 4 == 0 and r // 4 < L3) else neg_row
             for r in range(T)]
    p_pack = p_pack.at[HID:HID + T].set(jnp.stack(tmask))

    grid_spec = pltpu.PrefetchScalarGridSpec(
        num_scalar_prefetch=0,
        grid=(bsz // tb,),
        in_specs=[
            pl.BlockSpec((tb * T, K1_PAD), lambda i: (i, 0)),     # input tile
            pl.BlockSpec((W_ROWS, HID), lambda i: (0, 0)),        # packed weights
            pl.BlockSpec((HID + T, OUT_PAD), lambda i: (0, 0)),   # predict + mask
        ],
        out_specs=pl.BlockSpec((tb, OUT_PAD), lambda i: (i, 0)),
    )

    out = pl.pallas_call(
        make_kernel(tb),
        out_shape=jax.ShapeDtypeStruct((bsz, OUT_PAD), jnp.float32),
        grid_spec=grid_spec,
        compiler_params=pltpu.CompilerParams(
            dimension_semantics=("parallel",)),
    )(x_im2col, w_pack, p_pack)
    return out[:, :NF_OUT]


def init_params(key):
    keys = jax.random.split(key, 11)

    def u(k, shape, fan):
        bound = 1.0 / (fan ** 0.5)
        return jax.random.uniform(k, shape, jnp.float32, -bound, bound)

    def bn(k):
        k1, k2, k3, k4 = jax.random.split(k, 4)
        gamma = 1.0 + 0.1 * jax.random.normal(k1, (HID,), jnp.float32)
        beta = 0.1 * jax.random.normal(k2, (HID,), jnp.float32)
        mean = 0.1 * jax.random.normal(k3, (HID,), jnp.float32)
        var = 1.0 + 0.1 * jax.random.uniform(k4, (HID,), jnp.float32)
        scale = gamma / jnp.sqrt(var + BN_EPS)
        shift = beta - mean * scale
        return scale.reshape(1, HID), shift.reshape(1, HID)

    bn1s, bn1t = bn(keys[8])
    bn2s, bn2t = bn(keys[9])
    bn3s, bn3t = bn(keys[10])
    return dict(
        w1=u(keys[0], (KS, C_IN, HID), C_IN * KS),
        b1=u(keys[1], (1, HID), C_IN * KS),
        w2=u(keys[2], (KS, HID, HID), HID * KS),
        b2=u(keys[3], (1, HID), HID * KS),
        w3=u(keys[4], (KS, HID, HID), HID * KS),
        b3=u(keys[5], (1, HID), HID * KS),
        wp=u(keys[6], (HID, NF_OUT), HID),
        bp=u(keys[7], (1, NF_OUT), HID),
        bn1_scale=bn1s, bn1_shift=bn1t,
        bn2_scale=bn2s, bn2_shift=bn2t,
        bn3_scale=bn3s, bn3_shift=bn3t,
    )


def cnnet_reference(x, params):
    """Pure-JAX reference of the PyTorch forward (eval mode)."""
    def conv1d(h, w, b):       # h: (B, L, Cin); w: (KS, Cin, Cout); valid padding
        L = h.shape[1] - KS + 1
        z = sum(jnp.einsum("blc,cd->bld", h[:, k:k + L, :], w[k]) for k in range(KS))
        return z + b

    def block(h, w, b, sc, sh):
        return jnp.maximum(conv1d(h, w, b), 0.0) * sc + sh

    def pool(h):
        L = (h.shape[1] // 2) * 2
        return jnp.maximum(h[:, 0:L:2, :], h[:, 1:L:2, :])

    a = pool(block(x, params["w1"], params["b1"],
                   params["bn1_scale"], params["bn1_shift"]))
    a = pool(block(a, params["w2"], params["b2"],
                   params["bn2_scale"], params["bn2_shift"]))
    a = block(a, params["w3"], params["b3"],
              params["bn3_scale"], params["bn3_shift"])
    pred = jnp.einsum("blc,cd->bld", a, params["wp"]) + params["bp"]
    return jnp.max(pred, axis=1)


if __name__ == "__main__":
    key = jax.random.PRNGKey(0)
    pkey, xkey = jax.random.split(key)
    params = init_params(pkey)
    x = jax.random.normal(xkey, (B, T, C_IN), jnp.float32)   # [B, T, nf_in]

    out = jax.block_until_ready(cnnet_forward(x, params))
    ref = jax.block_until_ready(cnnet_reference(x, params))

    assert out.shape == (B, NF_OUT), out.shape
    assert bool(jnp.all(jnp.isfinite(out)))
    err = float(jnp.max(jnp.abs(out - ref)))
    assert err < 1e-3, err
    print("KERNEL_OK")
</pallas_src>

<mosaic_0001>
module attributes {stable_mosaic.version = 11 : i64} {
  func.func @kernel(%arg0: i32, %arg1: memref<512x16xf32, #tpu.memory_space<vmem>>, %arg2: memref<224x32xf32, #tpu.memory_space<vmem>>, %arg3: memref<64x128xf32, #tpu.memory_space<vmem>>, %arg4: memref<16x128xf32, #tpu.memory_space<vmem>>) attributes {dimension_semantics = [#tpu.dimension_semantics<parallel>], iteration_bounds = array<i64: 2>, scalar_prefetch = 0 : i64, scratch_operands = 0 : i64, tpu.core_type = #tpu.core_type<tc>, window_params = [{transform_indices = @transform_0, window_bounds = array<i64: 512, 16>}, {pipeline_mode = #tpu.pipeline_mode<synchronous>, transform_indices = @transform_1, window_bounds = array<i64: 224, 32>}, {pipeline_mode = #tpu.pipeline_mode<synchronous>, transform_indices = @transform_2, window_bounds = array<i64: 64, 128>}, {transform_indices = @transform_3, window_bounds = array<i64: 16, 128>}]} {
    %c0 = arith.constant 0 : index
    %c0_0 = arith.constant 0 : index
    %0 = vector.load %arg1[%c0, %c0_0] : memref<512x16xf32, #tpu.memory_space<vmem>>, vector<512x16xf32>
    %c0_1 = arith.constant 0 : index
    %c0_2 = arith.constant 0 : index
    %1 = vector.load %arg2[%c0_1, %c0_2] : memref<224x32xf32, #tpu.memory_space<vmem>>, vector<16x32xf32>
    %cst = arith.constant dense<0.000000e+00> : vector<512x32xf32>
    %2 = tpu.matmul %0, %1, %cst {dimension_numbers = #tpu.dot_dimension_numbers<[1], [0], [0], [1], [0, 0, 1, 1], [], []>} : vector<512x16xf32>, vector<16x32xf32>, vector<512x32xf32> -> vector<512x32xf32>
    %c208 = arith.constant 208 : index
    %c0_3 = arith.constant 0 : index
    %3 = vector.load %arg2[%c208, %c0_3] : memref<224x32xf32, #tpu.memory_space<vmem>>, vector<1x32xf32>
    %4 = vector.broadcast %3 : vector<1x32xf32> to vector<512x32xf32>
    %5 = arith.addf %2, %4 : vector<512x32xf32>
    %cst_4 = arith.constant 0.000000e+00 : f32
    %6 = vector.broadcast %cst_4 : f32 to vector<512x32xf32>
    %7 = arith.maximumf %5, %6 : vector<512x32xf32>
    %c209 = arith.constant 209 : index
    %c0_5 = arith.constant 0 : index
    %8 = vector.load %arg2[%c209, %c0_5] : memref<224x32xf32, #tpu.memory_space<vmem>>, vector<1x32xf32>
    %9 = vector.broadcast %8 : vector<1x32xf32> to vector<512x32xf32>
    %10 = arith.mulf %7, %9 : vector<512x32xf32>
    %c210 = arith.constant 210 : index
    %c0_6 = arith.constant 0 : index
    %11 = vector.load %arg2[%c210, %c0_6] : memref<224x32xf32, #tpu.memory_space<vmem>>, vector<1x32xf32>
    %12 = vector.broadcast %11 : vector<1x32xf32> to vector<512x32xf32>
    %13 = arith.addf %10, %12 : vector<512x32xf32>
    %c511_i32 = arith.constant 511 : i32
    %14 = tpu.dynamic_rotate %13 by %c511_i32 dim 0 : vector<512x32xf32>, i32 -> vector<512x32xf32>
    %15 = arith.maximumf %13, %14 : vector<512x32xf32>
    %c16 = arith.constant 16 : index
    %c0_7 = arith.constant 0 : index
    %16 = vector.load %arg2[%c16, %c0_7] : memref<224x32xf32, #tpu.memory_space<vmem>>, vector<32x32xf32>
    %cst_8 = arith.constant dense<0.000000e+00> : vector<512x32xf32>
    %17 = tpu.matmul %15, %16, %cst_8 {dimension_numbers = #tpu.dot_dimension_numbers<[1], [0], [0], [1], [0, 0, 1, 1], [], []>} : vector<512x32xf32>, vector<32x32xf32>, vector<512x32xf32> -> vector<512x32xf32>
    %c510_i32 = arith.constant 510 : i32
    %18 = tpu.dynamic_rotate %15 by %c510_i32 dim 0 : vector<512x32xf32>, i32 -> vector<512x32xf32>
    %c48 = arith.constant 48 : index
    %c0_9 = arith.constant 0 : index
    %19 = vector.load %arg2[%c48, %c0_9] : memref<224x32xf32, #tpu.memory_space<vmem>>, vector<32x32xf32>
    %cst_10 = arith.constant dense<0.000000e+00> : vector<512x32xf32>
    %20 = tpu.matmul %18, %19, %cst_10 {dimension_numbers = #tpu.dot_dimension_numbers<[1], [0], [0], [1], [0, 0, 1, 1], [], []>} : vector<512x32xf32>, vector<32x32xf32>, vector<512x32xf32> -> vector<512x32xf32>
    %21 = arith.addf %17, %20 : vector<512x32xf32>
    %c508_i32 = arith.constant 508 : i32
    %22 = tpu.dynamic_rotate %15 by %c508_i32 dim 0 : vector<512x32xf32>, i32 -> vector<512x32xf32>
    %c80 = arith.constant 80 : index
    %c0_11 = arith.constant 0 : index
    %23 = vector.load %arg2[%c80, %c0_11] : memref<224x32xf32, #tpu.memory_space<vmem>>, vector<32x32xf32>
    %cst_12 = arith.constant dense<0.000000e+00> : vector<512x32xf32>
    %24 = tpu.matmul %22, %23, %cst_12 {dimension_numbers = #tpu.dot_dimension_numbers<[1], [0], [0], [1], [0, 0, 1, 1], [], []>} : vector<512x32xf32>, vector<32x32xf32>, vector<512x32xf32> -> vector<512x32xf32>
    %25 = arith.addf %21, %24 : vector<512x32xf32>
    %c211 = arith.constant 211 : index
    %c0_13 = arith.constant 0 : index
    %26 = vector.load %arg2[%c211, %c0_13] : memref<224x32xf32, #tpu.memory_space<vmem>>, vector<1x32xf32>
    %27 = vector.broadcast %26 : vector<1x32xf32> to vector<512x32xf32>
    %28 = arith.addf %25, %27 : vector<512x32xf32>
    %cst_14 = arith.constant 0.000000e+00 : f32
    %29 = vector.broadcast %cst_14 : f32 to vector<512x32xf32>
    %30 = arith.maximumf %28, %29 : vector<512x32xf32>
    %c212 = arith.constant 212 : index
    %c0_15 = arith.constant 0 : index
    %31 = vector.load %arg2[%c212, %c0_15] : memref<224x32xf32, #tpu.memory_space<vmem>>, vector<1x32xf32>
    %32 = vector.broadcast %31 : vector<1x32xf32> to vector<512x32xf32>
    %33 = arith.mulf %30, %32 : vector<512x32xf32>
    %c213 = arith.constant 213 : index
    %c0_16 = arith.constant 0 : index
    %34 = vector.load %arg2[%c213, %c0_16] : memref<224x32xf32, #tpu.memory_space<vmem>>, vector<1x32xf32>
    %35 = vector.broadcast %34 : vector<1x32xf32> to vector<512x32xf32>
    %36 = arith.addf %33, %35 : vector<512x32xf32>
    %c510_i32_17 = arith.constant 510 : i32
    %37 = tpu.dynamic_rotate %36 by %c510_i32_17 dim 0 : vector<512x32xf32>, i32 -> vector<512x32xf32>
    %38 = arith.maximumf %36, %37 : vector<512x32xf32>
    %c112 = arith.constant 112 : index
    %c0_18 = arith.constant 0 : index
    %39 = vector.load %arg2[%c112, %c0_18] : memref<224x32xf32, #tpu.memory_space<vmem>>, vector<32x32xf32>
    %cst_19 = arith.constant dense<0.000000e+00> : vector<512x32xf32>
    %40 = tpu.matmul %38, %39, %cst_19 {dimension_numbers = #tpu.dot_dimension_numbers<[1], [0], [0], [1], [0, 0, 1, 1], [], []>} : vector<512x32xf32>, vector<32x32xf32>, vector<512x32xf32> -> vector<512x32xf32>
    %c508_i32_20 = arith.constant 508 : i32
    %41 = tpu.dynamic_rotate %38 by %c508_i32_20 dim 0 : vector<512x32xf32>, i32 -> vector<512x32xf32>
    %c144 = arith.constant 144 : index
    %c0_21 = arith.constant 0 : index
    %42 = vector.load %arg2[%c144, %c0_21] : memref<224x32xf32, #tpu.memory_space<vmem>>, vector<32x32xf32>
    %cst_22 = arith.constant dense<0.000000e+00> : vector<512x32xf32>
    %43 = tpu.matmul %41, %42, %cst_22 {dimension_numbers = #tpu.dot_dimension_numbers<[1], [0], [0], [1], [0, 0, 1, 1], [], []>} : vector<512x32xf32>, vector<32x32xf32>, vector<512x32xf32> -> vector<512x32xf32>
    %44 = arith.addf %40, %43 : vector<512x32xf32>
    %c504_i32 = arith.constant 504 : i32
    %45 = tpu.dynamic_rotate %38 by %c504_i32 dim 0 : vector<512x32xf32>, i32 -> vector<512x32xf32>
    %c176 = arith.constant 176 : index
    %c0_23 = arith.constant 0 : index
    %46 = vector.load %arg2[%c176, %c0_23] : memref<224x32xf32, #tpu.memory_space<vmem>>, vector<32x32xf32>
    %cst_24 = arith.constant dense<0.000000e+00> : vector<512x32xf32>
    %47 = tpu.matmul %45, %46, %cst_24 {dimension_numbers = #tpu.dot_dimension_numbers<[1], [0], [0], [1], [0, 0, 1, 1], [], []>} : vector<512x32xf32>, vector<32x32xf32>, vector<512x32xf32> -> vector<512x32xf32>
    %48 = arith.addf %44, %47 : vector<512x32xf32>
    %c214 = arith.constant 214 : index
    %c0_25 = arith.constant 0 : index
    %49 = vector.load %arg2[%c214, %c0_25] : memref<224x32xf32, #tpu.memory_space<vmem>>, vector<1x32xf32>
    %50 = vector.broadcast %49 : vector<1x32xf32> to vector<512x32xf32>
    %51 = arith.addf %48, %50 : vector<512x32xf32>
    %cst_26 = arith.constant 0.000000e+00 : f32
    %52 = vector.broadcast %cst_26 : f32 to vector<512x32xf32>
    %53 = arith.maximumf %51, %52 : vector<512x32xf32>
    %c215 = arith.constant 215 : index
    %c0_27 = arith.constant 0 : index
    %54 = vector.load %arg2[%c215, %c0_27] : memref<224x32xf32, #tpu.memory_space<vmem>>, vector<1x32xf32>
    %55 = vector.broadcast %54 : vector<1x32xf32> to vector<512x32xf32>
    %56 = arith.mulf %53, %55 : vector<512x32xf32>
    %c216 = arith.constant 216 : index
    %c0_28 = arith.constant 0 : index
    %57 = vector.load %arg2[%c216, %c0_28] : memref<224x32xf32, #tpu.memory_space<vmem>>, vector<1x32xf32>
    %58 = vector.broadcast %57 : vector<1x32xf32> to vector<512x32xf32>
    %59 = arith.addf %56, %58 : vector<512x32xf32>
    %c0_29 = arith.constant 0 : index
    %c0_30 = arith.constant 0 : index
    %60 = vector.load %arg3[%c0_29, %c0_30] : memref<64x128xf32, #tpu.memory_space<vmem>>, vector<32x128xf32>
    %cst_31 = arith.constant dense<0.000000e+00> : vector<512x128xf32>
    %61 = tpu.matmul %59, %60, %cst_31 {dimension_numbers = #tpu.dot_dimension_numbers<[1], [0], [0], [1], [0, 0, 1, 1], [], []>} : vector<512x32xf32>, vector<32x128xf32>, vector<512x128xf32> -> vector<512x128xf32>
    %62 = vector.shape_cast %61 : vector<512x128xf32> to vector<16x32x128xf32>
    %c32 = arith.constant 32 : index
    %c0_32 = arith.constant 0 : index
    %63 = vector.load %arg3[%c32, %c0_32] : memref<64x128xf32, #tpu.memory_space<vmem>>, vector<32x128xf32>
    %64 = vector.shape_cast %63 : vector<32x128xf32> to vector<1x32x128xf32>
    %65 = vector.broadcast %64 : vector<1x32x128xf32> to vector<16x32x128xf32>
    %66 = arith.addf %62, %65 : vector<16x32x128xf32>
    %cst_33 = arith.constant dense<0xFF800000> : vector<16x128xf32>
    %67 = vector.multi_reduction <maximumf>, %66, %cst_33 [1] : vector<16x32x128xf32> to vector<16x128xf32>
    %c0_34 = arith.constant 0 : index
    %c0_35 = arith.constant 0 : index
    %68 = vector.load %arg4[%c0_34, %c0_35] : memref<16x128xf32, #tpu.memory_space<vmem>>, vector<16x128xf32>
    tpu.vector_store %arg4[%c0_34, %c0_35], %67 {strides = array<i32>} : memref<16x128xf32, #tpu.memory_space<vmem>>, vector<16x128xf32>,
    return
  }
  func.func @transform_0(%arg0: i32) -> (i32, i32) {
    %c0_i32 = arith.constant 0 : i32
    %c0_i32_0 = arith.constant 0 : i32
    return %arg0, %c0_i32 : i32, i32
  }
  func.func @transform_1(%arg0: i32) -> (i32, i32) {
    %c0_i32 = arith.constant 0 : i32
    %c0_i32_0 = arith.constant 0 : i32
    %c0_i32_1 = arith.constant 0 : i32
    return %c0_i32, %c0_i32_0 : i32, i32
  }
  func.func @transform_2(%arg0: i32) -> (i32, i32) {
    %c0_i32 = arith.constant 0 : i32
    %c0_i32_0 = arith.constant 0 : i32
    %c0_i32_1 = arith.constant 0 : i32
    return %c0_i32, %c0_i32_0 : i32, i32
  }
  func.func @transform_3(%arg0: i32) -> (i32, i32) {
    %c0_i32 = arith.constant 0 : i32
    %c0_i32_0 = arith.constant 0 : i32
    return %arg0, %c0_i32 : i32, i32
  }
}

</mosaic_0001>

<bundles_post_ra>
// kernel: tpu_custom_call.1
= control target key start
LH: loop header
LB: loop body
LE: loop exit
PB: predicated region body
PF: predicated region fallthrough
CT: control target
= control target key end

     0   :  { %8 = vsyncpa [#allocation3], 0  ;;  %s12082_s0 = inlined_call_operand.vmem [shape: f32[1024,16], index: 0, kind: input, shape index: {}]   ;;  %s12083_s1 = inlined_call_operand.vmem [shape: f32[224,32], index: 1, kind: input, shape index: {}]   ;;  %s12084_s2 = inlined_call_operand.vmem [shape: f32[64,128], index: 2, kind: input, shape index: {}]   ;;  %s12085_s3 = inlined_call_operand.hbm [shape: f32[32,128], index: 3, kind: output, shape index: {}]  }
   0x1   :  { %10 = vsyncpa [#allocation3 + $0x1], 0  ;;  %s9025_s12 = smov 0   ;;  %s9027_s13 = smov 0  }
   0x2   :  { %s9029_s14 = smov 0   ;;  %s9031_s15 = smov 0  }
   0x3 LB: > { %s9046_s16 = sadd.s32 4294967295, %s9000_s15   ;;  %s6671_s17 = sadd.s32 4294967294, %s9000_s15   ;;  %s9000_s15 = sphi %s9031_s15, %s12321_s15   ;;  %s8996_s14 = sphi %s9029_s14, %s12320_s14   ;;  %s8992_s13 = sphi %s9027_s13, %s12319_s13   ;;  %s8988_s12 = sphi %s9025_s12, %s12318_s12  }
   0x4   : > { %s9050_s18 = sadd.s32 1, %s9000_s15   ;;  %s91_s19 = sadd.s32 1, %s8996_s14 }
   0x5   : > { %s88_s20 = ssub.s32 %s9000_s15, %s9050_s18  ;;  %p101_p0 = scmp.ne.s32.totalorder %s8996_s14, %s8992_s13 }
   0x6   : > { %p89_p1 = scmp.eq.s32.totalorder %s88_s20, 0  ;;  %p102_p2 = scmp.eq.s32.totalorder %s9046_s16, 1 }
   0x7   : > { %p107_p3 = scmp.ne.s32.totalorder %s8992_s13, %s8988_s12  ;;  %p108_p4 = scmp.eq.s32.totalorder %s6671_s17, 1 }
   0x8   : > { %s9061_s21 = scalar_select %p89_p1, %s8996_s14, %s91_s19  }
   0x9   : > { %p9063_p5 = por %p102_p2, %p101_p0  ;;  %p9067_p6 = por %p108_p4, %p107_p3 }
   0xa   : > { %p6674_p7 = scmp.ge.s32.totalorder %s9000_s15, 1  ;;  %p141_p8 = scmp.lt.s32.totalorder %s9000_s15, 3 }
   0xc   : > { %p142_p9 = pnand %p6674_p7, %p141_p8 }
   0xe   : > { %145 = sbr.rel (%p142_p9) target bundleno = 1640 (0x668), region = 32 }
  0x15   : > { %v236_v0 = vld [vmem:[%s12083_s1] sm:$0xff]  ;;  %v237_v1 = vld [vmem:[%s12083_s1 + $0x8] sm:$0xff]  ;;  %s6676_s28 = sshll.u32 %s9046_s16, 6  ;;  %vm243_vm0 = vcmask 130048   ;;  %v1351_v54 = vld [vmem:[%s12083_s1 + $0x30] sm:$0xff]  ;;  %vm1355_vm3 = vcmask 261120  }
  0x16   : > { %v8575_v2 = vpack.c.bf16 %v237_v1, %v236_v0  ;;  %p166_p10 = scmp.lt.s32.totalorder %s6676_s28, 127  ;;  %v1352_v55 = vld [vmem:[%s12083_s1 + $0x38] sm:$0xff]  ;;  %v1353_v59 = vld [vmem:[%s12083_s1 + $0x40] sm:$0xff]  ;;  %v1354_v60 = vld [vmem:[%s12083_s1 + $0x48] sm:$0xff]  ;;  %vm6570_vm5 = vcmask 1041409   ;;  %vm6572_vm6 = vcmask 1042434  }
  0x17   : > { %v8579_v56 = vpack.c.bf16 %v1352_v55, %v1351_v54  ;;  %v8583_v61 = vpack.c.bf16 %v1354_v60, %v1353_v59  ;;  %vm6574_vm7 = vcmask 1043459   ;;  %vm6576_vm8 = vcmask 1044484   ;;  %s162_s10 = sand.u32 1, %s8992_s13   ;;  %s7204_s19 = sshll.u32 %s9046_s16, 8 }
  0x18   : > { %8576 = vmatprep.subr.bf16.mxu0 %v8575_v2  ;;  %s12323_s28 = smov (!%p166_p10, %s6676_s28), 127  ;;  %vm6578_vm9 = vcmask 1045509   ;;  %vm6580_vm10 = vcmask 1046534   ;;  %s6675_s11 = sshll.u32 %s162_s10, 4  ;;  %vm6582_vm11 = vcmask 1047559  }
  0x19   : > { %8578 = vmatpush3.bf16.msra.mxu0 %v8575_v2  ;;  %s6677_s29 = sshll.u32 %s12323_s28, 3  ;;  %8580 = vmatprep.subr.bf16.mxu1 %v8579_v56  ;;  %s11996_s17 = scalar_lea.vmem [#allocation2], %s6675_s11 }
  0x1a   : > { %s9083_s5 = scalar_lea.vmem %s12082_s0, %s6677_s29  ;;  %8582 = vmatpush3.bf16.msra.mxu1 %v8579_v56  ;;  %s6609_s20 = sshll.u32 %s11996_s17, 4  ;;  %s12035_s20 = int_to_ptr.vmem [resolvable:$true] %s6609_s20 }
  0x1b   : > { %v172_v3 = vld [vmem:[%s9083_s5] sm:$0xff]  ;;  %v173_v4 = vld [vmem:[%s9083_s5 + $0x8] sm:$0xff]  ;;  %v174_v5 = vld [vmem:[%s9083_s5 + $0x10] sm:$0xff]  ;;  %8584 = vmatprep.subr.bf16.mxu1 %v8583_v61  ;;  %s12033_s26 = scalar_lea.hbm %s12085_s3, %s7204_s19  ;;  %s12041_s27 = scalar_lea.sflag [#allocation3], %s162_s10 }
  0x1c   : > { %7751 = vmatprep.mubr.msk.f32.mxu0 %vm243_vm0, %v172_v3  ;;  %v175_v6 = vld [vmem:[%s9083_s5 + $0x18] sm:$0xff]  ;;  %v176_v7 = vld [vmem:[%s9083_s5 + $0x20] sm:$0xff]  ;;  %v177_v8 = vld [vmem:[%s9083_s5 + $0x28] sm:$0xff]  ;;  %s8938_s16 = scalar_lea.vmem %s12035_s20, 256  ;;  %s9002_s28 = smov [#allocation2]  }
  0x1d   : > { %7752 = vmatmul.mubr.msk.f32.vlgmr.msra.gmra.mrb[0].mxu0 %vm243_vm0, %v173_v4  ;;  %v178_v9 = vld [vmem:[%s9083_s5 + $0x30] sm:$0xff]  ;;  %v179_v10 = vld [vmem:[%s9083_s5 + $0x38] sm:$0xff]  ;;  %v180_v11 = vld [vmem:[%s9083_s5 + $0x40] sm:$0xff]  ;;  %p8939_p11 = scmp.ne.s32.totalorder %s12035_s20, %s8938_s16  ;;  %s8942_s29 = sshll.u32 %s9002_s28, 4  ;;  %s8943_s29 = int_to_ptr.vmem [resolvable:$false] %s8942_s29 }
  0x1e   : > { %7754 = vmatprep.mubr.msk.f32.mxu0 %vm243_vm0, %v174_v5  ;;  %v181_v12 = vld [vmem:[%s9083_s5 + $0x48] sm:$0xff]  ;;  %v182_v13 = vld [vmem:[%s9083_s5 + $0x50] sm:$0xff]  ;;  %v183_v14 = vld [vmem:[%s9083_s5 + $0x58] sm:$0xff]  ;;  %8586 = vmatpush3.bf16.msra.mxu1 %v8583_v61  ;;  %s8944_s30 = scalar_lea.vmem %s8943_s29, 512  ;;  %p8945_p0 = scmp.lt.s32.totalorder %s12035_s20, %s8943_s29 }
  0x1f   : > { %v184_v15 = vld [vmem:[%s9083_s5 + $0x60] sm:$0xff]  ;;  %v185_v16 = vld [vmem:[%s9083_s5 + $0x68] sm:$0xff]  ;;  %v186_v17 = vld [vmem:[%s9083_s5 + $0x70] sm:$0xff]  ;;  %p8940_p12 = pnand %p8939_p11, %p9063_p5  ;;  %p8946_p1 = scmp.lt.s32.totalorder %s8944_s30, %s8938_s16 }
  0x20   : > { %v187_v18 = vld [vmem:[%s9083_s5 + $0x78] sm:$0xff]  ;;  %v188_v19 = vld [vmem:[%s9083_s5 + $0x80] sm:$0xff]  ;;  %v189_v20 = vld [vmem:[%s9083_s5 + $0x88] sm:$0xff] }
  0x21   : > { %7755 = vmatmul.mubr.msk.f32.gmra.mrb[2].mxu0 %vm243_vm0, %v175_v6  ;;  %v190_v21 = vld [vmem:[%s9083_s5 + $0x90] sm:$0xff]  ;;  %v191_v22 = vld [vmem:[%s9083_s5 + $0x98] sm:$0xff]  ;;  %v192_v23 = vld [vmem:[%s9083_s5 + $0xa0] sm:$0xff]  ;;  %p8941_p13 = pneg %p8940_p12  ;;  %p8947_p2 = por %p8946_p1, %p8945_p0 }
  0x22   : > { %7757 = vmatprep.mubr.msk.f32.mxu0 %vm243_vm0, %v176_v7  ;;  %v193_v24 = vld [vmem:[%s9083_s5 + $0xa8] sm:$0xff]  ;;  %v194_v25 = vld [vmem:[%s9083_s5 + $0xb0] sm:$0xff]  ;;  %v195_v26 = vld [vmem:[%s9083_s5 + $0xb8] sm:$0xff] }
  0x23   : > { %v196_v27 = vld [vmem:[%s9083_s5 + $0xc0] sm:$0xff]  ;;  %v197_v28 = vld [vmem:[%s9083_s5 + $0xc8] sm:$0xff]  ;;  %v198_v29 = vld [vmem:[%s9083_s5 + $0xd0] sm:$0xff]  ;;  %p8948_p3 = pnand %p8947_p2, %p8941_p13 }
  0x24   : > { %v199_v30 = vld [vmem:[%s9083_s5 + $0xd8] sm:$0xff]  ;;  %v200_v31 = vld [vmem:[%s9083_s5 + $0xe0] sm:$0xff]  ;;  %v201_v32 = vld [vmem:[%s9083_s5 + $0xe8] sm:$0xff] }
  0x25   : > { %7758 = vmatmul.mubr.msk.f32.gmra.mrb[4].mxu0 %vm243_vm0, %v177_v8  ;;  %v202_v33 = vld [vmem:[%s9083_s5 + $0xf0] sm:$0xff]  ;;  %v203_v34 = vld [vmem:[%s9083_s5 + $0xf8] sm:$0xff]  ;;  %v204_v35 = vld [vmem:[%s9083_s5 + $0x100] sm:$0xff] }
  0x26   : > { %7760 = vmatprep.mubr.msk.f32.mxu0 %vm243_vm0, %v178_v9  ;;  %v205_v36 = vld [vmem:[%s9083_s5 + $0x108] sm:$0xff]  ;;  %v206_v37 = vld [vmem:[%s9083_s5 + $0x110] sm:$0xff]  ;;  %v207_v38 = vld [vmem:[%s9083_s5 + $0x118] sm:$0xff] }
  0x27   : > { %v208_v39 = vld [vmem:[%s9083_s5 + $0x120] sm:$0xff]  ;;  %v209_v40 = vld [vmem:[%s9083_s5 + $0x128] sm:$0xff]  ;;  %v210_v41 = vld [vmem:[%s9083_s5 + $0x130] sm:$0xff] }
  0x28   : > { %v211_v42 = vld [vmem:[%s9083_s5 + $0x138] sm:$0xff]  ;;  %v212_v43 = vld [vmem:[%s9083_s5 + $0x140] sm:$0xff]  ;;  %v213_v44 = vld [vmem:[%s9083_s5 + $0x148] sm:$0xff] }
  0x29   : > { %7761 = vmatmul.mubr.msk.f32.gmra.mrb[6].mxu0 %vm243_vm0, %v179_v10  ;;  %v214_v45 = vld [vmem:[%s9083_s5 + $0x150] sm:$0xff]  ;;  %v215_v46 = vld [vmem:[%s9083_s5 + $0x158] sm:$0xff]  ;;  %v216_v47 = vld [vmem:[%s9083_s5 + $0x160] sm:$0xff] }
  0x2a   : > { %7763 = vmatprep.mubr.msk.f32.mxu0 %vm243_vm0, %v180_v11  ;;  %v217_v48 = vld [vmem:[%s9083_s5 + $0x168] sm:$0xff]  ;;  %v218_v49 = vld [vmem:[%s9083_s5 + $0x170] sm:$0xff]  ;;  %v219_v50 = vld [vmem:[%s9083_s5 + $0x178] sm:$0xff] }
  0x2b   : > { %v220_v51 = vld [vmem:[%s9083_s5 + $0x180] sm:$0xff]  ;;  %v221_v52 = vld [vmem:[%s9083_s5 + $0x188] sm:$0xff]  ;;  %v222_v53 = vld [vmem:[%s9083_s5 + $0x190] sm:$0xff] }
  0x2c   : > { %v223_v57 = vld [vmem:[%s9083_s5 + $0x198] sm:$0xff]  ;;  %v224_v58 = vld [vmem:[%s9083_s5 + $0x1a0] sm:$0xff]  ;;  %v225_v62 = vld [vmem:[%s9083_s5 + $0x1a8] sm:$0xff] }
  0x2d   : > { %7764 = vmatmul.mubr.msk.f32.gmra.mrb[8].mxu0 %vm243_vm0, %v181_v12  ;;  %v226_v63 = vld [vmem:[%s9083_s5 + $0x1b0] sm:$0xff]  ;;  %v227_v0 = vld [vmem:[%s9083_s5 + $0x1b8] sm:$0xff]  ;;  %v228_v1 = vld [vmem:[%s9083_s5 + $0x1c0] sm:$0xff] }
  0x2e   : > { %7766 = vmatprep.mubr.msk.f32.mxu0 %vm243_vm0, %v182_v13  ;;  %v229_v2 = vld [vmem:[%s9083_s5 + $0x1c8] sm:$0xff]  ;;  %v230_v3 = vld [vmem:[%s9083_s5 + $0x1d0] sm:$0xff]  ;;  %v231_v4 = vld [vmem:[%s9083_s5 + $0x1d8] sm:$0xff] }
  0x2f   : > { %v232_v5 = vld [vmem:[%s9083_s5 + $0x1e0] sm:$0xff]  ;;  %v1218_v6 = vld [vmem:[%s12083_s1 + $0x10] sm:$0xff]  ;;  %v1219_v7 = vld [vmem:[%s12083_s1 + $0x18] sm:$0xff] }
  0x30   : > { %v233_v8 = vld [vmem:[%s9083_s5 + $0x1e8] sm:$0xff]  ;;  %v9226_v9 = vpack.c.bf16 %v1219_v7, %v1218_v6  ;;  %v234_v10 = vld [vmem:[%s9083_s5 + $0x1f0] sm:$0xff]  ;;  %v235_v11 = vld [vmem:[%s9083_s5 + $0x1f8] sm:$0xff] }
  0x31   : > { %7767 = vmatmul.mubr.msk.f32.gmra.mrb[10].mxu0 %vm243_vm0, %v183_v14  ;;  %v9237_v12 = vld [vmem:[%s12083_s1 + $0xd0] ss:$0 sm:$0xff] }
  0x32   : > { %7769 = vmatprep.mubr.msk.f32.mxu0 %vm243_vm0, %v184_v15  ;;  %8588 = vmatprep.subr.bf16.mxu1 %v9226_v9 }
  0x35   : > { %7770 = vmatmul.mubr.msk.f32.gmra.mrb[12].mxu0 %vm243_vm0, %v185_v16  ;;  %v1087_v16 = vlaneseq }
  0x36   : > { %7772 = vmatprep.mubr.msk.f32.mxu0 %vm243_vm0, %v186_v17  ;;  %v9243_v17 = vld [vmem:[%s12083_s1 + $0xd1] ss:$0 sm:$0xff] }
  0x39   : > { %7773 = vmatmul.mubr.msk.f32.gmra.mrb[14].mxu0 %vm243_vm0, %v187_v18 }
  0x3a   : > { %7775 = vmatprep.mubr.msk.f32.mxu0 %vm243_vm0, %v188_v19 }
  0x3d   : > { %7776 = vmatmul.mubr.msk.f32.gmra.mrb[16].mxu0 %vm243_vm0, %v189_v20  ;;  %v9249_v20 = vld [vmem:[%s12083_s1 + $0xd2] ss:$0 sm:$0xff] }
  0x3e   : > { %7778 = vmatprep.mubr.msk.f32.mxu0 %vm243_vm0, %v190_v21 }
  0x41   : > { %7779 = vmatmul.mubr.msk.f32.gmra.mrb[18].mxu0 %vm243_vm0, %v191_v22 }
  0x42   : > { %7781 = vmatprep.mubr.msk.f32.mxu0 %vm243_vm0, %v192_v23 }
  0x45   : > { %7782 = vmatmul.mubr.msk.f32.gmra.mrb[20].mxu0 %vm243_vm0, %v193_v24  ;;  %v9252_v24 = vshrl.u32 %v1087_v16, 7 }
  0x46   : > { %7784 = vmatprep.mubr.msk.f32.mxu0 %vm243_vm0, %v194_v25 }
  0x47   : > { %vm1089_vm1 = vcmp.lt.s32.totalorder %v9252_v24, 7  ;;  %vm1286_vm2 = vcmp.lt.s32.totalorder %v9252_v24, 6  ;;  %vm2574_vm4 = vcmp.lt.s32.totalorder %v9252_v24, 4 }
  0x49   : > { %7785 = vmatmul.mubr.msk.f32.gmra.mrb[22].mxu0 %vm243_vm0, %v195_v26 }
  0x4a   : > { %7787 = vmatprep.mubr.msk.f32.mxu0 %vm243_vm0, %v196_v27 }
  0x4d   : > { %7788 = vmatmul.mubr.msk.f32.gmra.mrb[24].mxu0 %vm243_vm0, %v197_v28 }
  0x4e   : > { %7790 = vmatprep.mubr.msk.f32.mxu0 %vm243_vm0, %v198_v29 }
  0x51   : > { %7791 = vmatmul.mubr.msk.f32.gmra.mrb[26].mxu0 %vm243_vm0, %v199_v30 }
  0x52   : > { %7793 = vmatprep.mubr.msk.f32.mxu0 %vm243_vm0, %v200_v31 }
  0x55   : > { %7794 = vmatmul.mubr.msk.f32.gmra.mrb[28].mxu0 %vm243_vm0, %v201_v32 }
  0x56   : > { %7796 = vmatprep.mubr.msk.f32.mxu0 %vm243_vm0, %v202_v33 }
  0x59   : > { %7797 = vmatmul.mubr.msk.f32.gmra.mrb[30].mxu0 %vm243_vm0, %v203_v34 }
  0x5a   : > { %7799 = vmatprep.mubr.msk.f32.mxu0 %vm243_vm0, %v204_v35 }
  0x5d   : > { %7800 = vmatmul.mubr.msk.f32.gmra.mrb[32].mxu0 %vm243_vm0, %v205_v36 }
  0x5e   : > { %7802 = vmatprep.mubr.msk.f32.mxu0 %vm243_vm0, %v206_v37 }
  0x61   : > { %7803 = vmatmul.mubr.msk.f32.gmra.mrb[34].mxu0 %vm243_vm0, %v207_v38 }
  0x62   : > { %7805 = vmatprep.mubr.msk.f32.mxu0 %vm243_vm0, %v208_v39 }
  0x65   : > { %7806 = vmatmul.mubr.msk.f32.gmra.mrb[36].mxu0 %vm243_vm0, %v209_v40 }
  0x66   : > { %7808 = vmatprep.mubr.msk.f32.mxu0 %vm243_vm0, %v210_v41 }
  0x69   : > { %7809 = vmatmul.mubr.msk.f32.gmra.mrb[38].mxu0 %vm243_vm0, %v211_v42 }
  0x6a   : > { %7811 = vmatprep.mubr.msk.f32.mxu0 %vm243_vm0, %v212_v43 }
  0x6d   : > { %7812 = vmatmul.mubr.msk.f32.gmra.mrb[40].mxu0 %vm243_vm0, %v213_v44 }
  0x6e   : > { %7814 = vmatprep.mubr.msk.f32.mxu0 %vm243_vm0, %v214_v45 }
  0x71   : > { %7815 = vmatmul.mubr.msk.f32.gmra.mrb[42].mxu0 %vm243_vm0, %v215_v46 }
  0x72   : > { %7817 = vmatprep.mubr.msk.f32.mxu0 %vm243_vm0, %v216_v47  ;;  %v1220_v47 = vld [vmem:[%s12083_s1 + $0x20] sm:$0xff] }
  0x75   : > { %7818 = vmatmul.mubr.msk.f32.gmra.mrb[44].mxu0 %vm243_vm0, %v217_v48  ;;  %v1221_v48 = vld [vmem:[%s12083_s1 + $0x28] sm:$0xff] }
  0x76   : > { %7820 = vmatprep.mubr.msk.f32.mxu0 %vm243_vm0, %v218_v49  ;;  %v9288_v59 = vpack.c.bf16 %v1221_v48, %v1220_v47 }
  0x79   : > { %7821 = vmatmul.mubr.msk.f32.gmra.mrb[46].mxu0 %vm243_vm0, %v219_v50 }
  0x7a   : > { %7823 = vmatprep.mubr.msk.f32.mxu0 %vm243_vm0, %v220_v51 }
  0x7d   : > { %7824 = vmatmul.mubr.msk.f32.gmra.mrb[48].mxu0 %vm243_vm0, %v221_v52 }
  0x7e   : > { %7826 = vmatprep.mubr.msk.f32.mxu0 %vm243_vm0, %v222_v53 }
  0x81   : > { %7827 = vmatmul.mubr.msk.f32.gmra.mrb[50].mxu0 %vm243_vm0, %v223_v57 }
  0x82   : > { %7829 = vmatprep.mubr.msk.f32.mxu0 %vm243_vm0, %v224_v58 }
  0x85   : > { %7830 = vmatmul.mubr.msk.f32.gmra.mrb[52].mxu0 %vm243_vm0, %v225_v62 }
  0x86   : > { %7832 = vmatprep.mubr.msk.f32.mxu0 %vm243_vm0, %v226_v63 }
  0x89   : > { %7833 = vmatmul.mubr.msk.f32.gmra.mrb[54].mxu0 %vm243_vm0, %v227_v0 }
  0x8a   : > { %7835 = vmatprep.mubr.msk.f32.mxu0 %vm243_vm0, %v228_v1 }
  0x8d   : > { %7836 = vmatmul.mubr.msk.f32.gmra.mrb[56].mxu0 %vm243_vm0, %v229_v2 }
  0x8e   : > { %7838 = vmatprep.mubr.msk.f32.mxu0 %vm243_vm0, %v230_v3 }
  0x91   : > { %7839 = vmatmul.mubr.msk.f32.gmra.mrb[58].mxu0 %vm243_vm0, %v231_v4 }
  0x92   : > { %7841 = vmatprep.mubr.msk.f32.mxu0 %vm243_vm0, %v232_v5 }
  0x95   : > { %7842 = vmatmul.mubr.msk.f32.gmra.mrb[60].mxu0 %vm243_vm0, %v233_v8 }
  0x96   : > { %7844 = vmatprep.mubr.msk.f32.mxu0 %vm243_vm0, %v234_v10 }
  0x99   : > { %7845 = vmatmul.mubr.msk.f32.gmra.mrb[62].mxu0 %vm243_vm0, %v235_v11 }
  0xf0   : > { %v7753_v13 = vpop.f32.mrb[0].mxu0 }
  0xf1   : > { %v508_v14 = vadd.f32 %v7753_v13, %v9237_v12  ;;  %v502_v15 = vpop.f32.mrb[1].mxu0 }
  0xf2   : > { %v503_v18 = vadd.f32 %v9237_v12, %v502_v15 }
  0xf3   : > { %v822_v19 = vmax.f32 %v508_v14, 0.0 }
  0xf4   : > { %v821_v21 = vmax.f32 %v503_v18, 0.0  ;;  %v7756_v22 = vpop.f32.mrb[2].mxu0 }
  0xf5   : > { %v891_v23 = vmul.f32 %v9243_v17, %v822_v19  ;;  %v518_v25 = vadd.f32 %v7756_v22, %v9237_v12  ;;  %v512_v26 = vpop.f32.mrb[3].mxu0 }
  0xf6   : > { %v890_v27 = vmul.f32 %v9243_v17, %v821_v21  ;;  %v513_v28 = vadd.f32 %v9237_v12, %v512_v26 }
  0xf7   : > { %v960_v29 = vadd.f32 %v9249_v20, %v891_v23  ;;  %v824_v30 = vmax.f32 %v518_v25, 0.0 }
  0xf8   : > { %v9259_v31 = vadd.f32 %v9249_v20, %v890_v27  ;;  %v823_v32 = vmax.f32 %v513_v28, 0.0  ;;  %v7759_v33 = vpop.f32.mrb[4].mxu0 }
  0xf9   : > { %v1024_v34 = vrot.slane %v960_v29, 1  ;;  %v893_v35 = vmul.f32 %v9243_v17, %v824_v30  ;;  %v528_v36 = vadd.f32 %v7759_v33, %v9237_v12  ;;  %v522_v37 = vpop.f32.mrb[5].mxu0 }
  0xfa   : > { %v12087_v38 = vrot.slane %v9259_v31, 1  ;;  %v892_v39 = vmul.f32 %v9243_v17, %v823_v32  ;;  %v523_v40 = vadd.f32 %v9237_v12, %v522_v37 }
  0xfb   : > { %v962_v41 = vadd.f32 %v9249_v20, %v893_v35  ;;  %v826_v42 = vmax.f32 %v528_v36, 0.0 }
  0xfc   : > { %v1152_v43 = vsel %vm1089_vm1, %v12087_v38, %v1024_v34  ;;  %v961_v44 = vadd.f32 %v9249_v20, %v892_v39  ;;  %v825_v45 = vmax.f32 %v523_v40, 0.0  ;;  %v7762_v46 = vpop.f32.mrb[6].mxu0 }
  0xfd   : > { %v9280_v49 = vmax.f32 %v9259_v31, %v1152_v43  ;;  %v1026_v50 = vrot.slane %v962_v41, 1  ;;  %v895_v51 = vmul.f32 %v9243_v17, %v826_v42  ;;  %v538_v52 = vadd.f32 %v7762_v46, %v9237_v12  ;;  %v532_v53 = vpop.f32.mrb[7].mxu0 }
  0xfe   : > { %v1025_v54 = vrot.slane %v961_v44, 1  ;;  %v894_v55 = vmul.f32 %v9243_v17, %v825_v45  ;;  %v533_v56 = vadd.f32 %v9237_v12, %v532_v53 }
  0xff   : > { %12197 = vst [vmem:[#allocation5_spill] sm:$0xff] %v9280_v49  ;;  %v964_v57 = vadd.f32 %v9249_v20, %v895_v51  ;;  %v828_v58 = vmax.f32 %v538_v52, 0.0  ;;  %v12086_v14 = vrot.slane %v9280_v49, 2 }
 0x100   : > { %v1150_v60 = vsel %vm1089_vm1, %v1025_v54, %v1026_v50  ;;  %v963_v61 = vadd.f32 %v9249_v20, %v894_v55  ;;  %v827_v62 = vmax.f32 %v533_v56, 0.0  ;;  %v7765_v63 = vpop.f32.mrb[8].mxu0  ;;  %v1151_v0 = vsel %vm1089_vm1, %v1024_v34, %v1025_v54 }
 0x101   : > { %v9295_v1 = vmax.f32 %v961_v44, %v1150_v60  ;;  %v1028_v2 = vrot.slane %v964_v57, 1  ;;  %v897_v3 = vmul.f32 %v9243_v17, %v828_v58  ;;  %v548_v4 = vadd.f32 %v7765_v63, %v9237_v12  ;;  %v542_v5 = vpop.f32.mrb[9].mxu0 }
 0x102   : > { %v1027_v6 = vrot.slane %v963_v61, 1  ;;  %v896_v7 = vmul.f32 %v9243_v17, %v827_v62  ;;  %v543_v8 = vadd.f32 %v9237_v12, %v542_v5  ;;  %v9301_v10 = vmax.f32 %v960_v29, %v1151_v0 }
 0x103   : > { %v9304_v11 = vadd.f32 %v9249_v20, %v897_v3  ;;  %v830_v13 = vmax.f32 %v548_v4, 0.0  ;;  %v1224_v15 = vrot.slane %v9295_v1, 2 }
 0x104   : > { %v1148_v16 = vsel %vm1089_vm1, %v1027_v6, %v1028_v2  ;;  %v1149_v18 = vsel %vm1089_vm1, %v1026_v50, %v1027_v6  ;;  %v965_v19 = vadd.f32 %v9249_v20, %v896_v7  ;;  %v829_v21 = vmax.f32 %v543_v8, 0.0  ;;  %v7768_v22 = vpop.f32.mrb[10].mxu0 }
 0x105   : > { %v9313_v23 = vmax.f32 %v963_v61, %v1148_v16  ;;  %v1030_v25 = vrot.slane %v9304_v11, 1  ;;  %v899_v26 = vmul.f32 %v9243_v17, %v830_v13  ;;  %v558_v27 = vadd.f32 %v7768_v22, %v9237_v12  ;;  %v552_v28 = vpop.f32.mrb[11].mxu0 }
 0x106   : > { %v1029_v29 = vrot.slane %v965_v19, 1  ;;  %v898_v30 = vmul.f32 %v9243_v17, %v829_v21  ;;  %v553_v32 = vadd.f32 %v9237_v12, %v552_v28  ;;  %v1223_v33 = vrot.slane %v9301_v10, 2 }
 0x107   : > { %v9322_v34 = vadd.f32 %v9249_v20, %v899_v26  ;;  %v832_v35 = vmax.f32 %v558_v27, 0.0  ;;  %v9324_v36 = vmax.f32 %v962_v41, %v1149_v18  ;;  %v1226_v37 = vrot.slane %v9313_v23, 2 }
 0x108   : > { %v1146_v39 = vsel %vm1089_vm1, %v1029_v29, %v1030_v25  ;;  %v1147_v40 = vsel %vm1089_vm1, %v1028_v2, %v1029_v29  ;;  %v967_v42 = vadd.f32 %v9249_v20, %v898_v30  ;;  %v831_v43 = vmax.f32 %v553_v32, 0.0  ;;  %v7771_v44 = vpop.f32.mrb[12].mxu0 }
 0x109   : > { %v9332_v45 = vmax.f32 %v965_v19, %v1146_v39  ;;  %v1032_v46 = vrot.slane %v9322_v34, 1  ;;  %v901_v47 = vmul.f32 %v9243_v17, %v832_v35  ;;  %v1349_v41 = vsel %vm1286_vm2, %v12086_v14, %v1223_v33  ;;  %v562_v48 = vpop.f32.mrb[13].mxu0 }
 0x10a   : > { %v1031_v50 = vrot.slane %v967_v42, 1  ;;  %v900_v51 = vmul.f32 %v9243_v17, %v831_v43  ;;  %7855 = vmatprep.mubr.msk.f32.mxu1 %vm1355_vm3, %v1349_v41  ;;  %v1348_v52 = vsel %vm1286_vm2, %v1223_v33, %v1224_v15  ;;  %v568_v53 = vadd.f32 %v7771_v44, %v9237_v12 }
 0x10b   : > { %v9346_v54 = vadd.f32 %v9249_v20, %v901_v47  ;;  %7856 = vmatmul.mubr.msk.f32.vlgmr.msra.gmra.mrb[0].mxu1 %vm1355_vm3, %v1348_v52  ;;  %v563_v55 = vadd.f32 %v9237_v12, %v562_v48  ;;  %v1225_v56 = vrot.slane %v9324_v36, 2  ;;  %v9351_v58 = vmax.f32 %v964_v57, %v1147_v40 }
 0x10c   : > { %v1144_v60 = vsel %vm1089_vm1, %v1031_v50, %v1032_v46  ;;  %v1145_v61 = vsel %vm1089_vm1, %v1030_v25, %v1031_v50  ;;  %v969_v62 = vadd.f32 %v9249_v20, %v900_v51  ;;  %8590 = vmatpush3.bf16.msra.mxu1 %v9226_v9  ;;  %v834_v63 = vmax.f32 %v568_v53, 0.0  ;;  %v7774_v0 = vpop.f32.mrb[14].mxu0 }
 0x10d   : > { %v9359_v2 = vmax.f32 %v967_v42, %v1144_v60  ;;  %v1034_v3 = vrot.slane %v9346_v54, 1  ;;  %v833_v4 = vmax.f32 %v563_v55, 0.0  ;;  %v1347_v57 = vsel %vm1286_vm2, %v1224_v15, %v1225_v56  ;;  %v572_v5 = vpop.f32.mrb[15].mxu0  ;;  %8592 = vmatprep.subr.bf16.mxu1 %v9288_v59 }
 0x10e   : > { %v1033_v6 = vrot.slane %v969_v62, 1  ;;  %v903_v7 = vmul.f32 %v9243_v17, %v834_v63  ;;  %7858 = vmatprep.mubr.msk.f32.mxu1 %vm1355_vm3, %v1347_v57  ;;  %v1346_v9 = vsel %vm1286_vm2, %v1225_v56, %v1226_v37  ;;  %v578_v8 = vadd.f32 %v7774_v0, %v9237_v12 }
 0x10f   : > { %v902_v13 = vmul.f32 %v9243_v17, %v833_v4  ;;  %7859 = vmatmul.mubr.msk.f32.gmra.mrb[2].mxu1 %vm1355_vm3, %v1346_v9  ;;  %v573_v16 = vadd.f32 %v9237_v12, %v572_v5  ;;  %v1227_v15 = vrot.slane %v9351_v58, 2  ;;  %v1228_v18 = vrot.slane %v9332_v45, 2 }
 0x110   : > { %v1142_v19 = vsel %vm1089_vm1, %v1033_v6, %v1034_v3  ;;  %v1143_v21 = vsel %vm1089_vm1, %v1032_v46, %v1033_v6  ;;  %v9380_v22 = vadd.f32 %v9249_v20, %v903_v7  ;;  %v836_v25 = vmax.f32 %v578_v8, 0.0  ;;  %v7777_v26 = vpop.f32.mrb[16].mxu0  ;;  %8594 = vmatpush3.bf16.msra.mxu1 %v9288_v59 }
 0x111   : > { %v9383_v27 = vmax.f32 %v969_v62, %v1142_v19  ;;  %v971_v28 = vadd.f32 %v9249_v20, %v902_v13  ;;  %v835_v29 = vmax.f32 %v573_v16, 0.0  ;;  %v1345_v30 = vsel %vm1286_vm2, %v1226_v37, %v1227_v15  ;;  %v582_v32 = vpop.f32.mrb[17].mxu0 }
 0x112   : > { %v1036_v33 = vrot.slane %v9380_v22, 1  ;;  %v905_v35 = vmul.f32 %v9243_v17, %v836_v25  ;;  %7861 = vmatprep.mubr.msk.f32.mxu1 %vm1355_vm3, %v1345_v30  ;;  %v1344_v39 = vsel %vm1286_vm2, %v1227_v15, %v1228_v18  ;;  %v588_v59 = vadd.f32 %v7777_v26, %v9237_v12 }
 0x113   : > { %v1035_v40 = vrot.slane %v971_v28, 1  ;;  %v904_v42 = vmul.f32 %v9243_v17, %v835_v29  ;;  %7862 = vmatmul.mubr.msk.f32.gmra.mrb[4].mxu1 %vm1355_vm3, %v1344_v39  ;;  %v583_v43 = vadd.f32 %v9237_v12, %v582_v32  ;;  %v9398_v37 = vmax.f32 %v9304_v11, %v1145_v61 }
 0x114   : > { %v9401_v44 = vadd.f32 %v9249_v20, %v905_v35  ;;  %v838_v46 = vmax.f32 %v588_v59, 0.0  ;;  %v1230_v47 = vrot.slane %v9359_v2, 2  ;;  %v7780_v41 = vpop.f32.mrb[18].mxu0  ;;  %v9405_v48 = vmax.f32 %v9322_v34, %v1143_v21 }
 0x115   : > { %v1140_v50 = vsel %vm1089_vm1, %v1035_v40, %v1036_v33  ;;  %v1141_v51 = vsel %vm1089_vm1, %v1034_v3, %v1035_v40  ;;  %v973_v52 = vadd.f32 %v9249_v20, %v904_v42  ;;  %v837_v11 = vmax.f32 %v583_v43, 0.0  ;;  %v592_v53 = vpop.f32.mrb[19].mxu0 }
 0x116   : > { %v9412_v55 = vmax.f32 %v971_v28, %v1140_v50  ;;  %v1038_v56 = vrot.slane %v9401_v44, 1  ;;  %v907_v60 = vmul.f32 %v9243_v17, %v838_v46  ;;  %v1229_v61 = vrot.slane %v9398_v37, 2 }
 0x117   : > { %v1037_v34 = vrot.slane %v973_v52, 1  ;;  %v906_v62 = vmul.f32 %v9243_v17, %v837_v11  ;;  %v598_v63 = vadd.f32 %v7780_v41, %v9237_v12  ;;  %v593_v0 = vadd.f32 %v9237_v12, %v592_v53 }
 0x118   : > { %v9421_v3 = vadd.f32 %v9249_v20, %v907_v60  ;;  %v1343_v4 = vsel %vm1286_vm2, %v1228_v18, %v1229_v61  ;;  %v1342_v57 = vsel %vm1286_vm2, %v1229_v61, %v1230_v47  ;;  %v1231_v5 = vrot.slane %v9405_v48, 2  ;;  %v7783_v6 = vpop.f32.mrb[20].mxu0 }
 0x119   : > { %v1138_v7 = vsel %vm1089_vm1, %v1037_v34, %v1038_v56  ;;  %v1139_v9 = vsel %vm1089_vm1, %v1036_v33, %v1037_v34  ;;  %v975_v8 = vadd.f32 %v9249_v20, %v906_v62  ;;  %7864 = vmatprep.mubr.msk.f32.mxu1 %vm1355_vm3, %v1343_v4  ;;  %v840_v13 = vmax.f32 %v598_v63, 0.0  ;;  %v602_v16 = vpop.f32.mrb[21].mxu0 }
 0x11a   : > { %v9434_v15 = vmax.f32 %v973_v52, %v1138_v7  ;;  %v1040_v18 = vrot.slane %v9421_v3, 1  ;;  %7865 = vmatmul.mubr.msk.f32.gmra.mrb[6].mxu1 %vm1355_vm3, %v1342_v57  ;;  %v839_v19 = vmax.f32 %v593_v0, 0.0  ;;  %v1341_v21 = vsel %vm1286_vm2, %v1230_v47, %v1231_v5 }
 0x11b   : > { %v1039_v25 = vrot.slane %v975_v8, 1  ;;  %v909_v26 = vmul.f32 %v9243_v17, %v840_v13  ;;  %7867 = vmatprep.mubr.msk.f32.mxu1 %vm1355_vm3, %v1341_v21  ;;  %v1232_v28 = vrot.slane %v9383_v27, 2  ;;  %v608_v29 = vadd.f32 %v7783_v6, %v9237_v12 }
 0x11c   : > { %v908_v30 = vmul.f32 %v9243_v17, %v839_v19  ;;  %v603_v32 = vadd.f32 %v9237_v12, %v602_v16  ;;  %v9447_v33 = vmax.f32 %v9346_v54, %v1141_v51  ;;  %v1234_v35 = vrot.slane %v9412_v55, 2  ;;  %v7786_v39 = vpop.f32.mrb[22].mxu0 }
 0x11d   : > { %v1136_v59 = vsel %vm1089_vm1, %v1039_v25, %v1040_v18  ;;  %v1137_v40 = vsel %vm1089_vm1, %v1038_v56, %v1039_v25  ;;  %v9455_v42 = vadd.f32 %v9249_v20, %v909_v26  ;;  %v1340_v43 = vsel %vm1286_vm2, %v1231_v5, %v1232_v28  ;;  %v612_v46 = vpop.f32.mrb[23].mxu0 }
 0x11e   : > { %v9459_v47 = vmax.f32 %v975_v8, %v1136_v59  ;;  %v977_v54 = vadd.f32 %v9249_v20, %v908_v30  ;;  %7868 = vmatmul.mubr.msk.f32.gmra.mrb[8].mxu1 %vm1355_vm3, %v1340_v43  ;;  %v842_v41 = vmax.f32 %v608_v29, 0.0  ;;  %v841_v50 = vmax.f32 %v603_v32, 0.0 }
 0x11f   : > { %v1042_v51 = vrot.slane %v9455_v42, 1  ;;  %v1233_v52 = vrot.slane %v9447_v33, 2  ;;  %v618_v11 = vadd.f32 %v7786_v39, %v9237_v12  ;;  %v613_v53 = vadd.f32 %v9237_v12, %v612_v46 }
 0x120   : > { %v1041_v56 = vrot.slane %v977_v54, 1  ;;  %v911_v60 = vmul.f32 %v9243_v17, %v842_v41  ;;  %v910_v61 = vmul.f32 %v9243_v17, %v841_v50  ;;  %v9470_v34 = vmax.f32 %v9380_v22, %v1139_v9  ;;  %v7789_v62 = vpop.f32.mrb[24].mxu0 }
 0x121   : > { %v1339_v63 = vsel %vm1286_vm2, %v1232_v28, %v1233_v52  ;;  %v1338_v0 = vsel %vm1286_vm2, %v1233_v52, %v1234_v35  ;;  %v844_v4 = vmax.f32 %v618_v11, 0.0  ;;  %v843_v57 = vmax.f32 %v613_v53, 0.0  ;;  %v622_v5 = vpop.f32.mrb[25].mxu0 }
 0x122   : > { %v1134_v6 = vsel %vm1089_vm1, %v1041_v56, %v1042_v51  ;;  %v1135_v7 = vsel %vm1089_vm1, %v1040_v18, %v1041_v56  ;;  %v9481_v8 = vadd.f32 %v9249_v20, %v911_v60  ;;  %v979_v22 = vadd.f32 %v9249_v20, %v910_v61  ;;  %7870 = vmatprep.mubr.msk.f32.mxu1 %vm1355_vm3, %v1339_v63 }
 0x123   : > { %v9485_v9 = vmax.f32 %v977_v54, %v1134_v6  ;;  %7871 = vmatmul.mubr.msk.f32.gmra.mrb[10].mxu1 %vm1355_vm3, %v1338_v0  ;;  %v913_v13 = vmul.f32 %v9243_v17, %v844_v4  ;;  %v912_v16 = vmul.f32 %v9243_v17, %v843_v57  ;;  %v1235_v19 = vrot.slane %v9470_v34, 2 }
 0x124   : > { %v1044_v21 = vrot.slane %v9481_v8, 1  ;;  %v1043_v18 = vrot.slane %v979_v22, 1  ;;  %v1236_v25 = vrot.slane %v9434_v15, 2  ;;  %v628_v26 = vadd.f32 %v7789_v62, %v9237_v12  ;;  %v7792_v28 = vpop.f32.mrb[26].mxu0 }
 0x125   : > { %v9495_v29 = vadd.f32 %v9249_v20, %v913_v13  ;;  %v981_v30 = vadd.f32 %v9249_v20, %v912_v16  ;;  %v1337_v32 = vsel %vm1286_vm2, %v1234_v35, %v1235_v19  ;;  %v623_v39 = vadd.f32 %v9237_v12, %v622_v5  ;;  %v632_v59 = vpop.f32.mrb[27].mxu0 }
 0x126   : > { %v1132_v43 = vsel %vm1089_vm1, %v1043_v18, %v1044_v21  ;;  %v1133_v46 = vsel %vm1089_vm1, %v1042_v51, %v1043_v18  ;;  %7873 = vmatprep.mubr.msk.f32.mxu1 %vm1355_vm3, %v1337_v32  ;;  %v1336_v54 = vsel %vm1286_vm2, %v1235_v19, %v1236_v25  ;;  %v846_v41 = vmax.f32 %v628_v26, 0.0 }
 0x127   : > { %v9508_v50 = vmax.f32 %v979_v22, %v1132_v43  ;;  %v1046_v52 = vrot.slane %v9495_v29, 1  ;;  %v1045_v35 = vrot.slane %v981_v30, 1  ;;  %7874 = vmatmul.mubr.msk.f32.gmra.mrb[12].mxu1 %vm1355_vm3, %v1336_v54  ;;  %v845_v11 = vmax.f32 %v623_v39, 0.0 }
 0x128   : > { %v915_v53 = vmul.f32 %v9243_v17, %v846_v41  ;;  %v9514_v56 = vmax.f32 %v9401_v44, %v1137_v40  ;;  %v1238_v51 = vrot.slane %v9459_v47, 2  ;;  %v638_v60 = vadd.f32 %v7792_v28, %v9237_v12  ;;  %v7795_v61 = vpop.f32.mrb[28].mxu0 }
 0x129   : > { %v1130_v62 = vsel %vm1089_vm1, %v1045_v35, %v1046_v52  ;;  %v1131_v63 = vsel %vm1089_vm1, %v1044_v21, %v1045_v35  ;;  %v914_v0 = vmul.f32 %v9243_v17, %v845_v11  ;;  %v633_v4 = vadd.f32 %v9237_v12, %v632_v59  ;;  %v642_v57 = vpop.f32.mrb[29].mxu0 }
 0x12a   : > { %v9524_v5 = vmax.f32 %v981_v30, %v1130_v62  ;;  %v9527_v44 = vadd.f32 %v9249_v20, %v915_v53  ;;  %v1237_v40 = vrot.slane %v9514_v56, 2  ;;  %v848_v6 = vmax.f32 %v638_v60, 0.0 }
 0x12b   : > { %v983_v22 = vadd.f32 %v9249_v20, %v914_v0  ;;  %v847_v13 = vmax.f32 %v633_v4, 0.0  ;;  %v9532_v16 = vmax.f32 %v9421_v3, %v1135_v7  ;;  %v1240_v19 = vrot.slane %v9485_v9, 2 }
 0x12c   : > { %v1048_v21 = vrot.slane %v9527_v44, 1  ;;  %v1335_v18 = vsel %vm1286_vm2, %v1236_v25, %v1237_v40  ;;  %v1334_v26 = vsel %vm1286_vm2, %v1237_v40, %v1238_v51  ;;  %v917_v28 = vmul.f32 %v9243_v17, %v848_v6  ;;  %v7798_v30 = vpop.f32.mrb[30].mxu0 }
 0x12d   : > { %v1047_v32 = vrot.slane %v983_v22, 1  ;;  %7876 = vmatprep.mubr.msk.f32.mxu1 %vm1355_vm3, %v1335_v18  ;;  %v916_v39 = vmul.f32 %v9243_v17, %v847_v13  ;;  %v1239_v3 = vrot.slane %v9532_v16, 2  ;;  %v648_v7 = vadd.f32 %v7795_v61, %v9237_v12  ;;  %v652_v59 = vpop.f32.mrb[31].mxu0 }
 0x12e   : > { %7877 = vmatmul.mubr.msk.f32.gmra.mrb[14].mxu1 %vm1355_vm3, %v1334_v26  ;;  %v9547_v25 = vadd.f32 %v9249_v20, %v917_v28  ;;  %v643_v43 = vadd.f32 %v9237_v12, %v642_v57  ;;  %v9551_v54 = vmax.f32 %v9455_v42, %v1133_v46  ;;  %v1242_v41 = vrot.slane %v9508_v50, 2 }
 0x12f   : > { %v1128_v35 = vsel %vm1089_vm1, %v1047_v32, %v1048_v21  ;;  %v1129_v11 = vsel %vm1089_vm1, %v1046_v52, %v1047_v32  ;;  %v985_v53 = vadd.f32 %v9249_v20, %v916_v39  ;;  %v1333_v60 = vsel %vm1286_vm2, %v1238_v51, %v1239_v3 }
 0x130   : > { %v9561_v61 = vmax.f32 %v983_v22, %v1128_v35  ;;  %v1050_v62 = vrot.slane %v9547_v25, 1  ;;  %7879 = vmatprep.mubr.msk.f32.mxu1 %vm1355_vm3, %v1333_v60  ;;  %v1332_v42 = vsel %vm1286_vm2, %v1239_v3, %v1240_v19  ;;  %v850_v46 = vmax.f32 %v648_v7, 0.0  ;;  %v7801_v0 = vpop.f32.mrb[32].mxu0 }
 0x131   : > { %v1049_v4 = vrot.slane %v985_v53, 1  ;;  %v849_v57 = vmax.f32 %v643_v43, 0.0  ;;  %v1241_v52 = vrot.slane %v9551_v54, 2  ;;  %v658_v40 = vadd.f32 %v7798_v30, %v9237_v12  ;;  %v662_v6 = vpop.f32.mrb[33].mxu0 }
 0x132   : > { %12198 = vst [vmem:[#allocation6_spill] sm:$0xff] %v9561_v61  ;;  %7880 = vmatmul.mubr.msk.f32.gmra.mrb[16].mxu1 %vm1355_vm3, %v1332_v42  ;;  %v919_v51 = vmul.f32 %v9243_v17, %v850_v46  ;;  %v653_v22 = vadd.f32 %v9237_v12, %v652_v59  ;;  %v9573_v13 = vmax.f32 %v9481_v8, %v1131_v63  ;;  %v1244_v18 = vrot.slane %v9524_v5, 2 }
 0x133   : > { %v1126_v26 = vsel %vm1089_vm1, %v1049_v4, %v1050_v62  ;;  %v1127_v28 = vsel %vm1089_vm1, %v1048_v21, %v1049_v4  ;;  %v918_v30 = vmul.f32 %v9243_v17, %v849_v57  ;;  %v1331_v32 = vsel %vm1286_vm2, %v1240_v19, %v1241_v52 }
 0x134   : > { %v9583_v39 = vmax.f32 %v985_v53, %v1126_v26  ;;  %v9586_v3 = vadd.f32 %v9249_v20, %v919_v51  ;;  %7882 = vmatprep.mubr.msk.f32.mxu1 %vm1355_vm3, %v1331_v32  ;;  %v1330_v8 = vsel %vm1286_vm2, %v1241_v52, %v1242_v41  ;;  %v852_v63 = vmax.f32 %v658_v40, 0.0  ;;  %v7804_v7 = vpop.f32.mrb[34].mxu0 }
 0x135   : > { %v987_v59 = vadd.f32 %v9249_v20, %v918_v30  ;;  %v851_v21 = vmax.f32 %v653_v22, 0.0  ;;  %v1243_v43 = vrot.slane %v9573_v13, 2  ;;  %v668_v35 = vadd.f32 %v7801_v0, %v9237_v12  ;;  %v672_v19 = vpop.f32.mrb[35].mxu0 }
 0x136   : > { %12199 = vst [vmem:[#allocation7_spill] sm:$0xff] %v9583_v39  ;;  %v1052_v53 = vrot.slane %v9586_v3, 1  ;;  %7883 = vmatmul.mubr.msk.f32.gmra.mrb[18].mxu1 %vm1355_vm3, %v1330_v8  ;;  %v921_v60 = vmul.f32 %v9243_v17, %v852_v63  ;;  %v663_v42 = vadd.f32 %v9237_v12, %v662_v6  ;;  %v9599_v46 = vmax.f32 %v9495_v29, %v1129_v11 }
 0x137   : > { %v1051_v4 = vrot.slane %v987_v59, 1  ;;  %v920_v57 = vmul.f32 %v9243_v17, %v851_v21  ;;  %v1329_v52 = vsel %vm1286_vm2, %v1242_v41, %v1243_v43  ;;  %v1328_v0 = vsel %vm1286_vm2, %v1243_v43, %v1244_v18 }
 0x138   : > { %v9607_v40 = vadd.f32 %v9249_v20, %v921_v60  ;;  %7885 = vmatprep.mubr.msk.f32.mxu1 %vm1355_vm3, %v1329_v52  ;;  %v854_v51 = vmax.f32 %v668_v35, 0.0  ;;  %v853_v22 = vmax.f32 %v663_v42, 0.0  ;;  %v1245_v6 = vrot.slane %v9599_v46, 2  ;;  %v7807_v29 = vpop.f32.mrb[36].mxu0 }
 0x139   : > { %v1124_v11 = vsel %vm1089_vm1, %v1051_v4, %v1052_v53  ;;  %v1125_v26 = vsel %vm1089_vm1, %v1050_v62, %v1051_v4  ;;  %v989_v41 = vadd.f32 %v9249_v20, %v920_v57  ;;  %v1246_v30 = vrot.slane %v9561_v61, 2  ;;  %v682_v32 = vpop.f32.mrb[37].mxu0 }
 0x13a   : > { %v9617_v8 = vmax.f32 %v987_v59, %v1124_v11  ;;  %v1054_v63 = vrot.slane %v9607_v40, 1  ;;  %7886 = vmatmul.mubr.msk.f32.gmra.mrb[20].mxu1 %vm1355_vm3, %v1328_v0  ;;  %v923_v21 = vmul.f32 %v9243_v17, %v854_v51  ;;  %v922_v43 = vmul.f32 %v9243_v17, %v853_v22 }
 0x13b   : > { %v1053_v35 = vrot.slane %v989_v41, 1  ;;  %v1327_v60 = vsel %vm1286_vm2, %v1244_v18, %v1245_v6  ;;  %v1326_v62 = vsel %vm1286_vm2, %v1245_v6, %v1246_v30  ;;  %v678_v42 = vadd.f32 %v7804_v7, %v9237_v12 }
 0x13c   : > { %12200 = vst [vmem:[#allocation8_spill] sm:$0xff] %v9617_v8  ;;  %v9629_v59 = vadd.f32 %v9249_v20, %v923_v21  ;;  %v991_v4 = vadd.f32 %v9249_v20, %v922_v43  ;;  %7888 = vmatprep.mubr.msk.f32.mxu1 %vm1355_vm3, %v1327_v60  ;;  %v673_v57 = vadd.f32 %v9237_v12, %v672_v19  ;;  %v7810_v0 = vpop.f32.mrb[38].mxu0  ;;  %v1248_v22 = vrot.slane %v9583_v39, 2 }
 0x13d   : > { %v9635_v52 = vmax.f32 %v9527_v44, %v1127_v28  ;;  %v1122_v18 = vsel %vm1089_vm1, %v1053_v35, %v1054_v63  ;;  %v1123_v51 = vsel %vm1089_vm1, %v1052_v53, %v1053_v35  ;;  %v856_v7 = vmax.f32 %v678_v42, 0.0  ;;  %v692_v6 = vpop.f32.mrb[39].mxu0 }
 0x13e   : > { %v9642_v11 = vmax.f32 %v989_v41, %v1122_v18  ;;  %v1056_v21 = vrot.slane %v9629_v59, 1  ;;  %v1055_v43 = vrot.slane %v991_v4, 1  ;;  %7889 = vmatmul.mubr.msk.f32.gmra.mrb[22].mxu1 %vm1355_vm3, %v1326_v62  ;;  %v855_v44 = vmax.f32 %v673_v57, 0.0 }
 0x13f   : > { %12201 = vst [vmem:[#allocation9_spill] sm:$0xff] %v9635_v52  ;;  %v925_v28 = vmul.f32 %v9243_v17, %v856_v7  ;;  %v1247_v19 = vrot.slane %v9635_v52, 2  ;;  %v688_v60 = vadd.f32 %v7807_v29, %v9237_v12  ;;  %v683_v53 = vadd.f32 %v9237_v12, %v682_v32 }
 0x140   : > { %12202 = vst [vmem:[#allocation10_spill] sm:$0xff] %v9642_v11  ;;  %v1120_v35 = vsel %vm1089_vm1, %v1055_v43, %v1056_v21  ;;  %v1121_v41 = vsel %vm1089_vm1, %v1054_v63, %v1055_v43  ;;  %v924_v42 = vmul.f32 %v9243_v17, %v855_v44  ;;  %v9656_v18 = vmax.f32 %v9547_v25, %v1125_v26  ;;  %v7813_v62 = vpop.f32.mrb[40].mxu0 }
 0x141   : > { %v9658_v57 = vmax.f32 %v991_v4, %v1120_v35  ;;  %v9661_v7 = vadd.f32 %v9249_v20, %v925_v28  ;;  %v1325_v29 = vsel %vm1286_vm2, %v1246_v30, %v1247_v19  ;;  %v1324_v32 = vsel %vm1286_vm2, %v1247_v19, %v1248_v22  ;;  %v702_v14 = vpop.f32.mrb[41].mxu0 }
 0x142   : > { %12203 = vst [vmem:[#allocation11_spill] sm:$0xff] %v9656_v18  ;;  %v993_v63 = vadd.f32 %v9249_v20, %v924_v42  ;;  %7891 = vmatprep.mubr.msk.f32.mxu1 %vm1355_vm3, %v1325_v29  ;;  %v858_v43 = vmax.f32 %v688_v60, 0.0  ;;  %v857_v25 = vmax.f32 %v683_v53, 0.0  ;;  %v1249_v26 = vrot.slane %v9656_v18, 2 }
 0x143   : > { %12204 = vst [vmem:[#allocation12_spill] sm:$0xff] %v9658_v57  ;;  %v1058_v4 = vrot.slane %v9661_v7, 1  ;;  %7892 = vmatmul.mubr.msk.f32.gmra.mrb[24].mxu1 %vm1355_vm3, %v1324_v32  ;;  %v1250_v44 = vrot.slane %v9617_v8, 2  ;;  %v698_v30 = vadd.f32 %v7810_v0, %v9237_v12  ;;  %v693_v28 = vadd.f32 %v9237_v12, %v692_v6 }
 0x144   : > { %v1057_v19 = vrot.slane %v993_v63, 1  ;;  %v927_v35 = vmul.f32 %v9243_v17, %v858_v43  ;;  %v926_v42 = vmul.f32 %v9243_v17, %v857_v25  ;;  %v1323_v60 = vsel %vm1286_vm2, %v1248_v22, %v1249_v26  ;;  %v7816_v53 = vpop.f32.mrb[42].mxu0 }
 0x145   : > { %7894 = vmatprep.mubr.msk.f32.mxu1 %vm1355_vm3, %v1323_v60  ;;  %v1322_v29 = vsel %vm1286_vm2, %v1249_v26, %v1250_v44  ;;  %v860_v32 = vmax.f32 %v698_v30, 0.0  ;;  %v859_v38 = vmax.f32 %v693_v28, 0.0  ;;  %v9683_v0 = vmax.f32 %v9586_v3, %v1123_v51  ;;  %v712_v6 = vpop.f32.mrb[43].mxu0 }
 0x146   : > { %v1118_v43 = vsel %vm1089_vm1, %v1057_v19, %v1058_v4  ;;  %v1119_v25 = vsel %vm1089_vm1, %v1056_v21, %v1057_v19  ;;  %v9690_v22 = vadd.f32 %v9249_v20, %v927_v35  ;;  %v995_v60 = vadd.f32 %v9249_v20, %v926_v42 }
 0x147   : > { %12205 = vst [vmem:[#allocation13_spill] sm:$0xff] %v9683_v0  ;;  %v9693_v8 = vmax.f32 %v993_v63, %v1118_v43  ;;  %7895 = vmatmul.mubr.msk.f32.gmra.mrb[26].mxu1 %vm1355_vm3, %v1322_v29  ;;  %v929_v26 = vmul.f32 %v9243_v17, %v860_v32  ;;  %v928_v3 = vmul.f32 %v9243_v17, %v859_v38  ;;  %v1251_v51 = vrot.slane %v9683_v0, 2 }
 0x148   : > { %v1060_v30 = vrot.slane %v9690_v22, 1  ;;  %v1059_v28 = vrot.slane %v995_v60, 1  ;;  %v1252_v21 = vrot.slane %v9642_v11, 2  ;;  %v708_v19 = vadd.f32 %v7813_v62, %v9237_v12  ;;  %v7819_v35 = vpop.f32.mrb[44].mxu0 }
 0x149   : > { %12206 = vst [vmem:[#allocation14_spill] sm:$0xff] %v9693_v8  ;;  %v9703_v42 = vadd.f32 %v9249_v20, %v929_v26  ;;  %v997_v63 = vadd.f32 %v9249_v20, %v928_v3  ;;  %v1321_v29 = vsel %vm1286_vm2, %v1250_v44, %v1251_v51  ;;  %v703_v38 = vadd.f32 %v9237_v12, %v702_v14  ;;  %v722_v32 = vpop.f32.mrb[45].mxu0 }
 0x14a   : > { %v1116_v43 = vsel %vm1089_vm1, %v1059_v28, %v1060_v30  ;;  %v1117_v11 = vsel %vm1089_vm1, %v1058_v4, %v1059_v28  ;;  %7897 = vmatprep.mubr.msk.f32.mxu1 %vm1355_vm3, %v1321_v29  ;;  %v1320_v62 = vsel %vm1286_vm2, %v1251_v51, %v1252_v21  ;;  %v862_v26 = vmax.f32 %v708_v19, 0.0 }
 0x14b   : > { %v9716_v0 = vmax.f32 %v995_v60, %v1116_v43  ;;  %v1062_v3 = vrot.slane %v9703_v42, 1  ;;  %v1061_v44 = vrot.slane %v997_v63, 1  ;;  %7898 = vmatmul.mubr.msk.f32.gmra.mrb[28].mxu1 %vm1355_vm3, %v1320_v62  ;;  %v861_v14 = vmax.f32 %v703_v38, 0.0 }
 0x14c   : > { %v931_v18 = vmul.f32 %v9243_v17, %v862_v26  ;;  %v9722_v39 = vmax.f32 %v9607_v40, %v1121_v41  ;;  %v1254_v4 = vrot.slane %v9658_v57, 2  ;;  %v718_v28 = vadd.f32 %v7816_v53, %v9237_v12  ;;  %v7822_v29 = vpop.f32.mrb[46].mxu0 }
 0x14d   : > { %12207 = vst [vmem:[#allocation15_spill] sm:$0xff] %v9716_v0  ;;  %v1114_v60 = vsel %vm1089_vm1, %v1061_v44, %v1062_v3  ;;  %v1115_v51 = vsel %vm1089_vm1, %v1060_v30, %v1061_v44  ;;  %v930_v19 = vmul.f32 %v9243_v17, %v861_v14  ;;  %v713_v38 = vadd.f32 %v9237_v12, %v712_v6  ;;  %v732_v43 = vpop.f32.mrb[47].mxu0 }
 0x14e   : > { %12208 = vst [vmem:[#allocation16_spill] sm:$0xff] %v9722_v39  ;;  %v9732_v62 = vmax.f32 %v997_v63, %v1114_v60  ;;  %v9735_v40 = vadd.f32 %v9249_v20, %v931_v18  ;;  %v1253_v41 = vrot.slane %v9722_v39, 2  ;;  %v864_v53 = vmax.f32 %v718_v28, 0.0 }
 0x14f   : > { %v999_v26 = vadd.f32 %v9249_v20, %v930_v19  ;;  %v863_v57 = vmax.f32 %v713_v38, 0.0  ;;  %v9740_v52 = vmax.f32 %v9629_v59, %v1119_v25  ;;  %v1256_v30 = vrot.slane %v9693_v8, 2 }
 0x150   : > { %12209 = vst [vmem:[#allocation17_spill] sm:$0xff] %v9732_v62  ;;  %v1064_v44 = vrot.slane %v9735_v40, 1  ;;  %v1319_v6 = vsel %vm1286_vm2, %v1252_v21, %v1253_v41  ;;  %v1318_v18 = vsel %vm1286_vm2, %v1253_v41, %v1254_v4  ;;  %v933_v63 = vmul.f32 %v9243_v17, %v864_v53  ;;  %v7825_v14 = vpop.f32.mrb[48].mxu0 }
 0x151   : > { %12210 = vst [vmem:[#allocation18_spill] sm:$0xff] %v9740_v52  ;;  %v1063_v28 = vrot.slane %v999_v26, 1  ;;  %7900 = vmatprep.mubr.msk.f32.mxu1 %vm1355_vm3, %v1319_v6  ;;  %v932_v60 = vmul.f32 %v9243_v17, %v863_v57  ;;  %v1255_v59 = vrot.slane %v9740_v52, 2  ;;  %v728_v25 = vadd.f32 %v7819_v35, %v9237_v12  ;;  %v742_v19 = vpop.f32.mrb[49].mxu0 }
 0x152   : > { %7901 = vmatmul.mubr.msk.f32.gmra.mrb[30].mxu1 %vm1355_vm3, %v1318_v18  ;;  %v9755_v21 = vadd.f32 %v9249_v20, %v933_v63  ;;  %v723_v38 = vadd.f32 %v9237_v12, %v722_v32  ;;  %v9759_v41 = vmax.f32 %v9661_v7, %v1117_v11  ;;  %v1258_v53 = vrot.slane %v9716_v0, 2 }
 0x153   : > { %v1112_v57 = vsel %vm1089_vm1, %v1063_v28, %v1064_v44  ;;  %v1113_v6 = vsel %vm1089_vm1, %v1062_v3, %v1063_v28  ;;  %v1001_v35 = vadd.f32 %v9249_v20, %v932_v60  ;;  %v1317_v18 = vsel %vm1286_vm2, %v1254_v4, %v1255_v59 }
 0x154   : > { %12211 = vst [vmem:[#allocation19_spill] sm:$0xff] %v9759_v41  ;;  %v9769_v63 = vmax.f32 %v999_v26, %v1112_v57  ;;  %v1066_v32 = vrot.slane %v9755_v21, 1  ;;  %7903 = vmatprep.mubr.msk.f32.mxu1 %vm1355_vm3, %v1317_v18  ;;  %v1316_v11 = vsel %vm1286_vm2, %v1255_v59, %v1256_v30  ;;  %v866_v7 = vmax.f32 %v728_v25, 0.0  ;;  %v7828_v0 = vpop.f32.mrb[50].mxu0 }
 0x155   : > { %v1065_v8 = vrot.slane %v1001_v35, 1  ;;  %v865_v52 = vmax.f32 %v723_v38, 0.0  ;;  %v1257_v3 = vrot.slane %v9759_v41, 2  ;;  %v738_v28 = vadd.f32 %v7822_v29, %v9237_v12  ;;  %v752_v60 = vpop.f32.mrb[51].mxu0 }
 0x156   : > { %12212 = vst [vmem:[#allocation20_spill] sm:$0xff] %v9769_v63  ;;  %7904 = vmatmul.mubr.msk.f32.gmra.mrb[32].mxu1 %vm1355_vm3, %v1316_v11  ;;  %v935_v4 = vmul.f32 %v9243_v17, %v866_v7  ;;  %v733_v26 = vadd.f32 %v9237_v12, %v732_v43  ;;  %v9781_v57 = vmax.f32 %v9690_v22, %v1115_v51  ;;  %v1260_v59 = vrot.slane %v9732_v62, 2 }
 0x157   : > { %v1110_v25 = vsel %vm1089_vm1, %v1065_v8, %v1066_v32  ;;  %v1111_v38 = vsel %vm1089_vm1, %v1064_v44, %v1065_v8  ;;  %v934_v29 = vmul.f32 %v9243_v17, %v865_v52  ;;  %v1315_v18 = vsel %vm1286_vm2, %v1256_v30, %v1257_v3 }
 0x158   : > { %12213 = vst [vmem:[#allocation21_spill] sm:$0xff] %v9781_v57  ;;  %v9791_v11 = vmax.f32 %v1001_v35, %v1110_v25  ;;  %v9794_v43 = vadd.f32 %v9249_v20, %v935_v4  ;;  %7906 = vmatprep.mubr.msk.f32.mxu1 %vm1355_vm3, %v1315_v18  ;;  %v1314_v22 = vsel %vm1286_vm2, %v1257_v3, %v1258_v53  ;;  %v868_v51 = vmax.f32 %v738_v28, 0.0  ;;  %v7831_v7 = vpop.f32.mrb[52].mxu0 }
 0x159   : > { %v1003_v62 = vadd.f32 %v9249_v20, %v934_v29  ;;  %v867_v8 = vmax.f32 %v733_v26, 0.0  ;;  %v1259_v52 = vrot.slane %v9781_v57, 2  ;;  %v748_v44 = vadd.f32 %v7825_v14, %v9237_v12  ;;  %v762_v30 = vpop.f32.mrb[53].mxu0 }
 0x15a   : > { %12214 = vst [vmem:[#allocation22_spill] sm:$0xff] %v9791_v11  ;;  %v1068_v35 = vrot.slane %v9794_v43, 1  ;;  %7907 = vmatmul.mubr.msk.f32.gmra.mrb[34].mxu1 %vm1355_vm3, %v1314_v22  ;;  %v937_v4 = vmul.f32 %v9243_v17, %v868_v51  ;;  %v743_v25 = vadd.f32 %v9237_v12, %v742_v19  ;;  %v9807_v3 = vmax.f32 %v9703_v42, %v1113_v6 }
 0x15b   : > { %v1067_v28 = vrot.slane %v1003_v62, 1  ;;  %v936_v29 = vmul.f32 %v9243_v17, %v867_v8  ;;  %v1313_v26 = vsel %vm1286_vm2, %v1258_v53, %v1259_v52  ;;  %v1312_v14 = vsel %vm1286_vm2, %v1259_v52, %v1260_v59 }
 0x15c   : > { %12215 = vst [vmem:[#allocation23_spill] sm:$0xff] %v9807_v3  ;;  %v9815_v18 = vadd.f32 %v9249_v20, %v937_v4  ;;  %7909 = vmatprep.mubr.msk.f32.mxu1 %vm1355_vm3, %v1313_v26  ;;  %v870_v22 = vmax.f32 %v748_v44, 0.0  ;;  %v869_v51 = vmax.f32 %v743_v25, 0.0  ;;  %v1261_v12 = vrot.slane %v9807_v3, 2  ;;  %v7834_v42 = vpop.f32.mrb[54].mxu0 }
 0x15d   : > { %v1108_v19 = vsel %vm1089_vm1, %v1067_v28, %v1068_v35  ;;  %v1109_v17 = vsel %vm1089_vm1, %v1066_v32, %v1067_v28  ;;  %v1005_v53 = vadd.f32 %v9249_v20, %v936_v29  ;;  %v1262_v6 = vrot.slane %v9769_v63, 2  ;;  %v772_v8 = vpop.f32.mrb[55].mxu0  ;;  %v9832_v44 = vld [vmem:[%s12083_s1 + $0xd1] ss:$0 sm:$0xff]  ;;  %v9843_v29 = vld [vmem:[%s12083_s1 + $0xd0] ss:$0 sm:$0xff] }
 0x15e   : > { %v9825_v52 = vmax.f32 %v1003_v62, %v1108_v19  ;;  %v1070_v4 = vrot.slane %v9815_v18, 1  ;;  %7910 = vmatmul.mubr.msk.f32.gmra.mrb[36].mxu1 %vm1355_vm3, %v1312_v14  ;;  %v939_v25 = vmul.f32 %v9832_v44, %v870_v22  ;;  %v938_v32 = vmul.f32 %v9832_v44, %v869_v51  ;;  %v9849_v14 = vld [vmem:[%s12083_s1 + $0xd2] ss:$0 sm:$0xff] }
 0x15f   : > { %v1069_v28 = vrot.slane %v1005_v53, 1  ;;  %v1311_v20 = vsel %vm1286_vm2, %v1260_v59, %v1261_v12  ;;  %v1310_v62 = vsel %vm1286_vm2, %v1261_v12, %v1262_v6  ;;  %v758_v26 = vadd.f32 %v9843_v29, %v7828_v0 }
 0x160   : > { %12216 = vst [vmem:[#allocation24_spill] sm:$0xff] %v9825_v52  ;;  %v9852_v22 = vadd.f32 %v9849_v14, %v939_v25  ;;  %v1007_v59 = vadd.f32 %v9849_v14, %v938_v32  ;;  %7912 = vmatprep.mubr.msk.f32.mxu1 %vm1355_vm3, %v1311_v20  ;;  %v753_v51 = vadd.f32 %v9843_v29, %v752_v60  ;;  %v7837_v19 = vpop.f32.mrb[56].mxu0  ;;  %v1264_v25 = vrot.slane %v9791_v11, 2 }
 0x161   : > { %v9858_v12 = vmax.f32 %v9735_v40, %v1111_v38  ;;  %v1106_v0 = vsel %vm1089_vm1, %v1069_v28, %v1070_v4  ;;  %v1107_v63 = vsel %vm1089_vm1, %v1068_v35, %v1069_v28  ;;  %v872_v3 = vmax.f32 %v758_v26, 0.0  ;;  %v782_v57 = vpop.f32.mrb[57].mxu0 }
 0x162   : > { %v9865_v41 = vmax.f32 %v1005_v53, %v1106_v0  ;;  %v1072_v32 = vrot.slane %v9852_v22, 1  ;;  %v1071_v20 = vrot.slane %v1007_v59, 1  ;;  %7913 = vmatmul.mubr.msk.f32.gmra.mrb[38].mxu1 %vm1355_vm3, %v1310_v62  ;;  %v871_v40 = vmax.f32 %v753_v51, 0.0 }
 0x163   : > { %12217 = vst [vmem:[#allocation25_spill] sm:$0xff] %v9858_v12  ;;  %v941_v60 = vmul.f32 %v9832_v44, %v872_v3  ;;  %v1263_v38 = vrot.slane %v9858_v12, 2  ;;  %v768_v39 = vadd.f32 %v9843_v29, %v7831_v7  ;;  %v763_v35 = vadd.f32 %v9843_v29, %v762_v30 }
 0x164   : > { %12218 = vst [vmem:[#allocation26_spill] sm:$0xff] %v9865_v41  ;;  %v1104_v28 = vsel %vm1089_vm1, %v1071_v20, %v1072_v32  ;;  %v1105_v53 = vsel %vm1089_vm1, %v1070_v4, %v1071_v20  ;;  %v940_v26 = vmul.f32 %v9832_v44, %v871_v40  ;;  %v9879_v0 = vmax.f32 %v9755_v21, %v1109_v17  ;;  %v7840_v62 = vpop.f32.mrb[58].mxu0 }
 0x165   : > { %v9881_v51 = vmax.f32 %v1007_v59, %v1104_v28  ;;  %v9884_v3 = vadd.f32 %v9849_v14, %v941_v60  ;;  %v1309_v7 = vsel %vm1286_vm2, %v1262_v6, %v1263_v38  ;;  %v1308_v30 = vsel %vm1286_vm2, %v1263_v38, %v1264_v25  ;;  %v792_v11 = vpop.f32.mrb[59].mxu0 }
 0x166   : > { %12219 = vst [vmem:[#allocation27_spill] sm:$0xff] %v9879_v0  ;;  %v1009_v4 = vadd.f32 %v9849_v14, %v940_v26  ;;  %7915 = vmatprep.mubr.msk.f32.mxu1 %vm1355_vm3, %v1309_v7  ;;  %v874_v20 = vmax.f32 %v768_v39, 0.0  ;;  %v873_v21 = vmax.f32 %v763_v35, 0.0  ;;  %v1265_v17 = vrot.slane %v9879_v0, 2 }
 0x167   : > { %12220 = vst [vmem:[#allocation28_spill] sm:$0xff] %v9881_v51  ;;  %v1074_v59 = vrot.slane %v9884_v3, 1  ;;  %7916 = vmatmul.mubr.msk.f32.gmra.mrb[40].mxu1 %vm1355_vm3, %v1308_v30  ;;  %v1266_v40 = vrot.slane %v9825_v52, 2  ;;  %v778_v6 = vadd.f32 %v9843_v29, %v7834_v42  ;;  %v773_v60 = vadd.f32 %v9843_v29, %v772_v8 }
 0x168   : > { %v1073_v38 = vrot.slane %v1009_v4, 1  ;;  %v943_v28 = vmul.f32 %v9832_v44, %v874_v20  ;;  %v942_v26 = vmul.f32 %v9832_v44, %v873_v21  ;;  %v1307_v39 = vsel %vm1286_vm2, %v1264_v25, %v1265_v17  ;;  %v7843_v35 = vpop.f32.mrb[60].mxu0 }
 0x169   : > { %7918 = vmatprep.mubr.msk.f32.mxu1 %vm1355_vm3, %v1307_v39  ;;  %v1306_v7 = vsel %vm1286_vm2, %v1265_v17, %v1266_v40  ;;  %v876_v30 = vmax.f32 %v778_v6, 0.0  ;;  %v875_v52 = vmax.f32 %v773_v60, 0.0  ;;  %v9906_v42 = vmax.f32 %v9794_v43, %v1107_v63  ;;  %v802_v8 = vpop.f32.mrb[61].mxu0 }
 0x16a   : > { %v1102_v20 = vsel %vm1089_vm1, %v1073_v38, %v1074_v59  ;;  %v1103_v21 = vsel %vm1089_vm1, %v1072_v32, %v1073_v38  ;;  %v9913_v25 = vadd.f32 %v9849_v14, %v943_v28  ;;  %v1011_v39 = vadd.f32 %v9849_v14, %v942_v26 }
 0x16b   : > { %12221 = vst [vmem:[#allocation29_spill] sm:$0xff] %v9906_v42  ;;  %v9916_v0 = vmax.f32 %v1009_v4, %v1102_v20  ;;  %7919 = vmatmul.mubr.msk.f32.gmra.mrb[42].mxu1 %vm1355_vm3, %v1306_v7  ;;  %v945_v17 = vmul.f32 %v9832_v44, %v876_v30  ;;  %v944_v63 = vmul.f32 %v9832_v44, %v875_v52  ;;  %v1267_v43 = vrot.slane %v9906_v42, 2 }
 0x16c   : > { %v1076_v6 = vrot.slane %v9913_v25, 1  ;;  %v1075_v60 = vrot.slane %v1011_v39, 1  ;;  %v1268_v32 = vrot.slane %v9865_v41, 2  ;;  %v788_v38 = vadd.f32 %v9843_v29, %v7837_v19  ;;  %v7846_v28 = vpop.f32.mrb[62].mxu0 }
 0x16d   : > { %12222 = vst [vmem:[#allocation30_spill] sm:$0xff] %v9916_v0  ;;  %v9926_v26 = vadd.f32 %v9849_v14, %v945_v17  ;;  %v1013_v4 = vadd.f32 %v9849_v14, %v944_v63  ;;  %v1305_v7 = vsel %vm1286_vm2, %v1266_v40, %v1267_v43  ;;  %v783_v52 = vadd.f32 %v9843_v29, %v782_v57  ;;  %v812_v30 = vpop.f32.mrb[63].mxu0 }
 0x16e   : > { %v1100_v20 = vsel %vm1089_vm1, %v1075_v60, %v1076_v6  ;;  %v1101_v41 = vsel %vm1089_vm1, %v1074_v59, %v1075_v60  ;;  %7921 = vmatprep.mubr.msk.f32.mxu1 %vm1355_vm3, %v1305_v7  ;;  %v1304_v19 = vsel %vm1286_vm2, %v1267_v43, %v1268_v32  ;;  %v878_v17 = vmax.f32 %v788_v38, 0.0 }
 0x16f   : > { %v9939_v42 = vmax.f32 %v1011_v39, %v1100_v20  ;;  %v1078_v63 = vrot.slane %v9926_v26, 1  ;;  %v1077_v40 = vrot.slane %v1013_v4, 1  ;;  %7922 = vmatmul.mubr.msk.f32.gmra.mrb[44].mxu1 %vm1355_vm3, %v1304_v19  ;;  %v877_v57 = vmax.f32 %v783_v52, 0.0 }
 0x170   : > { %v947_v12 = vmul.f32 %v9832_v44, %v878_v17  ;;  %v9945_v61 = vmax.f32 %v9815_v18, %v1105_v53  ;;  %v1270_v59 = vrot.slane %v9881_v51, 2  ;;  %v798_v60 = vadd.f32 %v9843_v29, %v7840_v62 }
 0x171   : > { %v1098_v43 = vsel %vm1089_vm1, %v1077_v40, %v1078_v63  ;;  %v1099_v39 = vsel %vm1089_vm1, %v1076_v6, %v1077_v40  ;;  %v946_v38 = vmul.f32 %v9832_v44, %v877_v57  ;;  %v793_v7 = vadd.f32 %v9843_v29, %v792_v11 }
 0x172   : > { %v9955_v52 = vmax.f32 %v1013_v4, %v1098_v43  ;;  %v1016_v20 = vadd.f32 %v9849_v14, %v947_v12  ;;  %v1269_v18 = vrot.slane %v9945_v61, 2  ;;  %v880_v53 = vmax.f32 %v798_v60, 0.0 }
 0x173   : > { %v1015_v19 = vadd.f32 %v9849_v14, %v946_v38  ;;  %v879_v62 = vmax.f32 %v793_v7, 0.0  ;;  %v9961_v17 = vmax.f32 %v9852_v22, %v1103_v21  ;;  %v1272_v51 = vrot.slane %v9916_v0, 2 }
 0x174   : > { %v1080_v6 = vrot.slane %v1016_v20, 1  ;;  %v1303_v40 = vsel %vm1286_vm2, %v1268_v32, %v1269_v18  ;;  %v1302_v11 = vsel %vm1286_vm2, %v1269_v18, %v1270_v59  ;;  %v949_v12 = vmul.f32 %v9832_v44, %v880_v53 }
 0x175   : > { %12223 = vst [vmem:[#allocation31_spill] sm:$0xff] %v9961_v17  ;;  %v1079_v4 = vrot.slane %v1015_v19, 1  ;;  %7924 = vmatprep.mubr.msk.f32.mxu1 %vm1355_vm3, %v1303_v40  ;;  %v948_v57 = vmul.f32 %v9832_v44, %v879_v62  ;;  %v1271_v60 = vrot.slane %v9961_v17, 2  ;;  %v808_v22 = vadd.f32 %v9843_v29, %v7843_v35 }
 0x176   : > { %7925 = vmatmul.mubr.msk.f32.gmra.mrb[46].mxu1 %vm1355_vm3, %v1302_v11  ;;  %v1018_v21 = vadd.f32 %v9849_v14, %v949_v12  ;;  %v803_v32 = vadd.f32 %v9843_v29, %v802_v8  ;;  %v9977_v43 = vmax.f32 %v9884_v3, %v1101_v41  ;;  %v1274_v38 = vrot.slane %v9939_v42, 2 }
 0x177   : > { %v1096_v7 = vsel %vm1089_vm1, %v1079_v4, %v1080_v6  ;;  %v1097_v18 = vsel %vm1089_vm1, %v1078_v63, %v1079_v4  ;;  %v1017_v53 = vadd.f32 %v9849_v14, %v948_v57  ;;  %v1301_v35 = vsel %vm1286_vm2, %v1270_v59, %v1271_v60 }
 0x178   : > { %v9987_v62 = vmax.f32 %v1015_v19, %v1096_v7  ;;  %v1082_v40 = vrot.slane %v1018_v21, 1  ;;  %7927 = vmatprep.mubr.msk.f32.mxu1 %vm1355_vm3, %v1301_v35  ;;  %v1300_v41 = vsel %vm1286_vm2, %v1271_v60, %v1272_v51  ;;  %v882_v3 = vmax.f32 %v808_v22, 0.0 }
 0x179   : > { %v1081_v8 = vrot.slane %v1017_v53, 1  ;;  %v881_v11 = vmax.f32 %v803_v32, 0.0  ;;  %v1273_v12 = vrot.slane %v9977_v43, 2  ;;  %v818_v63 = vadd.f32 %v9843_v29, %v7846_v28 }
 0x17a   : > { %7928 = vmatmul.mubr.msk.f32.gmra.mrb[48].mxu1 %vm1355_vm3, %v1300_v41  ;;  %v951_v4 = vmul.f32 %v9832_v44, %v882_v3  ;;  %v813_v59 = vadd.f32 %v9843_v29, %v812_v30  ;;  %v9998_v19 = vmax.f32 %v9913_v25, %v1099_v39  ;;  %v1276_v57 = vrot.slane %v9955_v52, 2 }
 0x17b   : > { %v1094_v60 = vsel %vm1089_vm1, %v1081_v8, %v1082_v40  ;;  %v1095_v22 = vsel %vm1089_vm1, %v1080_v6, %v1081_v8  ;;  %v950_v32 = vmul.f32 %v9832_v44, %v881_v11  ;;  %v1299_v28 = vsel %vm1286_vm2, %v1272_v51, %v1273_v12  ;;  %v2639_v11 = vld [vmem:[%s12083_s1 + $0x50] sm:$0xff] }
 0x17c   : > { %v10008_v7 = vmax.f32 %v1017_v53, %v1094_v60  ;;  %v1020_v29 = vadd.f32 %v9849_v14, %v951_v4  ;;  %7930 = vmatprep.mubr.msk.f32.mxu1 %vm1355_vm3, %v1299_v28  ;;  %v1298_v25 = vsel %vm1286_vm2, %v1273_v12, %v1274_v38  ;;  %v884_v30 = vmax.f32 %v818_v63, 0.0  ;;  %v2640_v12 = vld [vmem:[%s12083_s1 + $0x58] sm:$0xff] }
 0x17d   : > { %v1019_v39 = vadd.f32 %v9849_v14, %v950_v32  ;;  %v883_v35 = vmax.f32 %v813_v59, 0.0  ;;  %v1275_v6 = vrot.slane %v9998_v19, 2  ;;  %v10017_v41 = vmax.f32 %v9926_v26, %v1097_v18 }
 0x17e   : > { %v1084_v3 = vrot.slane %v1020_v29, 1  ;;  %7931 = vmatmul.mubr.msk.f32.gmra.mrb[50].mxu1 %vm1355_vm3, %v1298_v25  ;;  %v953_v51 = vmul.f32 %v9832_v44, %v884_v30  ;;  %v1278_v53 = vrot.slane %v9987_v62, 2  ;;  %v10022_v8 = vmax.f32 %v1016_v20, %v1095_v22 }
 0x17f   : > { %v1083_v63 = vrot.slane %v1019_v39, 1  ;;  %v952_v26 = vmul.f32 %v9832_v44, %v883_v35  ;;  %v1297_v18 = vsel %vm1286_vm2, %v1274_v38, %v1275_v6  ;;  %v1296_v4 = vsel %vm1286_vm2, %v1275_v6, %v1276_v57 }
 0x180   : > { %v1022_v20 = vadd.f32 %v9849_v14, %v953_v51  ;;  %7933 = vmatprep.mubr.msk.f32.mxu1 %vm1355_vm3, %v1297_v18  ;;  %v1277_v59 = vrot.slane %v10017_v41, 2  ;;  %v1279_v60 = vrot.slane %v10022_v8, 2  ;;  %v8595_v38 = vpack.c.bf16 %v2640_v12, %v2639_v11 }
 0x181   : > { %v1092_v22 = vsel %vm1089_vm1, %v1083_v63, %v1084_v3  ;;  %v1093_v44 = vsel %vm1089_vm1, %v1082_v40, %v1083_v63  ;;  %v1021_v32 = vadd.f32 %v9849_v14, %v952_v26  ;;  %v1280_v51 = vrot.slane %v10008_v7, 2 }
 0x182   : > { %v10044_v28 = vmax.f32 %v1019_v39, %v1092_v22  ;;  %v1086_v25 = vrot.slane %v1022_v20, 1  ;;  %7934 = vmatmul.mubr.msk.f32.gmra.mrb[52].mxu1 %vm1355_vm3, %v1296_v4  ;;  %v1295_v30 = vsel %vm1286_vm2, %v1276_v57, %v1277_v59  ;;  %v1294_v6 = vsel %vm1286_vm2, %v1277_v59, %v1278_v53  ;;  %8596 = vmatprep.subr.bf16.mxu1 %v8595_v38 }
 0x183   : > { %v1085_v35 = vrot.slane %v1021_v32, 1  ;;  %7936 = vmatprep.mubr.msk.f32.mxu1 %vm1355_vm3, %v1295_v30  ;;  %v10053_v40 = vmax.f32 %v1018_v21, %v1093_v44  ;;  %v1293_v14 = vsel %vm1286_vm2, %v1278_v53, %v1279_v60  ;;  %v12227_v21 = vrot.slane %v9259_v31, 1  ;;  %v2641_v30 = vld [vmem:[%s12083_s1 + $0x60] sm:$0xff] }
 0x184   : > { %12224 = vst [vmem:[#allocation32_spill] sm:$0xff] %v10044_v28  ;;  %v1292_v53 = vsel %vm1286_vm2, %v1279_v60, %v1280_v51 }
 0x185   : > { %v1090_v39 = vsel %vm1089_vm1, %v1085_v35, %v1086_v25  ;;  %v1091_v57 = vsel %vm1089_vm1, %v1084_v3, %v1085_v35  ;;  %v1281_v11 = vrot.slane %v10053_v40, 2  ;;  %v1153_v26 = vsel %vm1089_vm1, %v1086_v25, %v12227_v21  ;;  %v2642_v35 = vld [vmem:[%s12083_s1 + $0x68] sm:$0xff] }
 0x186   : > { %v10062_v12 = vmax.f32 %v1021_v32, %v1090_v39  ;;  %7937 = vmatmul.mubr.msk.f32.gmra.mrb[54].mxu1 %vm1355_vm3, %v1294_v6  ;;  %v10065_v63 = vmax.f32 %v1020_v29, %v1091_v57  ;;  %v1282_v3 = vrot.slane %v10044_v28, 2  ;;  %v10078_v59 = vmax.f32 %v1022_v20, %v1153_v26  ;;  %v12233_v39 = vld [vmem:[#allocation11_spill] sm:$0xff]  ;;  %v12234_v57 = vld [vmem:[#allocation8_spill] sm:$0xff]  ;;  %v12236_v21 = vld [vmem:[#allocation10_spill] sm:$0xff] }
 0x187   : > { %7939 = vmatprep.mubr.msk.f32.mxu1 %vm1355_vm3, %v1293_v14  ;;  %v1291_v18 = vsel %vm1286_vm2, %v1280_v51, %v1281_v11  ;;  %v12229_v32 = vrot.slane %v9280_v49, 2  ;;  %v8599_v6 = vpack.c.bf16 %v2642_v35, %v2641_v30  ;;  %v12231_v51 = vld [vmem:[#allocation9_spill] sm:$0xff]  ;;  %v12232_v14 = vld [vmem:[#allocation7_spill] sm:$0xff]  ;;  %v12237_v26 = vld [vmem:[#allocation16_spill] sm:$0xff] }
 0x188   : > { %12225 = vst [vmem:[#allocation33_spill] sm:$0xff] %v10062_v12  ;;  %12226 = vst [vmem:[#allocation34_spill] sm:$0xff] %v10065_v63  ;;  %v1283_v4 = vrot.slane %v10065_v63, 2  ;;  %v1290_v31 = vsel %vm1286_vm2, %v1281_v11, %v1282_v3  ;;  %v1284_v29 = vrot.slane %v10062_v12, 2  ;;  %v1285_v22 = vrot.slane %v10078_v59, 2  ;;  %v12235_v11 = vld [vmem:[#allocation13_spill] sm:$0xff] }
 0x189   : > { %12228 = vst [vmem:[#allocation35_spill] sm:$0xff] %v10078_v59  ;;  %v12250_v30 = vld [vmem:[#allocation24_spill] sm:$0xff]  ;;  %v12251_v35 = vld [vmem:[#allocation29_spill] sm:$0xff] }
 0x18a   : > { %7940 = vmatmul.mubr.msk.f32.gmra.mrb[56].mxu1 %vm1355_vm3, %v1292_v53  ;;  %v1289_v60 = vsel %vm1286_vm2, %v1282_v3, %v1283_v4  ;;  %v1288_v20 = vsel %vm1286_vm2, %v1283_v4, %v1284_v29  ;;  %v1287_v44 = vsel %vm1286_vm2, %v1284_v29, %v1285_v22  ;;  %v1350_v25 = vsel %vm1286_vm2, %v1285_v22, %v12229_v32  ;;  %v12238_v53 = vld [vmem:[#allocation12_spill] sm:$0xff]  ;;  %v12239_v3 = vld [vmem:[#allocation18_spill] sm:$0xff]  ;;  %v12241_v4 = vld [vmem:[#allocation19_spill] sm:$0xff] }
 0x18b   : > { %7942 = vmatprep.mubr.msk.f32.mxu1 %vm1355_vm3, %v1291_v18  ;;  %v12240_v18 = vld [vmem:[#allocation14_spill] sm:$0xff]  ;;  %v12243_v29 = vld [vmem:[#allocation21_spill] sm:$0xff]  ;;  %v12245_v22 = vld [vmem:[#allocation23_spill] sm:$0xff] }
 0x18c   : > { %v12248_v32 = vld [vmem:[#allocation22_spill] sm:$0xff] }
 0x18e   : > { %7943 = vmatmul.mubr.msk.f32.gmra.mrb[58].mxu1 %vm1355_vm3, %v1290_v31  ;;  %v12242_v31 = vld [vmem:[#allocation15_spill] sm:$0xff] }
 0x18f   : > { %7945 = vmatprep.mubr.msk.f32.mxu1 %vm1355_vm3, %v1289_v60  ;;  %v12244_v60 = vld [vmem:[#allocation17_spill] sm:$0xff] }
 0x192   : > { %7946 = vmatmul.mubr.msk.f32.gmra.mrb[60].mxu1 %vm1355_vm3, %v1288_v20  ;;  %v12246_v20 = vld [vmem:[#allocation20_spill] sm:$0xff] }
 0x193   : > { %7948 = vmatprep.mubr.msk.f32.mxu1 %vm1355_vm3, %v1287_v44  ;;  %v12247_v44 = vld [vmem:[#allocation25_spill] sm:$0xff] }
 0x196   : > { %7949 = vmatmul.mubr.msk.f32.gmra.mrb[62].mxu1 %vm1355_vm3, %v1350_v25  ;;  %v12249_v25 = vld [vmem:[#allocation27_spill] sm:$0xff] }
 0x197   : > { %7959 = vmatprep.mubr.msk.f32.mxu1 %vm1355_vm3, %v9280_v49 }
 0x19a   : > { %7960 = vmatmul.mubr.msk.f32.vlgmr.msra.gmra.mrb[0].mxu1 %vm1355_vm3, %v9301_v10 }
 0x19b   : > { %8598 = vmatpush3.bf16.msra.mxu1 %v8595_v38  ;;  %7962 = vmatprep.mubr.msk.f32.mxu1 %vm1355_vm3, %v9295_v1  ;;  %v12230_v38 = vld [vmem:[#allocation6_spill] sm:$0xff] }
 0x19c   : > { %8600 = vmatprep.subr.bf16.mxu1 %v8599_v6 }
 0x19e   : > { %7963 = vmatmul.mubr.msk.f32.gmra.mrb[2].mxu1 %vm1355_vm3, %v9324_v36 }
 0x19f   : > { %7965 = vmatprep.mubr.msk.f32.mxu1 %vm1355_vm3, %v9313_v23  ;;  %8602 = vmatpush3.bf16.msra.mxu1 %v8599_v6  ;;  %v12252_v6 = vld [vmem:[#allocation26_spill] sm:$0xff] }
 0x1a2   : > { %7966 = vmatmul.mubr.msk.f32.gmra.mrb[4].mxu1 %vm1355_vm3, %v9351_v58 }
 0x1a3   : > { %7968 = vmatprep.mubr.msk.f32.mxu1 %vm1355_vm3, %v9332_v45 }
 0x1a6   : > { %7969 = vmatmul.mubr.msk.f32.gmra.mrb[6].mxu1 %vm1355_vm3, %v9398_v37 }
 0x1a7   : > { %7971 = vmatprep.mubr.msk.f32.mxu1 %vm1355_vm3, %v9359_v2 }
 0x1aa   : > { %7972 = vmatmul.mubr.msk.f32.gmra.mrb[8].mxu1 %vm1355_vm3, %v9405_v48 }
 0x1ab   : > { %7974 = vmatprep.mubr.msk.f32.mxu1 %vm1355_vm3, %v9383_v27 }
 0x1ae   : > { %7975 = vmatmul.mubr.msk.f32.gmra.mrb[10].mxu1 %vm1355_vm3, %v9447_v33 }
 0x1af   : > { %7977 = vmatprep.mubr.msk.f32.mxu1 %vm1355_vm3, %v9412_v55 }
 0x1b2   : > { %7978 = vmatmul.mubr.msk.f32.gmra.mrb[12].mxu1 %vm1355_vm3, %v9470_v34 }
 0x1b3   : > { %7980 = vmatprep.mubr.msk.f32.mxu1 %vm1355_vm3, %v9434_v15 }
 0x1b6   : > { %7981 = vmatmul.mubr.msk.f32.gmra.mrb[14].mxu1 %vm1355_vm3, %v9514_v56 }
 0x1b7   : > { %7983 = vmatprep.mubr.msk.f32.mxu1 %vm1355_vm3, %v9459_v47 }
 0x1ba   : > { %7984 = vmatmul.mubr.msk.f32.gmra.mrb[16].mxu1 %vm1355_vm3, %v9532_v16 }
 0x1bb   : > { %7986 = vmatprep.mubr.msk.f32.mxu1 %vm1355_vm3, %v9485_v9 }
 0x1be   : > { %7987 = vmatmul.mubr.msk.f32.gmra.mrb[18].mxu1 %vm1355_vm3, %v9551_v54 }
 0x1bf   : > { %7989 = vmatprep.mubr.msk.f32.mxu1 %vm1355_vm3, %v9508_v50 }
 0x1c2   : > { %7990 = vmatmul.mubr.msk.f32.gmra.mrb[20].mxu1 %vm1355_vm3, %v9573_v13 }
 0x1c3   : > { %7992 = vmatprep.mubr.msk.f32.mxu1 %vm1355_vm3, %v9524_v5 }
 0x1c6   : > { %7993 = vmatmul.mubr.msk.f32.gmra.mrb[22].mxu1 %vm1355_vm3, %v9599_v46 }
 0x1c7   : > { %7995 = vmatprep.mubr.msk.f32.mxu1 %vm1355_vm3, %v12230_v38 }
 0x1ca   : > { %7996 = vmatmul.mubr.msk.f32.gmra.mrb[24].mxu1 %vm1355_vm3, %v12231_v51 }
 0x1cb   : > { %7998 = vmatprep.mubr.msk.f32.mxu1 %vm1355_vm3, %v12232_v14 }
 0x1ce   : > { %7999 = vmatmul.mubr.msk.f32.gmra.mrb[26].mxu1 %vm1355_vm3, %v12233_v39 }
 0x1cf   : > { %8001 = vmatprep.mubr.msk.f32.mxu1 %vm1355_vm3, %v12234_v57 }
 0x1d2   : > { %8002 = vmatmul.mubr.msk.f32.gmra.mrb[28].mxu1 %vm1355_vm3, %v12235_v11 }
 0x1d3   : > { %8004 = vmatprep.mubr.msk.f32.mxu1 %vm1355_vm3, %v12236_v21 }
 0x1d6   : > { %8005 = vmatmul.mubr.msk.f32.gmra.mrb[30].mxu1 %vm1355_vm3, %v12237_v26 }
 0x1d7   : > { %8007 = vmatprep.mubr.msk.f32.mxu1 %vm1355_vm3, %v12238_v53 }
 0x1da   : > { %8008 = vmatmul.mubr.msk.f32.gmra.mrb[32].mxu1 %vm1355_vm3, %v12239_v3 }
 0x1db   : > { %8010 = vmatprep.mubr.msk.f32.mxu1 %vm1355_vm3, %v12240_v18 }
 0x1de   : > { %8011 = vmatmul.mubr.msk.f32.gmra.mrb[34].mxu1 %vm1355_vm3, %v12241_v4 }
 0x1df   : > { %8013 = vmatprep.mubr.msk.f32.mxu1 %vm1355_vm3, %v12242_v31 }
 0x1e2   : > { %8014 = vmatmul.mubr.msk.f32.gmra.mrb[36].mxu1 %vm1355_vm3, %v12243_v29 }
 0x1e3   : > { %8016 = vmatprep.mubr.msk.f32.mxu1 %vm1355_vm3, %v12244_v60 }
 0x1e6   : > { %8017 = vmatmul.mubr.msk.f32.gmra.mrb[38].mxu1 %vm1355_vm3, %v12245_v22 }
 0x1e7   : > { %8019 = vmatprep.mubr.msk.f32.mxu1 %vm1355_vm3, %v12246_v20  ;;  %v12253_v20 = vld [vmem:[#allocation28_spill] sm:$0xff] }
 0x1ea   : > { %8020 = vmatmul.mubr.msk.f32.gmra.mrb[40].mxu1 %vm1355_vm3, %v12247_v44 }
 0x1eb   : > { %8022 = vmatprep.mubr.msk.f32.mxu1 %vm1355_vm3, %v12248_v32 }
 0x1ee   : > { %8023 = vmatmul.mubr.msk.f32.gmra.mrb[42].mxu1 %vm1355_vm3, %v12249_v25 }
 0x1ef   : > { %8025 = vmatprep.mubr.msk.f32.mxu1 %vm1355_vm3, %v12250_v30 }
 0x1f2   : > { %8026 = vmatmul.mubr.msk.f32.gmra.mrb[44].mxu1 %vm1355_vm3, %v12251_v35 }
 0x1f3   : > { %8028 = vmatprep.mubr.msk.f32.mxu1 %vm1355_vm3, %v12252_v6 }
 0x1f6   : > { %8029 = vmatmul.mubr.msk.f32.gmra.mrb[46].mxu1 %vm1355_vm3, %v9945_v61 }
 0x1f7   : > { %8031 = vmatprep.mubr.msk.f32.mxu1 %vm1355_vm3, %v12253_v20  ;;  %v3879_v20 = vld [vmem:[%s12083_s1 + $0x90] sm:$0xff] }
 0x1fa   : > { %8032 = vmatmul.mubr.msk.f32.gmra.mrb[48].mxu1 %vm1355_vm3, %v9961_v17 }
 0x1fb   : > { %8034 = vmatprep.mubr.msk.f32.mxu1 %vm1355_vm3, %v9916_v0  ;;  %v3880_v0 = vld [vmem:[%s12083_s1 + $0x98] sm:$0xff] }
 0x1fc   : > { %v8603_v17 = vpack.c.bf16 %v3880_v0, %v3879_v20  ;;  %v2511_v0 = vrot.slane %v9301_v10, 4  ;;  %v2512_v20 = vrot.slane %v9295_v1, 4  ;;  %v3881_v10 = vld [vmem:[%s12083_s1 + $0xa0] sm:$0xff] }
 0x1fe   : > { %8035 = vmatmul.mubr.msk.f32.gmra.mrb[50].mxu1 %vm1355_vm3, %v9977_v43  ;;  %8604 = vmatprep.subr.bf16.mxu0 %v8603_v17 }
 0x1ff   : > { %8037 = vmatprep.mubr.msk.f32.mxu1 %vm1355_vm3, %v9939_v42  ;;  %8606 = vmatpush3.bf16.msra.mxu0 %v8603_v17  ;;  %v12143_v17 = vrot.slane %v9280_v49, 4  ;;  %v2514_v49 = vrot.slane %v9313_v23, 4 }
 0x202   : > { %8038 = vmatmul.mubr.msk.f32.gmra.mrb[52].mxu1 %vm1355_vm3, %v9998_v19 }
 0x203   : > { %8040 = vmatprep.mubr.msk.f32.mxu1 %vm1355_vm3, %v9955_v52 }
 0x206   : > { %8041 = vmatmul.mubr.msk.f32.gmra.mrb[54].mxu1 %vm1355_vm3, %v10017_v41 }
 0x207   : > { %8043 = vmatprep.mubr.msk.f32.mxu1 %vm1355_vm3, %v9987_v62 }
 0x20a   : > { %8044 = vmatmul.mubr.msk.f32.gmra.mrb[56].mxu1 %vm1355_vm3, %v10022_v8 }
 0x20b   : > { %8046 = vmatprep.mubr.msk.f32.mxu1 %vm1355_vm3, %v10008_v7 }
 0x20e   : > { %8047 = vmatmul.mubr.msk.f32.gmra.mrb[58].mxu1 %vm1355_vm3, %v10053_v40 }
 0x20f   : > { %8049 = vmatprep.mubr.msk.f32.mxu1 %vm1355_vm3, %v10044_v28  ;;  %v2637_v28 = vsel %vm2574_vm4, %v12143_v17, %v2511_v0  ;;  %v2515_v17 = vrot.slane %v9351_v58, 4 }
 0x211   : > { %v2633_v23 = vsel %vm2574_vm4, %v2514_v49, %v2515_v17 }
 0x212   : > { %8050 = vmatmul.mubr.msk.f32.gmra.mrb[60].mxu1 %vm1355_vm3, %v10065_v63  ;;  %v2513_v63 = vrot.slane %v9324_v36, 4 }
 0x213   : > { %8052 = vmatprep.mubr.msk.f32.mxu1 %vm1355_vm3, %v10062_v12  ;;  %v3882_v12 = vld [vmem:[%s12083_s1 + $0xa8] sm:$0xff] }
 0x214   : > { %v8607_v1 = vpack.c.bf16 %v3882_v12, %v3881_v10  ;;  %v2635_v36 = vsel %vm2574_vm4, %v2512_v20, %v2513_v63  ;;  %v2516_v12 = vrot.slane %v9332_v45, 4  ;;  %v2519_v45 = vrot.slane %v9405_v48, 4 }
 0x215   : > { %v2522_v48 = vrot.slane %v9412_v55, 4  ;;  %v2525_v55 = vrot.slane %v9514_v56, 4  ;;  %v2528_v56 = vrot.slane %v9485_v9, 4  ;;  %v2531_v9 = vrot.slane %v9573_v13, 4 }
 0x216   : > { %8053 = vmatmul.mubr.msk.f32.gmra.mrb[62].mxu1 %vm1355_vm3, %v10078_v59  ;;  %v2636_v59 = vsel %vm2574_vm4, %v2511_v0, %v2512_v20  ;;  %8608 = vmatprep.subr.bf16.mxu0 %v8607_v1  ;;  %v2632_v58 = vsel %vm2574_vm4, %v2515_v17, %v2516_v12  ;;  %v2518_v0 = vrot.slane %v9359_v2, 4  ;;  %v2521_v2 = vrot.slane %v9447_v33, 4 }
 0x217   : > { %8063 = vmatprep.mubr.msk.f32.mxu1 %vm1355_vm3, %v2637_v28  ;;  %8610 = vmatpush3.bf16.msra.mxu0 %v8607_v1  ;;  %v2634_v28 = vsel %vm2574_vm4, %v2513_v63, %v2514_v49  ;;  %v2524_v33 = vrot.slane %v9434_v15, 4  ;;  %v2527_v15 = vrot.slane %v9532_v16, 4  ;;  %v2530_v16 = vrot.slane %v9508_v50, 4 }
 0x218   : > { %v2629_v17 = vsel %vm2574_vm4, %v2518_v0, %v2519_v45  ;;  %v2626_v1 = vsel %vm2574_vm4, %v2521_v2, %v2522_v48  ;;  %v2533_v50 = vrot.slane %v9599_v46, 4  ;;  %v2534_v13 = vrot.slane %v12230_v38, 4 }
 0x219   : > { %v2536_v46 = vrot.slane %v12232_v14, 4  ;;  %v2537_v38 = vrot.slane %v12233_v39, 4  ;;  %v2539_v14 = vrot.slane %v12235_v11, 4  ;;  %v2540_v39 = vrot.slane %v12236_v21, 4 }
 0x21a   : > { %8064 = vmatmul.mubr.msk.f32.vlgmr.msra.gmra.mrb[0].mxu1 %vm1355_vm3, %v2636_v59  ;;  %v2517_v59 = vrot.slane %v9398_v37, 4  ;;  %v2520_v37 = vrot.slane %v9383_v27, 4  ;;  %v2523_v27 = vrot.slane %v9470_v34, 4  ;;  %v2526_v34 = vrot.slane %v9459_v47, 4 }
 0x21b   : > { %8066 = vmatprep.mubr.msk.f32.mxu1 %vm1355_vm3, %v2635_v36  ;;  %v2529_v47 = vrot.slane %v9551_v54, 4  ;;  %v2532_v54 = vrot.slane %v9524_v5, 4  ;;  %v2535_v5 = vrot.slane %v12231_v51, 4  ;;  %v2538_v51 = vrot.slane %v12234_v57, 4 }
 0x21c   : > { %v2631_v63 = vsel %vm2574_vm4, %v2516_v12, %v2517_v59  ;;  %v2630_v49 = vsel %vm2574_vm4, %v2517_v59, %v2518_v0  ;;  %v2628_v20 = vsel %vm2574_vm4, %v2519_v45, %v2520_v37  ;;  %v2627_v10 = vsel %vm2574_vm4, %v2520_v37, %v2521_v2 }
 0x21d   : > { %v2625_v36 = vsel %vm2574_vm4, %v2522_v48, %v2523_v27  ;;  %v2623_v12 = vsel %vm2574_vm4, %v2524_v33, %v2525_v55  ;;  %v2621_v59 = vsel %vm2574_vm4, %v2526_v34, %v2527_v15  ;;  %v2619_v0 = vsel %vm2574_vm4, %v2528_v56, %v2529_v47 }
 0x21e   : > { %8067 = vmatmul.mubr.msk.f32.gmra.mrb[2].mxu1 %vm1355_vm3, %v2634_v28  ;;  %v2624_v28 = vsel %vm2574_vm4, %v2523_v27, %v2524_v33  ;;  %v2617_v45 = vsel %vm2574_vm4, %v2530_v16, %v2531_v9  ;;  %v2615_v37 = vsel %vm2574_vm4, %v2532_v54, %v2533_v50  ;;  %v2613_v2 = vsel %vm2574_vm4, %v2534_v13, %v2535_v5 }
 0x21f   : > { %8069 = vmatprep.mubr.msk.f32.mxu1 %vm1355_vm3, %v2633_v23  ;;  %v2622_v23 = vsel %vm2574_vm4, %v2525_v55, %v2526_v34  ;;  %v2611_v48 = vsel %vm2574_vm4, %v2536_v46, %v2537_v38  ;;  %v2609_v27 = vsel %vm2574_vm4, %v2538_v51, %v2539_v14  ;;  %v2541_v57 = vrot.slane %v12237_v26, 4 }
 0x220   : > { %v2542_v11 = vrot.slane %v12238_v53, 4  ;;  %v2543_v21 = vrot.slane %v12239_v3, 4  ;;  %v2544_v26 = vrot.slane %v12240_v18, 4  ;;  %v2545_v53 = vrot.slane %v12241_v4, 4 }
 0x221   : > { %v2607_v33 = vsel %vm2574_vm4, %v2540_v39, %v2541_v57  ;;  %v2546_v3 = vrot.slane %v12242_v31, 4  ;;  %v2547_v18 = vrot.slane %v12243_v29, 4  ;;  %v2548_v4 = vrot.slane %v12244_v60, 4  ;;  %v12254_v29 = vld [vmem:[#allocation20_spill] sm:$0xff] }
 0x222   : > { %8070 = vmatmul.mubr.msk.f32.gmra.mrb[4].mxu1 %vm1355_vm3, %v2632_v58  ;;  %v2620_v58 = vsel %vm2574_vm4, %v2527_v15, %v2528_v56  ;;  %v2605_v55 = vsel %vm2574_vm4, %v2542_v11, %v2543_v21  ;;  %v2603_v34 = vsel %vm2574_vm4, %v2544_v26, %v2545_v53  ;;  %v2549_v31 = vrot.slane %v12245_v22, 4 }
 0x223   : > { %8072 = vmatprep.mubr.msk.f32.mxu1 %vm1355_vm3, %v2631_v63  ;;  %v2618_v63 = vsel %vm2574_vm4, %v2529_v47, %v2530_v16  ;;  %v2601_v15 = vsel %vm2574_vm4, %v2546_v3, %v2547_v18  ;;  %v2550_v56 = vrot.slane %v12254_v29, 4  ;;  %v2551_v60 = vrot.slane %v12247_v44, 4  ;;  %v10520_v29 = vld [vmem:[%s12083_s1 + $0xd3] ss:$0 sm:$0xff] }
 0x224   : > { %v2552_v22 = vrot.slane %v12248_v32, 4  ;;  %v2553_v16 = vrot.slane %v12249_v25, 4  ;;  %v2554_v44 = vrot.slane %v12250_v30, 4  ;;  %v2555_v32 = vrot.slane %v12251_v35, 4  ;;  %v12255_v35 = vld [vmem:[#allocation28_spill] sm:$0xff] }
 0x225   : > { %v2598_v47 = vsel %vm2574_vm4, %v2549_v31, %v2550_v56  ;;  %v2556_v25 = vrot.slane %v12252_v6, 4  ;;  %v2557_v30 = vrot.slane %v9945_v61, 4  ;;  %v12256_v6 = vld [vmem:[#allocation31_spill] sm:$0xff]  ;;  %v12257_v61 = vld [vmem:[#allocation30_spill] sm:$0xff] }
 0x226   : > { %8073 = vmatmul.mubr.msk.f32.gmra.mrb[6].mxu1 %vm1355_vm3, %v2630_v49  ;;  %v2616_v49 = vsel %vm2574_vm4, %v2531_v9, %v2532_v54  ;;  %v2595_v9 = vsel %vm2574_vm4, %v2552_v22, %v2553_v16  ;;  %v2593_v54 = vsel %vm2574_vm4, %v2554_v44, %v2555_v32 }
 0x227   : > { %8075 = vmatprep.mubr.msk.f32.mxu1 %vm1355_vm3, %v2629_v17  ;;  %v2614_v17 = vsel %vm2574_vm4, %v2533_v50, %v2534_v13  ;;  %v2558_v50 = vrot.slane %v12255_v35, 4  ;;  %v2559_v13 = vrot.slane %v12256_v6, 4 }
 0x22a   : > { %8076 = vmatmul.mubr.msk.f32.gmra.mrb[8].mxu1 %vm1355_vm3, %v2628_v20  ;;  %v2612_v20 = vsel %vm2574_vm4, %v2535_v5, %v2536_v46  ;;  %v2560_v5 = vrot.slane %v12257_v61, 4  ;;  %v2561_v46 = vrot.slane %v9977_v43, 4  ;;  %v2564_v43 = vrot.slane %v9955_v52, 4 }
 0x22b   : > { %8078 = vmatprep.mubr.msk.f32.mxu1 %vm1355_vm3, %v2627_v10  ;;  %v2610_v10 = vsel %vm2574_vm4, %v2537_v38, %v2538_v51  ;;  %v2562_v38 = vrot.slane %v9939_v42, 4  ;;  %v2563_v51 = vrot.slane %v9998_v19, 4  ;;  %v2565_v42 = vrot.slane %v10017_v41, 4 }
 0x22c   : > { %v2566_v19 = vrot.slane %v9987_v62, 4  ;;  %v2567_v52 = vrot.slane %v10022_v8, 4  ;;  %v2568_v41 = vrot.slane %v10008_v7, 4  ;;  %v2569_v62 = vrot.slane %v10053_v40, 4  ;;  %v12258_v8 = vld [vmem:[#allocation32_spill] sm:$0xff]  ;;  %v12259_v7 = vld [vmem:[#allocation34_spill] sm:$0xff] }
 0x22d   : > { %v12260_v40 = vld [vmem:[#allocation33_spill] sm:$0xff] }
 0x22e   : > { %8079 = vmatmul.mubr.msk.f32.gmra.mrb[10].mxu1 %vm1355_vm3, %v2626_v1  ;;  %v2608_v1 = vsel %vm2574_vm4, %v2539_v14, %v2540_v39  ;;  %v2585_v14 = vsel %vm2574_vm4, %v2562_v38, %v2563_v51  ;;  %v2583_v39 = vsel %vm2574_vm4, %v2564_v43, %v2565_v42 }
 0x22f   : > { %8081 = vmatprep.mubr.msk.f32.mxu1 %vm1355_vm3, %v2625_v36  ;;  %v2606_v36 = vsel %vm2574_vm4, %v2541_v57, %v2542_v11  ;;  %v2581_v57 = vsel %vm2574_vm4, %v2566_v19, %v2567_v52  ;;  %v2570_v11 = vrot.slane %v12258_v8, 4 }
 0x232   : > { %8082 = vmatmul.mubr.msk.f32.gmra.mrb[12].mxu1 %vm1355_vm3, %v2624_v28  ;;  %v2604_v28 = vsel %vm2574_vm4, %v2543_v21, %v2544_v26  ;;  %v2571_v21 = vrot.slane %v12259_v7, 4  ;;  %v2572_v26 = vrot.slane %v12260_v40, 4 }
 0x233   : > { %8084 = vmatprep.mubr.msk.f32.mxu1 %vm1355_vm3, %v2623_v12  ;;  %v2602_v12 = vsel %vm2574_vm4, %v2545_v53, %v2546_v3  ;;  %v12261_v53 = vld [vmem:[#allocation35_spill] sm:$0xff] }
 0x234   : > { %v3747_v3 = vld [vmem:[%s12083_s1 + $0x70] sm:$0xff] }
 0x236   : > { %8085 = vmatmul.mubr.msk.f32.gmra.mrb[14].mxu1 %vm1355_vm3, %v2622_v23  ;;  %v2600_v23 = vsel %vm2574_vm4, %v2547_v18, %v2548_v4 }
 0x237   : > { %8087 = vmatprep.mubr.msk.f32.mxu1 %vm1355_vm3, %v2621_v59  ;;  %v2599_v59 = vsel %vm2574_vm4, %v2548_v4, %v2549_v31 }
 0x23a   : > { %8088 = vmatmul.mubr.msk.f32.gmra.mrb[16].mxu1 %vm1355_vm3, %v2620_v58  ;;  %v2597_v58 = vsel %vm2574_vm4, %v2550_v56, %v2551_v60 }
 0x23b   : > { %8090 = vmatprep.mubr.msk.f32.mxu1 %vm1355_vm3, %v2619_v0  ;;  %v2596_v0 = vsel %vm2574_vm4, %v2551_v60, %v2552_v22 }
 0x23e   : > { %8091 = vmatmul.mubr.msk.f32.gmra.mrb[18].mxu1 %vm1355_vm3, %v2618_v63  ;;  %v2594_v63 = vsel %vm2574_vm4, %v2553_v16, %v2554_v44  ;;  %v10532_v16 = vld [vmem:[%s12083_s1 + $0xd5] ss:$0 sm:$0xff] }
 0x23f   : > { %8093 = vmatprep.mubr.msk.f32.mxu1 %vm1355_vm3, %v2617_v45  ;;  %v2592_v45 = vsel %vm2574_vm4, %v2555_v32, %v2556_v25 }
 0x242   : > { %8094 = vmatmul.mubr.msk.f32.gmra.mrb[20].mxu1 %vm1355_vm3, %v2616_v49  ;;  %v2591_v49 = vsel %vm2574_vm4, %v2556_v25, %v2557_v30 }
 0x243   : > { %8096 = vmatprep.mubr.msk.f32.mxu1 %vm1355_vm3, %v2615_v37  ;;  %v2590_v37 = vsel %vm2574_vm4, %v2557_v30, %v2558_v50 }
 0x246   : > { %8097 = vmatmul.mubr.msk.f32.gmra.mrb[22].mxu1 %vm1355_vm3, %v2614_v17  ;;  %v2589_v17 = vsel %vm2574_vm4, %v2558_v50, %v2559_v13 }
 0x247   : > { %8099 = vmatprep.mubr.msk.f32.mxu1 %vm1355_vm3, %v2613_v2  ;;  %v2588_v2 = vsel %vm2574_vm4, %v2559_v13, %v2560_v5 }
 0x24a   : > { %8100 = vmatmul.mubr.msk.f32.gmra.mrb[24].mxu1 %vm1355_vm3, %v2612_v20  ;;  %v2587_v20 = vsel %vm2574_vm4, %v2560_v5, %v2561_v46 }
 0x24b   : > { %8102 = vmatprep.mubr.msk.f32.mxu1 %vm1355_vm3, %v2611_v48  ;;  %v2586_v48 = vsel %vm2574_vm4, %v2561_v46, %v2562_v38 }
 0x24e   : > { %8103 = vmatmul.mubr.msk.f32.gmra.mrb[26].mxu1 %vm1355_vm3, %v2610_v10  ;;  %v2584_v10 = vsel %vm2574_vm4, %v2563_v51, %v2564_v43 }
 0x24f   : > { %8105 = vmatprep.mubr.msk.f32.mxu1 %vm1355_vm3, %v2609_v27  ;;  %v2582_v27 = vsel %vm2574_vm4, %v2565_v42, %v2566_v19  ;;  %v3750_v42 = vld [vmem:[%s12083_s1 + $0x88] sm:$0xff] }
 0x252   : > { %8106 = vmatmul.mubr.msk.f32.gmra.mrb[28].mxu1 %vm1355_vm3, %v2608_v1  ;;  %v2580_v1 = vsel %vm2574_vm4, %v2567_v52, %v2568_v41 }
 0x253   : > { %8108 = vmatprep.mubr.msk.f32.mxu1 %vm1355_vm3, %v2607_v33  ;;  %v2579_v33 = vsel %vm2574_vm4, %v2568_v41, %v2569_v62 }
 0x256   : > { %8109 = vmatmul.mubr.msk.f32.gmra.mrb[30].mxu1 %vm1355_vm3, %v2606_v36  ;;  %v2578_v36 = vsel %vm2574_vm4, %v2569_v62, %v2570_v11 }
 0x257   : > { %8111 = vmatprep.mubr.msk.f32.mxu1 %vm1355_vm3, %v2605_v55  ;;  %v2577_v55 = vsel %vm2574_vm4, %v2570_v11, %v2571_v21 }
 0x25a   : > { %8112 = vmatmul.mubr.msk.f32.gmra.mrb[32].mxu1 %vm1355_vm3, %v2604_v28  ;;  %v2573_v28 = vrot.slane %v12261_v53, 4 }
 0x25b   : > { %8114 = vmatprep.mubr.msk.f32.mxu1 %vm1355_vm3, %v2603_v34  ;;  %v3748_v34 = vld [vmem:[%s12083_s1 + $0x78] sm:$0xff] }
 0x25c   : > { %v10503_v18 = vpack.c.bf16 %v3748_v34, %v3747_v3  ;;  %v2575_v4 = vsel %vm2574_vm4, %v2572_v26, %v2573_v28 }
 0x25e   : > { %8115 = vmatmul.mubr.msk.f32.gmra.mrb[34].mxu1 %vm1355_vm3, %v2602_v12  ;;  %v2576_v12 = vsel %vm2574_vm4, %v2571_v21, %v2572_v26  ;;  %8612 = vmatprep.subr.bf16.mxu0 %v10503_v18 }
 0x25f   : > { %8117 = vmatprep.mubr.msk.f32.mxu1 %vm1355_vm3, %v2601_v15  ;;  %v12262_v15 = vld [vmem:[#allocation5_spill] sm:$0xff] }
 0x260   : > { %v12263_v31 = vrot.slane %v12262_v15, 4 }
 0x262   : > { %8118 = vmatmul.mubr.msk.f32.gmra.mrb[36].mxu1 %vm1355_vm3, %v2600_v23  ;;  %v2638_v23 = vsel %vm2574_vm4, %v2573_v28, %v12263_v31 }
 0x263   : > { %8120 = vmatprep.mubr.msk.f32.mxu1 %vm1355_vm3, %v2599_v59 }
 0x266   : > { %8121 = vmatmul.mubr.msk.f32.gmra.mrb[38].mxu1 %vm1355_vm3, %v2598_v47  ;;  %v10526_v47 = vld [vmem:[%s12083_s1 + $0xd4] ss:$0 sm:$0xff] }
 0x267   : > { %8123 = vmatprep.mubr.msk.f32.mxu1 %vm1355_vm3, %v2597_v58 }
 0x26a   : > { %8124 = vmatmul.mubr.msk.f32.gmra.mrb[40].mxu1 %vm1355_vm3, %v2596_v0 }
 0x26b   : > { %8126 = vmatprep.mubr.msk.f32.mxu1 %vm1355_vm3, %v2595_v9 }
 0x26e   : > { %8127 = vmatmul.mubr.msk.f32.gmra.mrb[42].mxu1 %vm1355_vm3, %v2594_v63 }
 0x26f   : > { %8129 = vmatprep.mubr.msk.f32.mxu1 %vm1355_vm3, %v2593_v54 }
 0x272   : > { %8130 = vmatmul.mubr.msk.f32.gmra.mrb[44].mxu1 %vm1355_vm3, %v2592_v45 }
 0x273   : > { %8132 = vmatprep.mubr.msk.f32.mxu1 %vm1355_vm3, %v2591_v49 }
 0x276   : > { %8133 = vmatmul.mubr.msk.f32.gmra.mrb[46].mxu1 %vm1355_vm3, %v2590_v37 }
 0x277   : > { %8135 = vmatprep.mubr.msk.f32.mxu1 %vm1355_vm3, %v2589_v17 }
 0x27a   : > { %8136 = vmatmul.mubr.msk.f32.gmra.mrb[48].mxu1 %vm1355_vm3, %v2588_v2 }
 0x27b   : > { %8138 = vmatprep.mubr.msk.f32.mxu1 %vm1355_vm3, %v2587_v20 }
 0x27e   : > { %8139 = vmatmul.mubr.msk.f32.gmra.mrb[50].mxu1 %vm1355_vm3, %v2586_v48 }
 0x27f   : > { %8141 = vmatprep.mubr.msk.f32.mxu1 %vm1355_vm3, %v2585_v14  ;;  %v3749_v14 = vld [vmem:[%s12083_s1 + $0x80] sm:$0xff] }
 0x280   : > { %v10567_v11 = vpack.c.bf16 %v3750_v42, %v3749_v14 }
 0x282   : > { %8142 = vmatmul.mubr.msk.f32.gmra.mrb[52].mxu1 %vm1355_vm3, %v2584_v10 }
 0x283   : > { %8144 = vmatprep.mubr.msk.f32.mxu1 %vm1355_vm3, %v2583_v39 }
 0x286   : > { %8145 = vmatmul.mubr.msk.f32.gmra.mrb[54].mxu1 %vm1355_vm3, %v2582_v27 }
 0x287   : > { %8147 = vmatprep.mubr.msk.f32.mxu1 %vm1355_vm3, %v2581_v57 }
 0x28a   : > { %8148 = vmatmul.mubr.msk.f32.gmra.mrb[56].mxu1 %vm1355_vm3, %v2580_v1 }
 0x28b   : > { %8150 = vmatprep.mubr.msk.f32.mxu1 %vm1355_vm3, %v2579_v33 }
 0x28e   : > { %8151 = vmatmul.mubr.msk.f32.gmra.mrb[58].mxu1 %vm1355_vm3, %v2578_v36 }
 0x28f   : > { %8153 = vmatprep.mubr.msk.f32.mxu1 %vm1355_vm3, %v2577_v55 }
 0x292   : > { %8154 = vmatmul.mubr.msk.f32.gmra.mrb[60].mxu1 %vm1355_vm3, %v2576_v12 }
 0x293   : > { %8156 = vmatprep.mubr.msk.f32.mxu1 %vm1355_vm3, %v2575_v4 }
 0x296   : > { %8157 = vmatmul.mubr.msk.f32.gmra.mrb[62].mxu1 %vm1355_vm3, %v2638_v23 }
 0x2ed   : > { %v8065_v56 = vpop.f32.mrb[0].mxu1 }
 0x2ee   : > { %v3290_v59 = vadd.f32 %v8065_v56, %v10520_v29  ;;  %v2901_v60 = vpop.f32.mrb[1].mxu1 }
 0x2ef   : > { %v3289_v22 = vadd.f32 %v10520_v29, %v2901_v60 }
 0x2f0   : > { %v3354_v58 = vmax.f32 %v3290_v59, 0.0 }
 0x2f1   : > { %v3353_v0 = vmax.f32 %v3289_v22, 0.0  ;;  %v8068_v44 = vpop.f32.mrb[2].mxu1 }
 0x2f2   : > { %v3423_v9 = vmul.f32 %v10526_v47, %v3354_v58  ;;  %v3292_v32 = vadd.f32 %v8068_v44, %v10520_v29  ;;  %v2911_v63 = vpop.f32.mrb[3].mxu1 }
 0x2f3   : > { %v3422_v25 = vmul.f32 %v10526_v47, %v3353_v0  ;;  %v3291_v54 = vadd.f32 %v10520_v29, %v2911_v63 }
 0x2f4   : > { %v3492_v30 = vadd.f32 %v10532_v16, %v3423_v9  ;;  %v3356_v45 = vmax.f32 %v3292_v32, 0.0 }
 0x2f5   : > { %v10540_v35 = vadd.f32 %v10532_v16, %v3422_v25  ;;  %v3355_v50 = vmax.f32 %v3291_v54, 0.0  ;;  %v8071_v49 = vpop.f32.mrb[4].mxu1 }
 0x2f6   : > { %v3556_v6 = vrot.slane %v3492_v30, 2  ;;  %v3425_v13 = vmul.f32 %v10526_v47, %v3356_v45  ;;  %v3294_v37 = vadd.f32 %v8071_v49, %v10520_v29  ;;  %v2921_v61 = vpop.f32.mrb[5].mxu1 }
 0x2f7   : > { %v12145_v5 = vrot.slane %v10540_v35, 2  ;;  %v3424_v17 = vmul.f32 %v10526_v47, %v3355_v50  ;;  %v3293_v46 = vadd.f32 %v10520_v29, %v2921_v61 }
 0x2f8   : > { %v3494_v2 = vadd.f32 %v10532_v16, %v3425_v13  ;;  %v3358_v38 = vmax.f32 %v3294_v37, 0.0 }
 0x2f9   : > { %v3681_v20 = vsel %vm1286_vm2, %v12145_v5, %v3556_v6  ;;  %v3493_v51 = vadd.f32 %v10532_v16, %v3424_v17  ;;  %v3357_v48 = vmax.f32 %v3293_v46, 0.0  ;;  %v8074_v43 = vpop.f32.mrb[6].mxu1 }
 0x2fa   : > { %v10560_v10 = vmax.f32 %v10540_v35, %v3681_v20  ;;  %v3558_v19 = vrot.slane %v3494_v2, 2  ;;  %v3427_v39 = vmul.f32 %v10526_v47, %v3358_v38  ;;  %v3296_v52 = vadd.f32 %v8074_v43, %v10520_v29  ;;  %v2931_v27 = vpop.f32.mrb[7].mxu1 }
 0x2fb   : > { %v3557_v41 = vrot.slane %v3493_v51, 2  ;;  %v3426_v57 = vmul.f32 %v10526_v47, %v3357_v48  ;;  %v3295_v62 = vadd.f32 %v10520_v29, %v2931_v27 }
 0x2fc   : > { %12264 = vst [vmem:[#allocation6_spill] sm:$0xff] %v10560_v10  ;;  %v3496_v1 = vadd.f32 %v10532_v16, %v3427_v39  ;;  %v3360_v8 = vmax.f32 %v3296_v52, 0.0  ;;  %v12144_v59 = vrot.slane %v10560_v10, 4 }
 0x2fd   : > { %v3679_v33 = vsel %vm1286_vm2, %v3557_v41, %v3558_v19  ;;  %v3680_v7 = vsel %vm1286_vm2, %v3556_v6, %v3557_v41  ;;  %v3495_v21 = vadd.f32 %v10532_v16, %v3426_v57  ;;  %v3359_v36 = vmax.f32 %v3295_v62, 0.0  ;;  %v8077_v40 = vpop.f32.mrb[8].mxu1 }
 0x2fe   : > { %v10574_v26 = vmax.f32 %v3493_v51, %v3679_v33  ;;  %v3560_v55 = vrot.slane %v3496_v1, 2  ;;  %v3429_v53 = vmul.f32 %v10526_v47, %v3360_v8  ;;  %v3298_v28 = vadd.f32 %v8077_v40, %v10520_v29  ;;  %v2941_v3 = vpop.f32.mrb[9].mxu1 }
 0x2ff   : > { %v3559_v34 = vrot.slane %v3495_v21, 2  ;;  %v3428_v12 = vmul.f32 %v10526_v47, %v3359_v36  ;;  %v3297_v4 = vadd.f32 %v10520_v29, %v2941_v3  ;;  %v10580_v15 = vmax.f32 %v3492_v30, %v3680_v7 }
 0x300   : > { %v3753_v31 = vrot.slane %v10574_v26, 4  ;;  %v10584_v23 = vadd.f32 %v10532_v16, %v3429_v53  ;;  %v3362_v56 = vmax.f32 %v3298_v28, 0.0 }
 0x301   : > { %v3677_v60 = vsel %vm1286_vm2, %v3559_v34, %v3560_v55  ;;  %v3678_v22 = vsel %vm1286_vm2, %v3558_v19, %v3559_v34  ;;  %v3497_v58 = vadd.f32 %v10532_v16, %v3428_v12  ;;  %v3361_v0 = vmax.f32 %v3297_v4, 0.0  ;;  %v8080_v44 = vpop.f32.mrb[10].mxu1 }
 0x302   : > { %v10592_v9 = vmax.f32 %v3495_v21, %v3677_v60  ;;  %v3562_v32 = vrot.slane %v10584_v23, 2  ;;  %v3431_v63 = vmul.f32 %v10526_v47, %v3362_v56  ;;  %v3300_v25 = vadd.f32 %v8080_v44, %v10520_v29  ;;  %v2951_v54 = vpop.f32.mrb[11].mxu1 }
 0x303   : > { %v3561_v30 = vrot.slane %v3497_v58, 2  ;;  %v3430_v45 = vmul.f32 %v10526_v47, %v3361_v0  ;;  %v3299_v50 = vadd.f32 %v10520_v29, %v2951_v54  ;;  %v3752_v49 = vrot.slane %v10580_v15, 4 }
 0x304   : > { %v10601_v6 = vadd.f32 %v10532_v16, %v3431_v63  ;;  %v3364_v13 = vmax.f32 %v3300_v25, 0.0  ;;  %v10603_v37 = vmax.f32 %v3494_v2, %v3678_v22  ;;  %v3755_v61 = vrot.slane %v10592_v9, 4 }
 0x305   : > { %v3675_v17 = vsel %vm1286_vm2, %v3561_v30, %v3562_v32  ;;  %v3676_v46 = vsel %vm1286_vm2, %v3560_v55, %v3561_v30  ;;  %v3499_v38 = vadd.f32 %v10532_v16, %v3430_v45  ;;  %v3363_v20 = vmax.f32 %v3299_v50, 0.0  ;;  %v8083_v51 = vpop.f32.mrb[12].mxu1 }
 0x306   : > { %v10611_v48 = vmax.f32 %v3497_v58, %v3675_v17  ;;  %v3564_v43 = vrot.slane %v10601_v6, 2  ;;  %v3433_v14 = vmul.f32 %v10526_v47, %v3364_v13  ;;  %v3877_v2 = vsel %vm2574_vm4, %v12144_v59, %v3752_v49  ;;  %v2961_v42 = vpop.f32.mrb[13].mxu1 }
 0x307   : > { %v3563_v19 = vrot.slane %v3499_v38, 2  ;;  %v3432_v39 = vmul.f32 %v10526_v47, %v3363_v20  ;;  %8167 = vmatprep.mubr.msk.f32.mxu0 %vm1355_vm3, %v3877_v2  ;;  %v3876_v52 = vsel %vm2574_vm4, %v3752_v49, %v3753_v31  ;;  %v3302_v27 = vadd.f32 %v8083_v51, %v10520_v29 }
 0x308   : > { %v10625_v41 = vadd.f32 %v10532_v16, %v3433_v14  ;;  %8168 = vmatmul.mubr.msk.f32.vlgmr.msra.gmra.mrb[64].mxu0 %vm1355_vm3, %v3876_v52  ;;  %v3301_v57 = vadd.f32 %v10520_v29, %v2961_v42  ;;  %v3754_v62 = vrot.slane %v10603_v37, 4  ;;  %v10630_v8 = vmax.f32 %v3496_v1, %v3676_v46 }
 0x309   : > { %v3673_v33 = vsel %vm1286_vm2, %v3563_v19, %v3564_v43  ;;  %v3674_v7 = vsel %vm1286_vm2, %v3562_v32, %v3563_v19  ;;  %v3501_v21 = vadd.f32 %v10532_v16, %v3432_v39  ;;  %8614 = vmatpush3.bf16.msra.mxu0 %v10503_v18  ;;  %v3366_v36 = vmax.f32 %v3302_v27, 0.0  ;;  %v8086_v40 = vpop.f32.mrb[14].mxu1 }
 0x30a   : > { %v10638_v55 = vmax.f32 %v3499_v38, %v3673_v33  ;;  %v3566_v53 = vrot.slane %v10625_v41, 2  ;;  %v3365_v28 = vmax.f32 %v3301_v57, 0.0  ;;  %v3875_v1 = vsel %vm2574_vm4, %v3753_v31, %v3754_v62  ;;  %v2971_v3 = vpop.f32.mrb[15].mxu1  ;;  %8616 = vmatprep.subr.bf16.mxu0 %v10567_v11 }
 0x30b   : > { %v3565_v34 = vrot.slane %v3501_v21, 2  ;;  %v3435_v12 = vmul.f32 %v10526_v47, %v3366_v36  ;;  %8170 = vmatprep.mubr.msk.f32.mxu0 %vm1355_vm3, %v3875_v1  ;;  %v3874_v18 = vsel %vm2574_vm4, %v3754_v62, %v3755_v61  ;;  %v3304_v4 = vadd.f32 %v8086_v40, %v10520_v29 }
 0x30c   : > { %v3434_v56 = vmul.f32 %v10526_v47, %v3365_v28  ;;  %8171 = vmatmul.mubr.msk.f32.gmra.mrb[66].mxu0 %vm1355_vm3, %v3874_v18  ;;  %v3303_v60 = vadd.f32 %v10520_v29, %v2971_v3  ;;  %v3756_v31 = vrot.slane %v10630_v8, 4  ;;  %v3757_v22 = vrot.slane %v10611_v48, 4 }
 0x30d   : > { %v3671_v58 = vsel %vm1286_vm2, %v3565_v34, %v3566_v53  ;;  %v3672_v0 = vsel %vm1286_vm2, %v3564_v43, %v3565_v34  ;;  %v10659_v44 = vadd.f32 %v10532_v16, %v3435_v12  ;;  %v3368_v32 = vmax.f32 %v3304_v4, 0.0  ;;  %v8089_v63 = vpop.f32.mrb[16].mxu1  ;;  %8618 = vmatpush3.bf16.msra.mxu0 %v10567_v11 }
 0x30e   : > { %v10662_v25 = vmax.f32 %v3501_v21, %v3671_v58  ;;  %v3503_v54 = vadd.f32 %v10532_v16, %v3434_v56  ;;  %v3367_v30 = vmax.f32 %v3303_v60, 0.0  ;;  %v3873_v45 = vsel %vm2574_vm4, %v3755_v61, %v3756_v31  ;;  %v2981_v50 = vpop.f32.mrb[17].mxu1 }
 0x30f   : > { %v3568_v49 = vrot.slane %v10659_v44, 2  ;;  %v3437_v13 = vmul.f32 %v10526_v47, %v3368_v32  ;;  %8173 = vmatprep.mubr.msk.f32.mxu0 %vm1355_vm3, %v3873_v45  ;;  %v3872_v17 = vsel %vm2574_vm4, %v3756_v31, %v3757_v22  ;;  %v3306_v11 = vadd.f32 %v8089_v63, %v10520_v29 }
 0x310   : > { %v3567_v46 = vrot.slane %v3503_v54, 2  ;;  %v3436_v38 = vmul.f32 %v10526_v47, %v3367_v30  ;;  %8174 = vmatmul.mubr.msk.f32.gmra.mrb[68].mxu0 %vm1355_vm3, %v3872_v17  ;;  %v3305_v20 = vadd.f32 %v10520_v29, %v2981_v50  ;;  %v10677_v61 = vmax.f32 %v10584_v23, %v3674_v7 }
 0x311   : > { %v10680_v51 = vadd.f32 %v10532_v16, %v3437_v13  ;;  %v3370_v43 = vmax.f32 %v3306_v11, 0.0  ;;  %v3759_v14 = vrot.slane %v10638_v55, 4  ;;  %v8092_v2 = vpop.f32.mrb[18].mxu1  ;;  %v10684_v42 = vmax.f32 %v10601_v6, %v3672_v0 }
 0x312   : > { %v3669_v19 = vsel %vm1286_vm2, %v3567_v46, %v3568_v49  ;;  %v3670_v39 = vsel %vm1286_vm2, %v3566_v53, %v3567_v46  ;;  %v3505_v52 = vadd.f32 %v10532_v16, %v3436_v38  ;;  %v3369_v23 = vmax.f32 %v3305_v20, 0.0  ;;  %v2991_v27 = vpop.f32.mrb[19].mxu1 }
 0x313   : > { %v10691_v57 = vmax.f32 %v3503_v54, %v3669_v19  ;;  %v3570_v62 = vrot.slane %v10680_v51, 2  ;;  %v3439_v33 = vmul.f32 %v10526_v47, %v3370_v43  ;;  %v3758_v7 = vrot.slane %v10677_v61, 4 }
 0x314   : > { %v3569_v6 = vrot.slane %v3505_v52, 2  ;;  %v3438_v21 = vmul.f32 %v10526_v47, %v3369_v23  ;;  %v3308_v36 = vadd.f32 %v8092_v2, %v10520_v29  ;;  %v3307_v40 = vadd.f32 %v10520_v29, %v2991_v27 }
 0x315   : > { %v10700_v53 = vadd.f32 %v10532_v16, %v3439_v33  ;;  %v3871_v28 = vsel %vm2574_vm4, %v3757_v22, %v3758_v7  ;;  %v3870_v1 = vsel %vm2574_vm4, %v3758_v7, %v3759_v14  ;;  %v3760_v3 = vrot.slane %v10684_v42, 4  ;;  %v8095_v34 = vpop.f32.mrb[20].mxu1 }
 0x316   : > { %v3667_v12 = vsel %vm1286_vm2, %v3569_v6, %v3570_v62  ;;  %v3668_v18 = vsel %vm1286_vm2, %v3568_v49, %v3569_v6  ;;  %v3507_v4 = vadd.f32 %v10532_v16, %v3438_v21  ;;  %8176 = vmatprep.mubr.msk.f32.mxu0 %vm1355_vm3, %v3871_v28  ;;  %v3372_v56 = vmax.f32 %v3308_v36, 0.0  ;;  %v3001_v60 = vpop.f32.mrb[21].mxu1 }
 0x317   : > { %v10713_v31 = vmax.f32 %v3505_v52, %v3667_v12  ;;  %v3572_v22 = vrot.slane %v10700_v53, 2  ;;  %8177 = vmatmul.mubr.msk.f32.gmra.mrb[70].mxu0 %vm1355_vm3, %v3870_v1  ;;  %v3371_v58 = vmax.f32 %v3307_v40, 0.0  ;;  %v3869_v0 = vsel %vm2574_vm4, %v3759_v14, %v3760_v3 }
 0x318   : > { %v3571_v32 = vrot.slane %v3507_v4, 2  ;;  %v3441_v63 = vmul.f32 %v10526_v47, %v3372_v56  ;;  %8179 = vmatprep.mubr.msk.f32.mxu0 %vm1355_vm3, %v3869_v0  ;;  %v3761_v54 = vrot.slane %v10662_v25, 4  ;;  %v3310_v30 = vadd.f32 %v8095_v34, %v10520_v29 }
 0x319   : > { %v3440_v45 = vmul.f32 %v10526_v47, %v3371_v58  ;;  %v3309_v50 = vadd.f32 %v10520_v29, %v3001_v60  ;;  %v10726_v49 = vmax.f32 %v10625_v41, %v3670_v39  ;;  %v3763_v13 = vrot.slane %v10691_v57, 4  ;;  %v8098_v17 = vpop.f32.mrb[22].mxu1 }
 0x31a   : > { %v3665_v11 = vsel %vm1286_vm2, %v3571_v32, %v3572_v22  ;;  %v3666_v46 = vsel %vm1286_vm2, %v3570_v62, %v3571_v32  ;;  %v10734_v38 = vadd.f32 %v10532_v16, %v3441_v63  ;;  %v3868_v20 = vsel %vm2574_vm4, %v3760_v3, %v3761_v54  ;;  %v3011_v43 = vpop.f32.mrb[23].mxu1 }
 0x31b   : > { %v10738_v14 = vmax.f32 %v3507_v4, %v3665_v11  ;;  %v3509_v41 = vadd.f32 %v10532_v16, %v3440_v45  ;;  %8180 = vmatmul.mubr.msk.f32.gmra.mrb[72].mxu0 %vm1355_vm3, %v3868_v20  ;;  %v3374_v2 = vmax.f32 %v3310_v30, 0.0  ;;  %v3373_v19 = vmax.f32 %v3309_v50, 0.0 }
 0x31c   : > { %v3574_v39 = vrot.slane %v10734_v38, 2  ;;  %v3762_v52 = vrot.slane %v10726_v49, 4  ;;  %v3312_v23 = vadd.f32 %v8098_v17, %v10520_v29  ;;  %v3311_v27 = vadd.f32 %v10520_v29, %v3011_v43 }
 0x31d   : > { %v3573_v62 = vrot.slane %v3509_v41, 2  ;;  %v3443_v33 = vmul.f32 %v10526_v47, %v3374_v2  ;;  %v3442_v7 = vmul.f32 %v10526_v47, %v3373_v19  ;;  %v10749_v6 = vmax.f32 %v10659_v44, %v3668_v18  ;;  %v8101_v21 = vpop.f32.mrb[24].mxu1 }
 0x31e   : > { %v3867_v36 = vsel %vm2574_vm4, %v3761_v54, %v3762_v52  ;;  %v3866_v40 = vsel %vm2574_vm4, %v3762_v52, %v3763_v13  ;;  %v3376_v28 = vmax.f32 %v3312_v23, 0.0  ;;  %v3375_v1 = vmax.f32 %v3311_v27, 0.0  ;;  %v3021_v3 = vpop.f32.mrb[25].mxu1 }
 0x31f   : > { %v3663_v34 = vsel %vm1286_vm2, %v3573_v62, %v3574_v39  ;;  %v3664_v12 = vsel %vm1286_vm2, %v3572_v22, %v3573_v62  ;;  %v10760_v4 = vadd.f32 %v10532_v16, %v3443_v33  ;;  %v3511_v44 = vadd.f32 %v10532_v16, %v3442_v7  ;;  %8182 = vmatprep.mubr.msk.f32.mxu0 %vm1355_vm3, %v3867_v36 }
 0x320   : > { %v10764_v18 = vmax.f32 %v3509_v41, %v3663_v34  ;;  %8183 = vmatmul.mubr.msk.f32.gmra.mrb[74].mxu0 %vm1355_vm3, %v3866_v40  ;;  %v3445_v56 = vmul.f32 %v10526_v47, %v3376_v28  ;;  %v3444_v60 = vmul.f32 %v10526_v47, %v3375_v1  ;;  %v3764_v58 = vrot.slane %v10749_v6, 4 }
 0x321   : > { %v3576_v0 = vrot.slane %v10760_v4, 2  ;;  %v3575_v22 = vrot.slane %v3511_v44, 2  ;;  %v3765_v32 = vrot.slane %v10713_v31, 4  ;;  %v3314_v63 = vadd.f32 %v8101_v21, %v10520_v29  ;;  %v8104_v54 = vpop.f32.mrb[26].mxu1 }
 0x322   : > { %v10774_v30 = vadd.f32 %v10532_v16, %v3445_v56  ;;  %v3513_v45 = vadd.f32 %v10532_v16, %v3444_v60  ;;  %v3865_v50 = vsel %vm2574_vm4, %v3763_v13, %v3764_v58  ;;  %v3313_v17 = vadd.f32 %v10520_v29, %v3021_v3  ;;  %v3031_v11 = vpop.f32.mrb[27].mxu1 }
 0x323   : > { %v3661_v20 = vsel %vm1286_vm2, %v3575_v22, %v3576_v0  ;;  %v3662_v43 = vsel %vm1286_vm2, %v3574_v39, %v3575_v22  ;;  %8185 = vmatprep.mubr.msk.f32.mxu0 %vm1355_vm3, %v3865_v50  ;;  %v3864_v41 = vsel %vm2574_vm4, %v3764_v58, %v3765_v32  ;;  %v3378_v2 = vmax.f32 %v3314_v63, 0.0 }
 0x324   : > { %v10787_v19 = vmax.f32 %v3511_v44, %v3661_v20  ;;  %v3578_v52 = vrot.slane %v10774_v30, 2  ;;  %v3577_v13 = vrot.slane %v3513_v45, 2  ;;  %8186 = vmatmul.mubr.msk.f32.gmra.mrb[76].mxu0 %vm1355_vm3, %v3864_v41  ;;  %v3377_v23 = vmax.f32 %v3313_v17, 0.0 }
 0x325   : > { %v3447_v27 = vmul.f32 %v10526_v47, %v3378_v2  ;;  %v10793_v62 = vmax.f32 %v10680_v51, %v3666_v46  ;;  %v3767_v39 = vrot.slane %v10738_v14, 4  ;;  %v3316_v33 = vadd.f32 %v8104_v54, %v10520_v29  ;;  %v8107_v7 = vpop.f32.mrb[28].mxu1 }
 0x326   : > { %v3659_v21 = vsel %vm1286_vm2, %v3577_v13, %v3578_v52  ;;  %v3660_v36 = vsel %vm1286_vm2, %v3576_v0, %v3577_v13  ;;  %v3446_v40 = vmul.f32 %v10526_v47, %v3377_v23  ;;  %v3315_v28 = vadd.f32 %v10520_v29, %v3031_v11  ;;  %v3041_v1 = vpop.f32.mrb[29].mxu1 }
 0x327   : > { %v10803_v3 = vmax.f32 %v3513_v45, %v3659_v21  ;;  %v10806_v51 = vadd.f32 %v10532_v16, %v3447_v27  ;;  %v3766_v46 = vrot.slane %v10793_v62, 4  ;;  %v3380_v34 = vmax.f32 %v3316_v33, 0.0 }
 0x328   : > { %v3515_v44 = vadd.f32 %v10532_v16, %v3446_v40  ;;  %v3379_v56 = vmax.f32 %v3315_v28, 0.0  ;;  %v10811_v60 = vmax.f32 %v10700_v53, %v3664_v12  ;;  %v3769_v58 = vrot.slane %v10764_v18, 4 }
 0x329   : > { %v3580_v0 = vrot.slane %v10806_v51, 2  ;;  %v3863_v22 = vsel %vm2574_vm4, %v3765_v32, %v3766_v46  ;;  %v3862_v63 = vsel %vm2574_vm4, %v3766_v46, %v3767_v39  ;;  %v3449_v54 = vmul.f32 %v10526_v47, %v3380_v34  ;;  %v8110_v45 = vpop.f32.mrb[30].mxu1 }
 0x32a   : > { %v3579_v50 = vrot.slane %v3515_v44, 2  ;;  %8188 = vmatprep.mubr.msk.f32.mxu0 %vm1355_vm3, %v3863_v22  ;;  %v3448_v17 = vmul.f32 %v10526_v47, %v3379_v56  ;;  %v3768_v53 = vrot.slane %v10811_v60, 4  ;;  %v3318_v12 = vadd.f32 %v8107_v7, %v10520_v29  ;;  %v3051_v11 = vpop.f32.mrb[31].mxu1 }
 0x32b   : > { %8189 = vmatmul.mubr.msk.f32.gmra.mrb[78].mxu0 %vm1355_vm3, %v3862_v63  ;;  %v10826_v32 = vadd.f32 %v10532_v16, %v3449_v54  ;;  %v3317_v20 = vadd.f32 %v10520_v29, %v3041_v1  ;;  %v10830_v41 = vmax.f32 %v10734_v38, %v3662_v43  ;;  %v3771_v2 = vrot.slane %v10787_v19, 4 }
 0x32c   : > { %v3657_v13 = vsel %vm1286_vm2, %v3579_v50, %v3580_v0  ;;  %v3658_v23 = vsel %vm1286_vm2, %v3578_v52, %v3579_v50  ;;  %v3517_v27 = vadd.f32 %v10532_v16, %v3448_v17  ;;  %v3861_v33 = vsel %vm2574_vm4, %v3767_v39, %v3768_v53 }
 0x32d   : > { %v10840_v7 = vmax.f32 %v3515_v44, %v3657_v13  ;;  %v3582_v21 = vrot.slane %v10826_v32, 2  ;;  %8191 = vmatprep.mubr.msk.f32.mxu0 %vm1355_vm3, %v3861_v33  ;;  %v3860_v38 = vsel %vm2574_vm4, %v3768_v53, %v3769_v58  ;;  %v3382_v43 = vmax.f32 %v3318_v12, 0.0  ;;  %v8113_v40 = vpop.f32.mrb[32].mxu1 }
 0x32e   : > { %v3581_v28 = vrot.slane %v3517_v27, 2  ;;  %v3381_v1 = vmax.f32 %v3317_v20, 0.0  ;;  %v3770_v52 = vrot.slane %v10830_v41, 4  ;;  %v3320_v46 = vadd.f32 %v8110_v45, %v10520_v29  ;;  %v3061_v34 = vpop.f32.mrb[33].mxu1 }
 0x32f   : > { %12265 = vst [vmem:[#allocation9_spill] sm:$0xff] %v10840_v7  ;;  %8192 = vmatmul.mubr.msk.f32.gmra.mrb[80].mxu0 %vm1355_vm3, %v3860_v38  ;;  %v3451_v39 = vmul.f32 %v10526_v47, %v3382_v43  ;;  %v3319_v44 = vadd.f32 %v10520_v29, %v3051_v11  ;;  %v10852_v56 = vmax.f32 %v10760_v4, %v3660_v36  ;;  %v3773_v22 = vrot.slane %v10803_v3, 4 }
 0x330   : > { %v3655_v63 = vsel %vm1286_vm2, %v3581_v28, %v3582_v21  ;;  %v3656_v54 = vsel %vm1286_vm2, %v3580_v0, %v3581_v28  ;;  %v3450_v45 = vmul.f32 %v10526_v47, %v3381_v1  ;;  %v3859_v50 = vsel %vm2574_vm4, %v3769_v58, %v3770_v52 }
 0x331   : > { %v10862_v17 = vmax.f32 %v3517_v27, %v3655_v63  ;;  %v10865_v53 = vadd.f32 %v10532_v16, %v3451_v39  ;;  %8194 = vmatprep.mubr.msk.f32.mxu0 %vm1355_vm3, %v3859_v50  ;;  %v3858_v4 = vsel %vm2574_vm4, %v3770_v52, %v3771_v2  ;;  %v3384_v36 = vmax.f32 %v3320_v46, 0.0  ;;  %v8116_v12 = vpop.f32.mrb[34].mxu1 }
 0x332   : > { %v3519_v11 = vadd.f32 %v10532_v16, %v3450_v45  ;;  %v3383_v0 = vmax.f32 %v3319_v44, 0.0  ;;  %v3772_v20 = vrot.slane %v10852_v56, 4  ;;  %v3322_v13 = vadd.f32 %v8113_v40, %v10520_v29  ;;  %v3071_v58 = vpop.f32.mrb[35].mxu1 }
 0x333   : > { %12266 = vst [vmem:[#allocation7_spill] sm:$0xff] %v10862_v17  ;;  %v3584_v27 = vrot.slane %v10865_v53, 2  ;;  %8195 = vmatmul.mubr.msk.f32.gmra.mrb[82].mxu0 %vm1355_vm3, %v3858_v4  ;;  %v3453_v33 = vmul.f32 %v10526_v47, %v3384_v36  ;;  %v3321_v38 = vadd.f32 %v10520_v29, %v3061_v34  ;;  %v10878_v43 = vmax.f32 %v10774_v30, %v3658_v23 }
 0x334   : > { %v3583_v28 = vrot.slane %v3519_v11, 2  ;;  %v3452_v1 = vmul.f32 %v10526_v47, %v3383_v0  ;;  %v3857_v52 = vsel %vm2574_vm4, %v3771_v2, %v3772_v20  ;;  %v3856_v40 = vsel %vm2574_vm4, %v3772_v20, %v3773_v22 }
 0x335   : > { %v10886_v46 = vadd.f32 %v10532_v16, %v3453_v33  ;;  %8197 = vmatprep.mubr.msk.f32.mxu0 %vm1355_vm3, %v3857_v52  ;;  %v3386_v39 = vmax.f32 %v3322_v13, 0.0  ;;  %v3385_v44 = vmax.f32 %v3321_v38, 0.0  ;;  %v3774_v34 = vrot.slane %v10878_v43, 4  ;;  %v8119_v30 = vpop.f32.mrb[36].mxu1 }
 0x336   : > { %v3653_v23 = vsel %vm1286_vm2, %v3583_v28, %v3584_v27  ;;  %v3654_v63 = vsel %vm1286_vm2, %v3582_v21, %v3583_v28  ;;  %v3521_v2 = vadd.f32 %v10532_v16, %v3452_v1  ;;  %v3775_v45 = vrot.slane %v10840_v7, 4  ;;  %v3081_v50 = vpop.f32.mrb[37].mxu1  ;;  %v12291_v24 = vld [vmem:[#allocation9_spill] sm:$0xff] }
 0x337   : > { %v10896_v4 = vmax.f32 %v3519_v11, %v3653_v23  ;;  %v3586_v36 = vrot.slane %v10886_v46, 2  ;;  %8198 = vmatmul.mubr.msk.f32.gmra.mrb[84].mxu0 %vm1355_vm3, %v3856_v40  ;;  %v3455_v0 = vmul.f32 %v10526_v47, %v3386_v39  ;;  %v3454_v20 = vmul.f32 %v10526_v47, %v3385_v44 }
 0x338   : > { %v3585_v13 = vrot.slane %v3521_v2, 2  ;;  %v3855_v33 = vsel %vm2574_vm4, %v3773_v22, %v3774_v34  ;;  %v3854_v21 = vsel %vm2574_vm4, %v3774_v34, %v3775_v45  ;;  %v3324_v38 = vadd.f32 %v8116_v12, %v10520_v29 }
 0x339   : > { %12267 = vst [vmem:[#allocation11_spill] sm:$0xff] %v10896_v4  ;;  %v10908_v11 = vadd.f32 %v10532_v16, %v3455_v0  ;;  %v3523_v28 = vadd.f32 %v10532_v16, %v3454_v20  ;;  %8200 = vmatprep.mubr.msk.f32.mxu0 %vm1355_vm3, %v3855_v33  ;;  %v3323_v1 = vadd.f32 %v10520_v29, %v3071_v58  ;;  %v8122_v40 = vpop.f32.mrb[38].mxu1  ;;  %v3777_v44 = vrot.slane %v10862_v17, 4 }
 0x33a   : > { %v10914_v52 = vmax.f32 %v10806_v51, %v3656_v54  ;;  %v3651_v22 = vsel %vm1286_vm2, %v3585_v13, %v3586_v36  ;;  %v3652_v39 = vsel %vm1286_vm2, %v3584_v27, %v3585_v13  ;;  %v3388_v12 = vmax.f32 %v3324_v38, 0.0  ;;  %v3091_v34 = vpop.f32.mrb[39].mxu1 }
 0x33b   : > { %v10921_v23 = vmax.f32 %v3521_v2, %v3651_v22  ;;  %v3588_v0 = vrot.slane %v10908_v11, 2  ;;  %v3587_v20 = vrot.slane %v3523_v28, 2  ;;  %8201 = vmatmul.mubr.msk.f32.gmra.mrb[86].mxu0 %vm1355_vm3, %v3854_v21  ;;  %v3387_v51 = vmax.f32 %v3323_v1, 0.0 }
 0x33c   : > { %12268 = vst [vmem:[#allocation8_spill] sm:$0xff] %v10914_v52  ;;  %v3457_v54 = vmul.f32 %v10526_v47, %v3388_v12  ;;  %v3776_v58 = vrot.slane %v10914_v52, 4  ;;  %v3326_v33 = vadd.f32 %v8119_v30, %v10520_v29  ;;  %v3325_v27 = vadd.f32 %v10520_v29, %v3081_v50 }
 0x33d   : > { %12269 = vst [vmem:[#allocation13_spill] sm:$0xff] %v10921_v23  ;;  %v3649_v13 = vsel %vm1286_vm2, %v3587_v20, %v3588_v0  ;;  %v3650_v2 = vsel %vm1286_vm2, %v3586_v36, %v3587_v20  ;;  %v3456_v38 = vmul.f32 %v10526_v47, %v3387_v51  ;;  %v10935_v22 = vmax.f32 %v10826_v32, %v3654_v63  ;;  %v8125_v21 = vpop.f32.mrb[40].mxu1 }
 0x33e   : > { %v10937_v1 = vmax.f32 %v3523_v28, %v3649_v13  ;;  %v10940_v12 = vadd.f32 %v10532_v16, %v3457_v54  ;;  %v3853_v30 = vsel %vm2574_vm4, %v3775_v45, %v3776_v58  ;;  %v3852_v50 = vsel %vm2574_vm4, %v3776_v58, %v3777_v44  ;;  %v3101_v59 = vpop.f32.mrb[41].mxu1 }
 0x33f   : > { %12270 = vst [vmem:[#allocation10_spill] sm:$0xff] %v10935_v22  ;;  %v3525_v36 = vadd.f32 %v10532_v16, %v3456_v38  ;;  %8203 = vmatprep.mubr.msk.f32.mxu0 %vm1355_vm3, %v3853_v30  ;;  %v3390_v20 = vmax.f32 %v3326_v33, 0.0  ;;  %v3389_v32 = vmax.f32 %v3325_v27, 0.0  ;;  %v3778_v63 = vrot.slane %v10935_v22, 4 }
 0x340   : > { %12271 = vst [vmem:[#allocation16_spill] sm:$0xff] %v10937_v1  ;;  %v3590_v28 = vrot.slane %v10940_v12, 2  ;;  %8204 = vmatmul.mubr.msk.f32.gmra.mrb[88].mxu0 %vm1355_vm3, %v3852_v50  ;;  %v3779_v51 = vrot.slane %v10896_v4, 4  ;;  %v3328_v45 = vadd.f32 %v8122_v40, %v10520_v29  ;;  %v3327_v54 = vadd.f32 %v10520_v29, %v3091_v34 }
 0x341   : > { %v3589_v58 = vrot.slane %v3525_v36, 2  ;;  %v3459_v13 = vmul.f32 %v10526_v47, %v3390_v20  ;;  %v3458_v38 = vmul.f32 %v10526_v47, %v3389_v32  ;;  %v3851_v33 = vsel %vm2574_vm4, %v3777_v44, %v3778_v63  ;;  %v8128_v27 = vpop.f32.mrb[42].mxu1 }
 0x342   : > { %8206 = vmatprep.mubr.msk.f32.mxu0 %vm1355_vm3, %v3851_v33  ;;  %v3850_v30 = vsel %vm2574_vm4, %v3778_v63, %v3779_v51  ;;  %v3392_v50 = vmax.f32 %v3328_v45, 0.0  ;;  %v3391_v5 = vmax.f32 %v3327_v54, 0.0  ;;  %v10962_v40 = vmax.f32 %v10865_v53, %v3652_v39  ;;  %v3111_v34 = vpop.f32.mrb[43].mxu1 }
 0x343   : > { %v3647_v20 = vsel %vm1286_vm2, %v3589_v58, %v3590_v28  ;;  %v3648_v32 = vsel %vm1286_vm2, %v3588_v0, %v3589_v58  ;;  %v10969_v44 = vadd.f32 %v10532_v16, %v3459_v13  ;;  %v3527_v33 = vadd.f32 %v10532_v16, %v3458_v38 }
 0x344   : > { %12272 = vst [vmem:[#allocation12_spill] sm:$0xff] %v10962_v40  ;;  %v10972_v4 = vmax.f32 %v3525_v36, %v3647_v20  ;;  %8207 = vmatmul.mubr.msk.f32.gmra.mrb[90].mxu0 %vm1355_vm3, %v3850_v30  ;;  %v3461_v63 = vmul.f32 %v10526_v47, %v3392_v50  ;;  %v3460_v53 = vmul.f32 %v10526_v47, %v3391_v5  ;;  %v3780_v39 = vrot.slane %v10962_v40, 4 }
 0x345   : > { %v3592_v45 = vrot.slane %v10969_v44, 2  ;;  %v3591_v54 = vrot.slane %v3527_v33, 2  ;;  %v3781_v0 = vrot.slane %v10921_v23, 4  ;;  %v3330_v58 = vadd.f32 %v8125_v21, %v10520_v29  ;;  %v8131_v13 = vpop.f32.mrb[44].mxu1 }
 0x346   : > { %12273 = vst [vmem:[#allocation18_spill] sm:$0xff] %v10972_v4  ;;  %v10982_v38 = vadd.f32 %v10532_v16, %v3461_v63  ;;  %v3529_v36 = vadd.f32 %v10532_v16, %v3460_v53  ;;  %v3849_v30 = vsel %vm2574_vm4, %v3779_v51, %v3780_v39  ;;  %v3329_v5 = vadd.f32 %v10520_v29, %v3101_v59  ;;  %v3121_v50 = vpop.f32.mrb[45].mxu1 }
 0x347   : > { %v3645_v20 = vsel %vm1286_vm2, %v3591_v54, %v3592_v45  ;;  %v3646_v23 = vsel %vm1286_vm2, %v3590_v28, %v3591_v54  ;;  %8209 = vmatprep.mubr.msk.f32.mxu0 %vm1355_vm3, %v3849_v30  ;;  %v3848_v21 = vsel %vm2574_vm4, %v3780_v39, %v3781_v0  ;;  %v3394_v63 = vmax.f32 %v3330_v58, 0.0 }
 0x348   : > { %v10995_v40 = vmax.f32 %v3527_v33, %v3645_v20  ;;  %v3594_v53 = vrot.slane %v10982_v38, 2  ;;  %v3593_v51 = vrot.slane %v3529_v36, 2  ;;  %8210 = vmatmul.mubr.msk.f32.gmra.mrb[92].mxu0 %vm1355_vm3, %v3848_v21  ;;  %v3393_v59 = vmax.f32 %v3329_v5, 0.0 }
 0x349   : > { %v3463_v22 = vmul.f32 %v10526_v47, %v3394_v63  ;;  %v11001_v17 = vmax.f32 %v10886_v46, %v3650_v2  ;;  %v3783_v28 = vrot.slane %v10937_v1, 4  ;;  %v3332_v54 = vadd.f32 %v8128_v27, %v10520_v29  ;;  %v8134_v30 = vpop.f32.mrb[46].mxu1 }
 0x34a   : > { %12274 = vst [vmem:[#allocation14_spill] sm:$0xff] %v10995_v40  ;;  %v3643_v33 = vsel %vm1286_vm2, %v3593_v51, %v3594_v53  ;;  %v3644_v39 = vsel %vm1286_vm2, %v3592_v45, %v3593_v51  ;;  %v3462_v58 = vmul.f32 %v10526_v47, %v3393_v59  ;;  %v3331_v5 = vadd.f32 %v10520_v29, %v3111_v34  ;;  %v3131_v20 = vpop.f32.mrb[47].mxu1 }
 0x34b   : > { %12275 = vst [vmem:[#allocation19_spill] sm:$0xff] %v11001_v17  ;;  %v11011_v21 = vmax.f32 %v3529_v36, %v3643_v33  ;;  %v11014_v46 = vadd.f32 %v10532_v16, %v3463_v22  ;;  %v3782_v2 = vrot.slane %v11001_v17, 4  ;;  %v3396_v27 = vmax.f32 %v3332_v54, 0.0 }
 0x34c   : > { %v3531_v63 = vadd.f32 %v10532_v16, %v3462_v58  ;;  %v3395_v1 = vmax.f32 %v3331_v5, 0.0  ;;  %v11019_v52 = vmax.f32 %v10908_v11, %v3648_v32  ;;  %v3785_v45 = vrot.slane %v10972_v4, 4 }
 0x34d   : > { %12276 = vst [vmem:[#allocation15_spill] sm:$0xff] %v11011_v21  ;;  %v3596_v51 = vrot.slane %v11014_v46, 2  ;;  %v3847_v34 = vsel %vm2574_vm4, %v3781_v0, %v3782_v2  ;;  %v3846_v22 = vsel %vm2574_vm4, %v3782_v2, %v3783_v28  ;;  %v3465_v36 = vmul.f32 %v10526_v47, %v3396_v27  ;;  %v8137_v59 = vpop.f32.mrb[48].mxu1 }
 0x34e   : > { %12277 = vst [vmem:[#allocation21_spill] sm:$0xff] %v11019_v52  ;;  %v3595_v54 = vrot.slane %v3531_v63, 2  ;;  %8212 = vmatprep.mubr.msk.f32.mxu0 %vm1355_vm3, %v3847_v34  ;;  %v3464_v33 = vmul.f32 %v10526_v47, %v3395_v1  ;;  %v3784_v11 = vrot.slane %v11019_v52, 4  ;;  %v3334_v32 = vadd.f32 %v8131_v13, %v10520_v29  ;;  %v3141_v58 = vpop.f32.mrb[49].mxu1 }
 0x34f   : > { %8213 = vmatmul.mubr.msk.f32.gmra.mrb[94].mxu0 %vm1355_vm3, %v3846_v22  ;;  %v11034_v0 = vadd.f32 %v10532_v16, %v3465_v36  ;;  %v3333_v5 = vadd.f32 %v10520_v29, %v3121_v50  ;;  %v11038_v2 = vmax.f32 %v10940_v12, %v3646_v23  ;;  %v3787_v27 = vrot.slane %v10995_v40, 4 }
 0x350   : > { %v3641_v1 = vsel %vm1286_vm2, %v3595_v54, %v3596_v51  ;;  %v3642_v34 = vsel %vm1286_vm2, %v3594_v53, %v3595_v54  ;;  %v3533_v13 = vadd.f32 %v10532_v16, %v3464_v33  ;;  %v3845_v22 = vsel %vm2574_vm4, %v3783_v28, %v3784_v11 }
 0x351   : > { %12278 = vst [vmem:[#allocation17_spill] sm:$0xff] %v11038_v2  ;;  %v11048_v36 = vmax.f32 %v3531_v63, %v3641_v1  ;;  %v3598_v50 = vrot.slane %v11034_v0, 2  ;;  %8215 = vmatprep.mubr.msk.f32.mxu0 %vm1355_vm3, %v3845_v22  ;;  %v3844_v23 = vsel %vm2574_vm4, %v3784_v11, %v3785_v45  ;;  %v3398_v12 = vmax.f32 %v3334_v32, 0.0  ;;  %v8140_v40 = vpop.f32.mrb[50].mxu1 }
 0x352   : > { %v3597_v4 = vrot.slane %v3533_v13, 2  ;;  %v3397_v52 = vmax.f32 %v3333_v5, 0.0  ;;  %v3786_v53 = vrot.slane %v11038_v2, 4  ;;  %v3336_v54 = vadd.f32 %v8134_v30, %v10520_v29  ;;  %v3151_v33 = vpop.f32.mrb[51].mxu1 }
 0x353   : > { %12279 = vst [vmem:[#allocation23_spill] sm:$0xff] %v11048_v36  ;;  %8216 = vmatmul.mubr.msk.f32.gmra.mrb[96].mxu0 %vm1355_vm3, %v3844_v23  ;;  %v3467_v28 = vmul.f32 %v10526_v47, %v3398_v12  ;;  %v3335_v63 = vadd.f32 %v10520_v29, %v3131_v20  ;;  %v11060_v1 = vmax.f32 %v10969_v44, %v3644_v39  ;;  %v3789_v11 = vrot.slane %v11011_v21, 4 }
 0x354   : > { %v3639_v32 = vsel %vm1286_vm2, %v3597_v4, %v3598_v50  ;;  %v3640_v5 = vsel %vm1286_vm2, %v3596_v51, %v3597_v4  ;;  %v3466_v30 = vmul.f32 %v10526_v47, %v3397_v52  ;;  %v3843_v22 = vsel %vm2574_vm4, %v3785_v45, %v3786_v53 }
 0x355   : > { %12280 = vst [vmem:[#allocation25_spill] sm:$0xff] %v11060_v1  ;;  %v11070_v23 = vmax.f32 %v3533_v13, %v3639_v32  ;;  %v11073_v20 = vadd.f32 %v10532_v16, %v3467_v28  ;;  %8218 = vmatprep.mubr.msk.f32.mxu0 %vm1355_vm3, %v3843_v22  ;;  %v3842_v44 = vsel %vm2574_vm4, %v3786_v53, %v3787_v27  ;;  %v3400_v39 = vmax.f32 %v3336_v54, 0.0  ;;  %v8143_v12 = vpop.f32.mrb[52].mxu1 }
 0x356   : > { %v3535_v21 = vadd.f32 %v10532_v16, %v3466_v30  ;;  %v3399_v4 = vmax.f32 %v3335_v63, 0.0  ;;  %v3788_v52 = vrot.slane %v11060_v1, 4  ;;  %v3338_v51 = vadd.f32 %v8137_v59, %v10520_v29  ;;  %v3161_v45 = vpop.f32.mrb[53].mxu1 }
 0x357   : > { %12281 = vst [vmem:[#allocation22_spill] sm:$0xff] %v11070_v23  ;;  %v3600_v13 = vrot.slane %v11073_v20, 2  ;;  %8219 = vmatmul.mubr.msk.f32.gmra.mrb[98].mxu0 %vm1355_vm3, %v3842_v44  ;;  %v3469_v28 = vmul.f32 %v10526_v47, %v3400_v39  ;;  %v3337_v32 = vadd.f32 %v10520_v29, %v3141_v58  ;;  %v11086_v53 = vmax.f32 %v10982_v38, %v3642_v34 }
 0x358   : > { %v3599_v54 = vrot.slane %v3535_v21, 2  ;;  %v3468_v30 = vmul.f32 %v10526_v47, %v3399_v4  ;;  %v3841_v63 = vsel %vm2574_vm4, %v3787_v27, %v3788_v52  ;;  %v3840_v59 = vsel %vm2574_vm4, %v3788_v52, %v3789_v11 }
 0x359   : > { %12282 = vst [vmem:[#allocation27_spill] sm:$0xff] %v11086_v53  ;;  %v11094_v22 = vadd.f32 %v10532_v16, %v3469_v28  ;;  %8221 = vmatprep.mubr.msk.f32.mxu0 %vm1355_vm3, %v3841_v63  ;;  %v3402_v44 = vmax.f32 %v3338_v51, 0.0  ;;  %v3401_v39 = vmax.f32 %v3337_v32, 0.0  ;;  %v3790_v29 = vrot.slane %v11086_v53, 4  ;;  %v8146_v38 = vpop.f32.mrb[54].mxu1 }
 0x35a   : > { %v3637_v58 = vsel %vm1286_vm2, %v3599_v54, %v3600_v13  ;;  %v3638_v34 = vsel %vm1286_vm2, %v3598_v50, %v3599_v54  ;;  %v3537_v27 = vadd.f32 %v10532_v16, %v3468_v30  ;;  %v3791_v4 = vrot.slane %v11048_v36, 4  ;;  %v3171_v52 = vpop.f32.mrb[55].mxu1  ;;  %v11123_v54 = vld [vmem:[%s12083_s1 + $0xd5] ss:$0 sm:$0xff] }
 0x35b   : > { %v11104_v28 = vmax.f32 %v3535_v21, %v3637_v58  ;;  %v3602_v63 = vrot.slane %v11094_v22, 2  ;;  %8222 = vmatmul.mubr.msk.f32.gmra.mrb[100].mxu0 %vm1355_vm3, %v3840_v59  ;;  %v3471_v51 = vmul.f32 %v10526_v47, %v3402_v44  ;;  %v3470_v32 = vmul.f32 %v10526_v47, %v3401_v39  ;;  %v11117_v21 = vld [vmem:[%s12083_s1 + $0xd3] ss:$0 sm:$0xff] }
 0x35c   : > { %v3601_v53 = vrot.slane %v3537_v27, 2  ;;  %v3839_v1 = vsel %vm2574_vm4, %v3789_v11, %v3790_v29  ;;  %v3838_v16 = vsel %vm2574_vm4, %v3790_v29, %v3791_v4  ;;  %v3340_v50 = vadd.f32 %v11117_v21, %v8140_v40 }
 0x35d   : > { %12283 = vst [vmem:[#allocation24_spill] sm:$0xff] %v11104_v28  ;;  %v11126_v47 = vadd.f32 %v11123_v54, %v3471_v51  ;;  %v3539_v11 = vadd.f32 %v11123_v54, %v3470_v32  ;;  %8224 = vmatprep.mubr.msk.f32.mxu0 %vm1355_vm3, %v3839_v1  ;;  %v3339_v30 = vadd.f32 %v11117_v21, %v3151_v33  ;;  %v8149_v44 = vpop.f32.mrb[56].mxu1  ;;  %v3793_v58 = vrot.slane %v11070_v23, 4  ;;  %v11146_v33 = vld [vmem:[%s12083_s1 + $0xd4] ss:$0 sm:$0xff] }
 0x35e   : > { %v11132_v59 = vmax.f32 %v11014_v46, %v3640_v5  ;;  %v3635_v40 = vsel %vm1286_vm2, %v3601_v53, %v3602_v63  ;;  %v3636_v39 = vsel %vm1286_vm2, %v3600_v13, %v3601_v53  ;;  %v3404_v29 = vmax.f32 %v3340_v50, 0.0  ;;  %v3181_v51 = vpop.f32.mrb[57].mxu1 }
 0x35f   : > { %v11139_v36 = vmax.f32 %v3537_v27, %v3635_v40  ;;  %v3604_v1 = vrot.slane %v11126_v47, 2  ;;  %v3603_v32 = vrot.slane %v3539_v11, 2  ;;  %8225 = vmatmul.mubr.msk.f32.gmra.mrb[102].mxu0 %vm1355_vm3, %v3838_v16  ;;  %v3403_v46 = vmax.f32 %v3339_v30, 0.0 }
 0x360   : > { %12284 = vst [vmem:[#allocation29_spill] sm:$0xff] %v11132_v59  ;;  %v3473_v5 = vmul.f32 %v11146_v33, %v3404_v29  ;;  %v3792_v13 = vrot.slane %v11132_v59, 4  ;;  %v3342_v53 = vadd.f32 %v11117_v21, %v8143_v12  ;;  %v3341_v27 = vadd.f32 %v11117_v21, %v3161_v45 }
 0x361   : > { %12285 = vst [vmem:[#allocation26_spill] sm:$0xff] %v11139_v36  ;;  %v3633_v50 = vsel %vm1286_vm2, %v3603_v32, %v3604_v1  ;;  %v3634_v16 = vsel %vm1286_vm2, %v3602_v63, %v3603_v32  ;;  %v3472_v30 = vmul.f32 %v11146_v33, %v3403_v46  ;;  %v11158_v40 = vmax.f32 %v11034_v0, %v3638_v34  ;;  %v8152_v23 = vpop.f32.mrb[58].mxu1 }
 0x362   : > { %v11160_v2 = vmax.f32 %v3539_v11, %v3633_v50  ;;  %v11163_v29 = vadd.f32 %v11123_v54, %v3473_v5  ;;  %v3837_v12 = vsel %vm2574_vm4, %v3791_v4, %v3792_v13  ;;  %v3836_v45 = vsel %vm2574_vm4, %v3792_v13, %v3793_v58  ;;  %v3191_v59 = vpop.f32.mrb[59].mxu1 }
 0x363   : > { %12286 = vst [vmem:[#allocation20_spill] sm:$0xff] %v11158_v40  ;;  %v3541_v63 = vadd.f32 %v11123_v54, %v3472_v30  ;;  %8227 = vmatprep.mubr.msk.f32.mxu0 %vm1355_vm3, %v3837_v12  ;;  %v3406_v32 = vmax.f32 %v3342_v53, 0.0  ;;  %v3405_v0 = vmax.f32 %v3341_v27, 0.0  ;;  %v3794_v34 = vrot.slane %v11158_v40, 4 }
 0x364   : > { %12287 = vst [vmem:[#allocation28_spill] sm:$0xff] %v11160_v2  ;;  %v3606_v11 = vrot.slane %v11163_v29, 2  ;;  %8228 = vmatmul.mubr.msk.f32.gmra.mrb[104].mxu0 %vm1355_vm3, %v3836_v45  ;;  %v3795_v46 = vrot.slane %v11104_v28, 4  ;;  %v3344_v4 = vadd.f32 %v11117_v21, %v8146_v38  ;;  %v3343_v5 = vadd.f32 %v11117_v21, %v3171_v52 }
 0x365   : > { %v3605_v13 = vrot.slane %v3541_v63, 2  ;;  %v3475_v50 = vmul.f32 %v11146_v33, %v3406_v32  ;;  %v3474_v30 = vmul.f32 %v11146_v33, %v3405_v0  ;;  %v3835_v53 = vsel %vm2574_vm4, %v3793_v58, %v3794_v34  ;;  %v8155_v27 = vpop.f32.mrb[60].mxu1 }
 0x366   : > { %8230 = vmatprep.mubr.msk.f32.mxu0 %vm1355_vm3, %v3835_v53  ;;  %v3834_v12 = vsel %vm2574_vm4, %v3794_v34, %v3795_v46  ;;  %v3408_v45 = vmax.f32 %v3344_v4, 0.0  ;;  %v3407_v28 = vmax.f32 %v3343_v5, 0.0  ;;  %v11185_v38 = vmax.f32 %v11073_v20, %v3636_v39  ;;  %v3201_v52 = vpop.f32.mrb[61].mxu1 }
 0x367   : > { %v3631_v32 = vsel %vm1286_vm2, %v3605_v13, %v3606_v11  ;;  %v3632_v0 = vsel %vm1286_vm2, %v3604_v1, %v3605_v13  ;;  %v11192_v58 = vadd.f32 %v11123_v54, %v3475_v50  ;;  %v3543_v53 = vadd.f32 %v11123_v54, %v3474_v30 }
 0x368   : > { %12288 = vst [vmem:[#allocation31_spill] sm:$0xff] %v11185_v38  ;;  %v11195_v40 = vmax.f32 %v3541_v63, %v3631_v32  ;;  %8231 = vmatmul.mubr.msk.f32.gmra.mrb[106].mxu0 %vm1355_vm3, %v3834_v12  ;;  %v3477_v34 = vmul.f32 %v11146_v33, %v3408_v45  ;;  %v3476_v20 = vmul.f32 %v11146_v33, %v3407_v28  ;;  %v3796_v39 = vrot.slane %v11185_v38, 4 }
 0x369   : > { %v3608_v4 = vrot.slane %v11192_v58, 2  ;;  %v3607_v5 = vrot.slane %v3543_v53, 2  ;;  %v3797_v1 = vrot.slane %v11139_v36, 4  ;;  %v3346_v13 = vadd.f32 %v11117_v21, %v8149_v44  ;;  %v8158_v50 = vpop.f32.mrb[62].mxu1 }
 0x36a   : > { %v11205_v30 = vadd.f32 %v11123_v54, %v3477_v34  ;;  %v3545_v63 = vadd.f32 %v11123_v54, %v3476_v20  ;;  %v3833_v12 = vsel %vm2574_vm4, %v3795_v46, %v3796_v39  ;;  %v3345_v28 = vadd.f32 %v11117_v21, %v3181_v51  ;;  %v3211_v45 = vpop.f32.mrb[63].mxu1 }
 0x36b   : > { %v3629_v32 = vsel %vm1286_vm2, %v3607_v5, %v3608_v4  ;;  %v3630_v36 = vsel %vm1286_vm2, %v3606_v11, %v3607_v5  ;;  %8233 = vmatprep.mubr.msk.f32.mxu0 %vm1355_vm3, %v3833_v12  ;;  %v3832_v44 = vsel %vm2574_vm4, %v3796_v39, %v3797_v1  ;;  %v3410_v34 = vmax.f32 %v3346_v13, 0.0 }
 0x36c   : > { %v11218_v38 = vmax.f32 %v3543_v53, %v3629_v32  ;;  %v3610_v20 = vrot.slane %v11205_v30, 2  ;;  %v3609_v46 = vrot.slane %v3545_v63, 2  ;;  %8234 = vmatmul.mubr.msk.f32.gmra.mrb[108].mxu0 %vm1355_vm3, %v3832_v44  ;;  %v3409_v51 = vmax.f32 %v3345_v28, 0.0 }
 0x36d   : > { %v3479_v17 = vmul.f32 %v11146_v33, %v3410_v34  ;;  %v11224_v7 = vmax.f32 %v11094_v22, %v3634_v16  ;;  %v3799_v11 = vrot.slane %v11160_v2, 4  ;;  %v3348_v5 = vadd.f32 %v11117_v21, %v8152_v23 }
 0x36e   : > { %v3627_v39 = vsel %vm1286_vm2, %v3609_v46, %v3610_v20  ;;  %v3628_v53 = vsel %vm1286_vm2, %v3608_v4, %v3609_v46  ;;  %v3478_v13 = vmul.f32 %v11146_v33, %v3409_v51  ;;  %v3347_v12 = vadd.f32 %v11117_v21, %v3191_v59 }
 0x36f   : > { %v11234_v28 = vmax.f32 %v3545_v63, %v3627_v39  ;;  %v3548_v32 = vadd.f32 %v11123_v54, %v3479_v17  ;;  %v3798_v22 = vrot.slane %v11224_v7, 4  ;;  %v3412_v16 = vmax.f32 %v3348_v5, 0.0 }
 0x370   : > { %v3547_v44 = vadd.f32 %v11123_v54, %v3478_v13  ;;  %v3411_v23 = vmax.f32 %v3347_v12, 0.0  ;;  %v11240_v34 = vmax.f32 %v11126_v47, %v3632_v0  ;;  %v3801_v2 = vrot.slane %v11195_v40, 4 }
 0x371   : > { %v3612_v4 = vrot.slane %v3548_v32, 2  ;;  %v3831_v46 = vsel %vm2574_vm4, %v3797_v1, %v3798_v22  ;;  %v3830_v59 = vsel %vm2574_vm4, %v3798_v22, %v3799_v11  ;;  %v3481_v17 = vmul.f32 %v11146_v33, %v3412_v16 }
 0x372   : > { %v3611_v63 = vrot.slane %v3547_v44, 2  ;;  %8236 = vmatprep.mubr.msk.f32.mxu0 %vm1355_vm3, %v3831_v46  ;;  %v3480_v51 = vmul.f32 %v11146_v33, %v3411_v23  ;;  %v3800_v5 = vrot.slane %v11240_v34, 4  ;;  %v3350_v47 = vadd.f32 %v11117_v21, %v8155_v27 }
 0x373   : > { %8237 = vmatmul.mubr.msk.f32.gmra.mrb[110].mxu0 %vm1355_vm3, %v3830_v59  ;;  %v3550_v0 = vadd.f32 %v11123_v54, %v3481_v17  ;;  %v3349_v1 = vadd.f32 %v11117_v21, %v3201_v52  ;;  %v11256_v39 = vmax.f32 %v11163_v29, %v3630_v36  ;;  %v3803_v13 = vrot.slane %v11218_v38, 4 }
 0x374   : > { %v3625_v12 = vsel %vm1286_vm2, %v3611_v63, %v3612_v4  ;;  %v3626_v22 = vsel %vm1286_vm2, %v3610_v20, %v3611_v63  ;;  %v3549_v16 = vadd.f32 %v11123_v54, %v3480_v51  ;;  %v3829_v27 = vsel %vm2574_vm4, %v3799_v11, %v3800_v5 }
 0x375   : > { %v11266_v23 = vmax.f32 %v3547_v44, %v3625_v12  ;;  %v3614_v46 = vrot.slane %v3550_v0, 2  ;;  %8239 = vmatprep.mubr.msk.f32.mxu0 %vm1355_vm3, %v3829_v27  ;;  %v3828_v36 = vsel %vm2574_vm4, %v3800_v5, %v3801_v2  ;;  %v3414_v29 = vmax.f32 %v3350_v47, 0.0 }
 0x376   : > { %v3613_v52 = vrot.slane %v3549_v16, 2  ;;  %v3413_v59 = vmax.f32 %v3349_v1, 0.0  ;;  %v3802_v17 = vrot.slane %v11256_v39, 4  ;;  %v3352_v20 = vadd.f32 %v11117_v21, %v8158_v50 }
 0x377   : > { %8240 = vmatmul.mubr.msk.f32.gmra.mrb[112].mxu0 %vm1355_vm3, %v3828_v36  ;;  %v3483_v63 = vmul.f32 %v11146_v33, %v3414_v29  ;;  %v3351_v11 = vadd.f32 %v11117_v21, %v3211_v45  ;;  %v11277_v44 = vmax.f32 %v11192_v58, %v3628_v53  ;;  %v3805_v51 = vrot.slane %v11234_v28, 4 }
 0x378   : > { %v3623_v5 = vsel %vm1286_vm2, %v3613_v52, %v3614_v46  ;;  %v3624_v47 = vsel %vm1286_vm2, %v3612_v4, %v3613_v52  ;;  %v3482_v1 = vmul.f32 %v11146_v33, %v3413_v59  ;;  %v3827_v50 = vsel %vm2574_vm4, %v3801_v2, %v3802_v17  ;;  %v5037_v59 = vld [vmem:[%s12083_s1 + $0xb0] sm:$0xff] }
 0x379   : > { %v11287_v12 = vmax.f32 %v3549_v16, %v3623_v5  ;;  %v3552_v21 = vadd.f32 %v11123_v54, %v3483_v63  ;;  %8242 = vmatprep.mubr.msk.f32.mxu0 %vm1355_vm3, %v3827_v50  ;;  %v3826_v58 = vsel %vm2574_vm4, %v3802_v17, %v3803_v13  ;;  %v3416_v45 = vmax.f32 %v3352_v20, 0.0  ;;  %v5038_v17 = vld [vmem:[%s12083_s1 + $0xb8] sm:$0xff] }
 0x37a   : > { %v3551_v53 = vadd.f32 %v11123_v54, %v3482_v1  ;;  %v3415_v27 = vmax.f32 %v3351_v11, 0.0  ;;  %v3804_v4 = vrot.slane %v11277_v44, 4  ;;  %v11296_v36 = vmax.f32 %v11205_v30, %v3626_v22 }
 0x37b   : > { %v3616_v29 = vrot.slane %v3552_v21, 2  ;;  %8243 = vmatmul.mubr.msk.f32.gmra.mrb[114].mxu0 %vm1355_vm3, %v3826_v58  ;;  %v3485_v2 = vmul.f32 %v11146_v33, %v3416_v45  ;;  %v3807_v16 = vrot.slane %v11266_v23, 4  ;;  %v11301_v52 = vmax.f32 %v3548_v32, %v3624_v47 }
 0x37c   : > { %v3615_v20 = vrot.slane %v3551_v53, 2  ;;  %v3484_v30 = vmul.f32 %v11146_v33, %v3415_v27  ;;  %v3825_v22 = vsel %vm2574_vm4, %v3803_v13, %v3804_v4  ;;  %v3824_v63 = vsel %vm2574_vm4, %v3804_v4, %v3805_v51 }
 0x37d   : > { %v3554_v32 = vadd.f32 %v11123_v54, %v3485_v2  ;;  %8245 = vmatprep.mubr.msk.f32.mxu0 %vm1355_vm3, %v3825_v22  ;;  %v3806_v11 = vrot.slane %v11296_v36, 4  ;;  %v3808_v5 = vrot.slane %v11301_v52, 4  ;;  %v8619_v13 = vpack.c.bf16 %v5038_v17, %v5037_v59 }
 0x37e   : > { %v3621_v47 = vsel %vm1286_vm2, %v3615_v20, %v3616_v29  ;;  %v3622_v33 = vsel %vm1286_vm2, %v3614_v46, %v3615_v20  ;;  %v3553_v1 = vadd.f32 %v11123_v54, %v3484_v30  ;;  %v3809_v2 = vrot.slane %v11287_v12, 4 }
 0x37f   : > { %v11323_v50 = vmax.f32 %v3551_v53, %v3621_v47  ;;  %v3618_v58 = vrot.slane %v3554_v32, 2  ;;  %8246 = vmatmul.mubr.msk.f32.gmra.mrb[116].mxu0 %vm1355_vm3, %v3824_v63  ;;  %v3823_v45 = vsel %vm2574_vm4, %v3805_v51, %v3806_v11  ;;  %v3822_v4 = vsel %vm2574_vm4, %v3806_v11, %v3807_v16  ;;  %8620 = vmatprep.subr.bf16.mxu0 %v8619_v13 }
 0x380   : > { %v3617_v27 = vrot.slane %v3553_v1, 2  ;;  %8248 = vmatprep.mubr.msk.f32.mxu0 %vm1355_vm3, %v3823_v45  ;;  %v11332_v46 = vmax.f32 %v3550_v0, %v3622_v33  ;;  %v3821_v54 = vsel %vm2574_vm4, %v3807_v16, %v3808_v5  ;;  %v12289_v0 = vrot.slane %v10540_v35, 2  ;;  %v5039_v45 = vld [vmem:[%s12083_s1 + $0xc0] sm:$0xff] }
 0x381   : > { %v3820_v16 = vsel %vm2574_vm4, %v3808_v5, %v3809_v2 }
 0x382   : > { %v3619_v53 = vsel %vm1286_vm2, %v3617_v27, %v3618_v58  ;;  %v3620_v51 = vsel %vm1286_vm2, %v3616_v29, %v3617_v27  ;;  %v3810_v59 = vrot.slane %v11332_v46, 4  ;;  %v3682_v30 = vsel %vm1286_vm2, %v3618_v58, %v12289_v0  ;;  %v5040_v27 = vld [vmem:[%s12083_s1 + $0xc8] sm:$0xff]  ;;  %v12298_v0 = vld [vmem:[#allocation19_spill] sm:$0xff] }
 0x383   : > { %v11341_v17 = vmax.f32 %v3553_v1, %v3619_v53  ;;  %8249 = vmatmul.mubr.msk.f32.gmra.mrb[118].mxu0 %vm1355_vm3, %v3822_v4  ;;  %v11344_v20 = vmax.f32 %v3552_v21, %v3620_v51  ;;  %v3811_v29 = vrot.slane %v11323_v50, 4  ;;  %v11357_v11 = vmax.f32 %v3554_v32, %v3682_v30  ;;  %v12295_v53 = vld [vmem:[#allocation11_spill] sm:$0xff]  ;;  %v12296_v51 = vld [vmem:[#allocation12_spill] sm:$0xff] }
 0x384   : > { %8251 = vmatprep.mubr.msk.f32.mxu0 %vm1355_vm3, %v3821_v54  ;;  %v3819_v22 = vsel %vm2574_vm4, %v3809_v2, %v3810_v59  ;;  %v12290_v1 = vrot.slane %v10560_v10, 4  ;;  %v8623_v4 = vpack.c.bf16 %v5040_v27, %v5039_v45  ;;  %v12293_v2 = vld [vmem:[#allocation7_spill] sm:$0xff]  ;;  %v12294_v54 = vld [vmem:[#allocation10_spill] sm:$0xff]  ;;  %v12299_v30 = vld [vmem:[#allocation16_spill] sm:$0xff] }
 0x385   : > { %v3812_v63 = vrot.slane %v11344_v20, 4  ;;  %v3818_v35 = vsel %vm2574_vm4, %v3810_v59, %v3811_v29  ;;  %v3813_v21 = vrot.slane %v11341_v17, 4  ;;  %v3814_v47 = vrot.slane %v11357_v11, 4  ;;  %v12297_v59 = vld [vmem:[#allocation13_spill] sm:$0xff]  ;;  %v12312_v45 = vld [vmem:[#allocation31_spill] sm:$0xff]  ;;  %v12313_v27 = vld [vmem:[#allocation26_spill] sm:$0xff] }
 0x387   : > { %8252 = vmatmul.mubr.msk.f32.gmra.mrb[120].mxu0 %vm1355_vm3, %v3820_v16  ;;  %v3817_v5 = vsel %vm2574_vm4, %v3811_v29, %v3812_v63  ;;  %v3816_v32 = vsel %vm2574_vm4, %v3812_v63, %v3813_v21  ;;  %v3815_v33 = vsel %vm2574_vm4, %v3813_v21, %v3814_v47  ;;  %v3878_v58 = vsel %vm2574_vm4, %v3814_v47, %v12290_v1  ;;  %v12300_v16 = vld [vmem:[#allocation21_spill] sm:$0xff]  ;;  %v12301_v29 = vld [vmem:[#allocation18_spill] sm:$0xff]  ;;  %v12305_v21 = vld [vmem:[#allocation15_spill] sm:$0xff] }
 0x388   : > { %8254 = vmatprep.mubr.msk.f32.mxu0 %vm1355_vm3, %v3819_v22  ;;  %v12302_v22 = vld [vmem:[#allocation17_spill] sm:$0xff]  ;;  %v12303_v63 = vld [vmem:[#allocation14_spill] sm:$0xff]  ;;  %v12307_v47 = vld [vmem:[#allocation23_spill] sm:$0xff] }
 0x389   : > { %v12310_v1 = vld [vmem:[#allocation20_spill] sm:$0xff] }
 0x38b   : > { %8255 = vmatmul.mubr.msk.f32.gmra.mrb[122].mxu0 %vm1355_vm3, %v3818_v35  ;;  %v12304_v35 = vld [vmem:[#allocation25_spill] sm:$0xff] }
 0x38c   : > { %8257 = vmatprep.mubr.msk.f32.mxu0 %vm1355_vm3, %v3817_v5  ;;  %v12306_v5 = vld [vmem:[#allocation27_spill] sm:$0xff] }
 0x38f   : > { %8258 = vmatmul.mubr.msk.f32.gmra.mrb[124].mxu0 %vm1355_vm3, %v3816_v32  ;;  %v12308_v32 = vld [vmem:[#allocation29_spill] sm:$0xff] }
 0x390   : > { %8260 = vmatprep.mubr.msk.f32.mxu0 %vm1355_vm3, %v3815_v33  ;;  %v12309_v33 = vld [vmem:[#allocation22_spill] sm:$0xff] }
 0x393   : > { %8261 = vmatmul.mubr.msk.f32.gmra.mrb[126].mxu0 %vm1355_vm3, %v3878_v58  ;;  %v12311_v58 = vld [vmem:[#allocation24_spill] sm:$0xff] }
 0x394   : > { %8271 = vmatprep.mubr.msk.f32.mxu0 %vm1355_vm3, %v10560_v10  ;;  %v5761_v10 = vld [vmem:[%s12084_s2] sm:$0xff] }
 0x397   : > { %8272 = vmatmul.mubr.msk.f32.vlgmr.msra.gmra.mrb[64].mxu0 %vm1355_vm3, %v10580_v15 }
 0x398   : > { %8622 = vmatpush3.bf16.msra.mxu0 %v8619_v13  ;;  %8274 = vmatprep.mubr.msk.f32.mxu0 %vm1355_vm3, %v10574_v26  ;;  %v12292_v13 = vld [vmem:[#allocation8_spill] sm:$0xff] }
 0x399   : > { %8624 = vmatprep.subr.bf16.mxu0 %v8623_v4 }
 0x39b   : > { %8275 = vmatmul.mubr.msk.f32.gmra.mrb[66].mxu0 %vm1355_vm3, %v10603_v37 }
 0x39c   : > { %8277 = vmatprep.mubr.msk.f32.mxu0 %vm1355_vm3, %v10592_v9  ;;  %8626 = vmatpush3.bf16.msra.mxu0 %v8623_v4  ;;  %v12314_v4 = vld [vmem:[#allocation28_spill] sm:$0xff] }
 0x39f   : > { %8278 = vmatmul.mubr.msk.f32.gmra.mrb[68].mxu0 %vm1355_vm3, %v10630_v8 }
 0x3a0   : > { %8280 = vmatprep.mubr.msk.f32.mxu0 %vm1355_vm3, %v10611_v48 }
 0x3a3   : > { %8281 = vmatmul.mubr.msk.f32.gmra.mrb[70].mxu0 %vm1355_vm3, %v10677_v61 }
 0x3a4   : > { %8283 = vmatprep.mubr.msk.f32.mxu0 %vm1355_vm3, %v10638_v55 }
 0x3a7   : > { %8284 = vmatmul.mubr.msk.f32.gmra.mrb[72].mxu0 %vm1355_vm3, %v10684_v42 }
 0x3a8   : > { %8286 = vmatprep.mubr.msk.f32.mxu0 %vm1355_vm3, %v10662_v25 }
 0x3ab   : > { %8287 = vmatmul.mubr.msk.f32.gmra.mrb[74].mxu0 %vm1355_vm3, %v10726_v49 }
 0x3ac   : > { %8289 = vmatprep.mubr.msk.f32.mxu0 %vm1355_vm3, %v10691_v57 }
 0x3af   : > { %8290 = vmatmul.mubr.msk.f32.gmra.mrb[76].mxu0 %vm1355_vm3, %v10749_v6 }
 0x3b0   : > { %8292 = vmatprep.mubr.msk.f32.mxu0 %vm1355_vm3, %v10713_v31 }
 0x3b3   : > { %8293 = vmatmul.mubr.msk.f32.gmra.mrb[78].mxu0 %vm1355_vm3, %v10793_v62 }
 0x3b4   : > { %8295 = vmatprep.mubr.msk.f32.mxu0 %vm1355_vm3, %v10738_v14 }
 0x3b7   : > { %8296 = vmatmul.mubr.msk.f32.gmra.mrb[80].mxu0 %vm1355_vm3, %v10811_v60 }
 0x3b8   : > { %8298 = vmatprep.mubr.msk.f32.mxu0 %vm1355_vm3, %v10764_v18 }
 0x3bb   : > { %8299 = vmatmul.mubr.msk.f32.gmra.mrb[82].mxu0 %vm1355_vm3, %v10830_v41 }
 0x3bc   : > { %8301 = vmatprep.mubr.msk.f32.mxu0 %vm1355_vm3, %v10787_v19 }
 0x3bf   : > { %8302 = vmatmul.mubr.msk.f32.gmra.mrb[84].mxu0 %vm1355_vm3, %v10852_v56 }
 0x3c0   : > { %8304 = vmatprep.mubr.msk.f32.mxu0 %vm1355_vm3, %v10803_v3 }
 0x3c3   : > { %8305 = vmatmul.mubr.msk.f32.gmra.mrb[86].mxu0 %vm1355_vm3, %v10878_v43 }
 0x3c4   : > { %8307 = vmatprep.mubr.msk.f32.mxu0 %vm1355_vm3, %v12291_v24 }
 0x3c7   : > { %8308 = vmatmul.mubr.msk.f32.gmra.mrb[88].mxu0 %vm1355_vm3, %v12292_v13 }
 0x3c8   : > { %8310 = vmatprep.mubr.msk.f32.mxu0 %vm1355_vm3, %v12293_v2 }
 0x3cb   : > { %8311 = vmatmul.mubr.msk.f32.gmra.mrb[90].mxu0 %vm1355_vm3, %v12294_v54 }
 0x3cc   : > { %8313 = vmatprep.mubr.msk.f32.mxu0 %vm1355_vm3, %v12295_v53 }
 0x3cf   : > { %8314 = vmatmul.mubr.msk.f32.gmra.mrb[92].mxu0 %vm1355_vm3, %v12296_v51 }
 0x3d0   : > { %8316 = vmatprep.mubr.msk.f32.mxu0 %vm1355_vm3, %v12297_v59 }
 0x3d3   : > { %8317 = vmatmul.mubr.msk.f32.gmra.mrb[94].mxu0 %vm1355_vm3, %v12298_v0 }
 0x3d4   : > { %8319 = vmatprep.mubr.msk.f32.mxu0 %vm1355_vm3, %v12299_v30 }
 0x3d7   : > { %8320 = vmatmul.mubr.msk.f32.gmra.mrb[96].mxu0 %vm1355_vm3, %v12300_v16 }
 0x3d8   : > { %8322 = vmatprep.mubr.msk.f32.mxu0 %vm1355_vm3, %v12301_v29 }
 0x3db   : > { %8323 = vmatmul.mubr.msk.f32.gmra.mrb[98].mxu0 %vm1355_vm3, %v12302_v22 }
 0x3dc   : > { %8325 = vmatprep.mubr.msk.f32.mxu0 %vm1355_vm3, %v12303_v63 }
 0x3df   : > { %8326 = vmatmul.mubr.msk.f32.gmra.mrb[100].mxu0 %vm1355_vm3, %v12304_v35 }
 0x3e0   : > { %8328 = vmatprep.mubr.msk.f32.mxu0 %vm1355_vm3, %v12305_v21 }
 0x3e3   : > { %8329 = vmatmul.mubr.msk.f32.gmra.mrb[102].mxu0 %vm1355_vm3, %v12306_v5 }
 0x3e4   : > { %8331 = vmatprep.mubr.msk.f32.mxu0 %vm1355_vm3, %v12307_v47 }
 0x3e7   : > { %8332 = vmatmul.mubr.msk.f32.gmra.mrb[104].mxu0 %vm1355_vm3, %v12308_v32 }
 0x3e8   : > { %8334 = vmatprep.mubr.msk.f32.mxu0 %vm1355_vm3, %v12309_v33 }
 0x3eb   : > { %8335 = vmatmul.mubr.msk.f32.gmra.mrb[106].mxu0 %vm1355_vm3, %v12310_v1 }
 0x3ec   : > { %8337 = vmatprep.mubr.msk.f32.mxu0 %vm1355_vm3, %v12311_v58  ;;  %v5762_v58 = vld [vmem:[%s12084_s2 + $0x8] sm:$0xff] }
 0x3ed   : > { %v8627_v1 = vpack.c.bf16 %v5762_v58, %v5761_v10  ;;  %v5763_v10 = vld [vmem:[%s12084_s2 + $0x10] sm:$0xff] }
 0x3ef   : > { %8338 = vmatmul.mubr.msk.f32.gmra.mrb[108].mxu0 %vm1355_vm3, %v12312_v45  ;;  %8628 = vmatprep.subr.bf16.mxu1 %v8627_v1 }
 0x3f0   : > { %8340 = vmatprep.mubr.msk.f32.mxu0 %vm1355_vm3, %v12313_v27  ;;  %8630 = vmatpush3.bf16.msra.mxu1 %v8627_v1  ;;  %v5764_v1 = vld [vmem:[%s12084_s2 + $0x18] sm:$0xff] }
 0x3f1   : > { %v8631_v58 = vpack.c.bf16 %v5764_v1, %v5763_v10 }
 0x3f3   : > { %8341 = vmatmul.mubr.msk.f32.gmra.mrb[110].mxu0 %vm1355_vm3, %v11224_v7  ;;  %8632 = vmatprep.subr.bf16.mxu1 %v8631_v58 }
 0x3f4   : > { %8343 = vmatprep.mubr.msk.f32.mxu0 %vm1355_vm3, %v12314_v4  ;;  %8634 = vmatpush3.bf16.msra.mxu1 %v8631_v58 }
 0x3f7   : > { %8344 = vmatmul.mubr.msk.f32.gmra.mrb[112].mxu0 %vm1355_vm3, %v11240_v34 }
 0x3f8   : > { %8346 = vmatprep.mubr.msk.f32.mxu0 %vm1355_vm3, %v11195_v40 }
 0x3fb   : > { %8347 = vmatmul.mubr.msk.f32.gmra.mrb[114].mxu0 %vm1355_vm3, %v11256_v39 }
 0x3fc   : > { %8349 = vmatprep.mubr.msk.f32.mxu0 %vm1355_vm3, %v11218_v38 }
 0x3ff   : > { %8350 = vmatmul.mubr.msk.f32.gmra.mrb[116].mxu0 %vm1355_vm3, %v11277_v44 }
 0x400   : > { %8352 = vmatprep.mubr.msk.f32.mxu0 %vm1355_vm3, %v11234_v28 }
 0x403   : > { %8353 = vmatmul.mubr.msk.f32.gmra.mrb[118].mxu0 %vm1355_vm3, %v11296_v36 }
 0x404   : > { %8355 = vmatprep.mubr.msk.f32.mxu0 %vm1355_vm3, %v11266_v23 }
 0x407   : > { %8356 = vmatmul.mubr.msk.f32.gmra.mrb[120].mxu0 %vm1355_vm3, %v11301_v52 }
 0x408   : > { %8358 = vmatprep.mubr.msk.f32.mxu0 %vm1355_vm3, %v11287_v12 }
 0x40b   : > { %8359 = vmatmul.mubr.msk.f32.gmra.mrb[122].mxu0 %vm1355_vm3, %v11332_v46 }
 0x40c   : > { %8361 = vmatprep.mubr.msk.f32.mxu0 %vm1355_vm3, %v11323_v50 }
 0x40f   : > { %8362 = vmatmul.mubr.msk.f32.gmra.mrb[124].mxu0 %vm1355_vm3, %v11344_v20 }
 0x410   : > { %8364 = vmatprep.mubr.msk.f32.mxu0 %vm1355_vm3, %v11341_v17 }
 0x413   : > { %8365 = vmatmul.mubr.msk.f32.gmra.mrb[126].mxu0 %vm1355_vm3, %v11357_v11 }
 0x414   : > { %8375 = vmatprep.mubr.msk.f32.mxu0 %vm1355_vm3, %v10580_v15  ;;  %v12316_v15 = vld [vmem:[#allocation24_spill] sm:$0xff] }
 0x417   : > { %8376 = vmatmul.mubr.msk.f32.vlgmr.msra.gmra.mrb[64].mxu0 %vm1355_vm3, %v10574_v26  ;;  %v12315_v26 = vld [vmem:[#allocation20_spill] sm:$0xff] }
 0x418   : > { %8378 = vmatprep.mubr.msk.f32.mxu0 %vm1355_vm3, %v10603_v37  ;;  %v11657_v37 = vld [vmem:[%s12083_s1 + $0xd6] ss:$0 sm:$0xff] }
 0x41b   : > { %8379 = vmatmul.mubr.msk.f32.gmra.mrb[66].mxu0 %vm1355_vm3, %v10592_v9  ;;  %v12317_v9 = vld [vmem:[#allocation6_spill] sm:$0xff] }
 0x41c   : > { %8381 = vmatprep.mubr.msk.f32.mxu0 %vm1355_vm3, %v10630_v8 }
 0x41f   : > { %8382 = vmatmul.mubr.msk.f32.gmra.mrb[68].mxu0 %vm1355_vm3, %v10611_v48 }
 0x420   : > { %8384 = vmatprep.mubr.msk.f32.mxu0 %vm1355_vm3, %v10677_v61 }
 0x423   : > { %8385 = vmatmul.mubr.msk.f32.gmra.mrb[70].mxu0 %vm1355_vm3, %v10638_v55 }
 0x424   : > { %8387 = vmatprep.mubr.msk.f32.mxu0 %vm1355_vm3, %v10684_v42 }
 0x427   : > { %8388 = vmatmul.mubr.msk.f32.gmra.mrb[72].mxu0 %vm1355_vm3, %v10662_v25  ;;  %v11663_v25 = vld [vmem:[%s12083_s1 + $0xd7] ss:$0 sm:$0xff] }
 0x428   : > { %8390 = vmatprep.mubr.msk.f32.mxu0 %vm1355_vm3, %v10726_v49 }
 0x42b   : > { %8391 = vmatmul.mubr.msk.f32.gmra.mrb[74].mxu0 %vm1355_vm3, %v10691_v57 }
 0x42c   : > { %8393 = vmatprep.mubr.msk.f32.mxu0 %vm1355_vm3, %v10749_v6 }
 0x42f   : > { %8394 = vmatmul.mubr.msk.f32.gmra.mrb[76].mxu0 %vm1355_vm3, %v10713_v31 }
 0x430   : > { %8396 = vmatprep.mubr.msk.f32.mxu0 %vm1355_vm3, %v10793_v62 }
 0x433   : > { %8397 = vmatmul.mubr.msk.f32.gmra.mrb[78].mxu0 %vm1355_vm3, %v10738_v14  ;;  %v11670_v14 = vld [vmem:[%s12083_s1 + $0xd8] ss:$0 sm:$0xff] }
 0x434   : > { %8399 = vmatprep.mubr.msk.f32.mxu0 %vm1355_vm3, %v10811_v60 }
 0x437   : > { %8400 = vmatmul.mubr.msk.f32.gmra.mrb[80].mxu0 %vm1355_vm3, %v10764_v18 }
 0x438   : > { %8402 = vmatprep.mubr.msk.f32.mxu0 %vm1355_vm3, %v10830_v41 }
 0x43b   : > { %8403 = vmatmul.mubr.msk.f32.gmra.mrb[82].mxu0 %vm1355_vm3, %v10787_v19 }
 0x43c   : > { %8405 = vmatprep.mubr.msk.f32.mxu0 %vm1355_vm3, %v10852_v56 }
 0x43f   : > { %8406 = vmatmul.mubr.msk.f32.gmra.mrb[84].mxu0 %vm1355_vm3, %v10803_v3 }
 0x440   : > { %8408 = vmatprep.mubr.msk.f32.mxu0 %vm1355_vm3, %v10878_v43 }
 0x443   : > { %8409 = vmatmul.mubr.msk.f32.gmra.mrb[86].mxu0 %vm1355_vm3, %v12291_v24 }
 0x444   : > { %8411 = vmatprep.mubr.msk.f32.mxu0 %vm1355_vm3, %v12292_v13 }
 0x447   : > { %8412 = vmatmul.mubr.msk.f32.gmra.mrb[88].mxu0 %vm1355_vm3, %v12293_v2 }
 0x448   : > { %8414 = vmatprep.mubr.msk.f32.mxu0 %vm1355_vm3, %v12294_v54 }
 0x44b   : > { %8415 = vmatmul.mubr.msk.f32.gmra.mrb[90].mxu0 %vm1355_vm3, %v12295_v53 }
 0x44c   : > { %8417 = vmatprep.mubr.msk.f32.mxu0 %vm1355_vm3, %v12296_v51 }
 0x44f   : > { %8418 = vmatmul.mubr.msk.f32.gmra.mrb[92].mxu0 %vm1355_vm3, %v12297_v59 }
 0x450   : > { %8420 = vmatprep.mubr.msk.f32.mxu0 %vm1355_vm3, %v12298_v0 }
 0x453   : > { %8421 = vmatmul.mubr.msk.f32.gmra.mrb[94].mxu0 %vm1355_vm3, %v12299_v30 }
 0x454   : > { %8423 = vmatprep.mubr.msk.f32.mxu0 %vm1355_vm3, %v12300_v16 }
 0x457   : > { %8424 = vmatmul.mubr.msk.f32.gmra.mrb[96].mxu0 %vm1355_vm3, %v12301_v29 }
 0x458   : > { %8426 = vmatprep.mubr.msk.f32.mxu0 %vm1355_vm3, %v12302_v22 }
 0x45b   : > { %8427 = vmatmul.mubr.msk.f32.gmra.mrb[98].mxu0 %vm1355_vm3, %v12303_v63 }
 0x45c   : > { %8429 = vmatprep.mubr.msk.f32.mxu0 %vm1355_vm3, %v12304_v35 }
 0x45f   : > { %8430 = vmatmul.mubr.msk.f32.gmra.mrb[100].mxu0 %vm1355_vm3, %v12305_v21 }
 0x460   : > { %8432 = vmatprep.mubr.msk.f32.mxu0 %vm1355_vm3, %v12306_v5 }
 0x463   : > { %8433 = vmatmul.mubr.msk.f32.gmra.mrb[102].mxu0 %vm1355_vm3, %v12307_v47 }
 0x464   : > { %8435 = vmatprep.mubr.msk.f32.mxu0 %vm1355_vm3, %v12308_v32 }
 0x467   : > { %8436 = vmatmul.mubr.msk.f32.gmra.mrb[104].mxu0 %vm1355_vm3, %v12309_v33 }
 0x468   : > { %8438 = vmatprep.mubr.msk.f32.mxu0 %vm1355_vm3, %v12315_v26 }
 0x46b   : > { %8439 = vmatmul.mubr.msk.f32.gmra.mrb[106].mxu0 %vm1355_vm3, %v12316_v15 }
 0x46c   : > { %8441 = vmatprep.mubr.msk.f32.mxu0 %vm1355_vm3, %v12312_v45 }
 0x46f   : > { %8442 = vmatmul.mubr.msk.f32.gmra.mrb[108].mxu0 %vm1355_vm3, %v12313_v27 }
 0x470   : > { %8444 = vmatprep.mubr.msk.f32.mxu0 %vm1355_vm3, %v11224_v7 }
 0x473   : > { %8445 = vmatmul.mubr.msk.f32.gmra.mrb[110].mxu0 %vm1355_vm3, %v12314_v4 }
 0x474   : > { %8447 = vmatprep.mubr.msk.f32.mxu0 %vm1355_vm3, %v11240_v34 }
 0x477   : > { %8448 = vmatmul.mubr.msk.f32.gmra.mrb[112].mxu0 %vm1355_vm3, %v11195_v40 }
 0x478   : > { %8450 = vmatprep.mubr.msk.f32.mxu0 %vm1355_vm3, %v11256_v39 }
 0x47b   : > { %8451 = vmatmul.mubr.msk.f32.gmra.mrb[114].mxu0 %vm1355_vm3, %v11218_v38 }
 0x47c   : > { %8453 = vmatprep.mubr.msk.f32.mxu0 %vm1355_vm3, %v11277_v44 }
 0x47f   : > { %8454 = vmatmul.mubr.msk.f32.gmra.mrb[116].mxu0 %vm1355_vm3, %v11234_v28 }
 0x480   : > { %8456 = vmatprep.mubr.msk.f32.mxu0 %vm1355_vm3, %v11296_v36 }
 0x483   : > { %8457 = vmatmul.mubr.msk.f32.gmra.mrb[118].mxu0 %vm1355_vm3, %v11266_v23 }
 0x484   : > { %8459 = vmatprep.mubr.msk.f32.mxu0 %vm1355_vm3, %v11301_v52 }
 0x487   : > { %8460 = vmatmul.mubr.msk.f32.gmra.mrb[120].mxu0 %vm1355_vm3, %v11287_v12 }
 0x488   : > { %8462 = vmatprep.mubr.msk.f32.mxu0 %vm1355_vm3, %v11332_v46 }
 0x48b   : > { %8463 = vmatmul.mubr.msk.f32.gmra.mrb[122].mxu0 %vm1355_vm3, %v11323_v50 }
 0x48c   : > { %8465 = vmatprep.mubr.msk.f32.mxu0 %vm1355_vm3, %v11344_v20 }
 0x48f   : > { %8466 = vmatmul.mubr.msk.f32.gmra.mrb[124].mxu0 %vm1355_vm3, %v11341_v17 }
 0x490   : > { %8468 = vmatprep.mubr.msk.f32.mxu0 %vm1355_vm3, %v11357_v11 }
 0x493   : > { %8469 = vmatmul.mubr.msk.f32.gmra.mrb[126].mxu0 %vm1355_vm3, %v12317_v9 }
 0x4ea   : > { %v8377_v48 = vpop.f32.mrb[64].mxu0 }
 0x4eb   : > { %v5496_v8 = vadd.f32 %v8377_v48, %v11657_v37  ;;  %v5107_v55 = vpop.f32.mrb[65].mxu0 }
 0x4ec   : > { %v5495_v61 = vadd.f32 %v11657_v37, %v5107_v55 }
 0x4ed   : > { %v5560_v42 = vmax.f32 %v5496_v8, 0.0 }
 0x4ee   : > { %v5559_v57 = vmax.f32 %v5495_v61, 0.0  ;;  %v8380_v31 = vpop.f32.mrb[66].mxu0 }
 0x4ef   : > { %v5629_v49 = vmul.f32 %v11663_v25, %v5560_v42  ;;  %v5498_v6 = vadd.f32 %v8380_v31, %v11657_v37  ;;  %v5117_v18 = vpop.f32.mrb[67].mxu0 }
 0x4f0   : > { %v5628_v19 = vmul.f32 %v11663_v25, %v5559_v57  ;;  %v5497_v62 = vadd.f32 %v11657_v37, %v5117_v18 }
 0x4f1   : > { %v5562_v3 = vmax.f32 %v5498_v6, 0.0  ;;  %v5698_v56 = vadd.f32 %v11670_v14, %v5629_v49 }
 0x4f2   : > { %v5697_v60 = vadd.f32 %v11670_v14, %v5628_v19  ;;  %v5561_v41 = vmax.f32 %v5497_v62, 0.0  ;;  %v8383_v7 = vpop.f32.mrb[68].mxu0 }
 0x4f3   : > { %v5631_v43 = vmul.f32 %v11663_v25, %v5562_v3  ;;  %v5500_v40 = vadd.f32 %v8383_v7, %v11657_v37  ;;  %v5127_v38 = vpop.f32.mrb[69].mxu0 }
 0x4f4   : > { %v5630_v28 = vmul.f32 %v11663_v25, %v5561_v41  ;;  %v5499_v34 = vadd.f32 %v11657_v37, %v5127_v38  ;;  %8479 = vmatprep.mubr.msk.f32.mxu1 %vm1355_vm3, %v5697_v60 }
 0x4f5   : > { %v5564_v39 = vmax.f32 %v5500_v40, 0.0  ;;  %8480 = vmatmul.mubr.msk.f32.vlgmr.msra.gmra.mrb[64].mxu1 %vm1355_vm3, %v5698_v56  ;;  %v5700_v36 = vadd.f32 %v11670_v14, %v5631_v43 }
 0x4f6   : > { %v5699_v23 = vadd.f32 %v11670_v14, %v5630_v28  ;;  %v5563_v44 = vmax.f32 %v5499_v34, 0.0  ;;  %v8386_v12 = vpop.f32.mrb[70].mxu0 }
 0x4f7   : > { %v5633_v52 = vmul.f32 %v11663_v25, %v5564_v39  ;;  %v5502_v50 = vadd.f32 %v8386_v12, %v11657_v37  ;;  %v5137_v46 = vpop.f32.mrb[71].mxu0 }
 0x4f8   : > { %v5632_v17 = vmul.f32 %v11663_v25, %v5563_v44  ;;  %v5501_v20 = vadd.f32 %v11657_v37, %v5137_v46  ;;  %8482 = vmatprep.mubr.msk.f32.mxu1 %vm1355_vm3, %v5699_v23 }
 0x4f9   : > { %v5566_v11 = vmax.f32 %v5502_v50, 0.0  ;;  %8483 = vmatmul.mubr.msk.f32.gmra.mrb[66].mxu1 %vm1355_vm3, %v5700_v36  ;;  %v5702_v54 = vadd.f32 %v11670_v14, %v5633_v52 }
 0x4fa   : > { %v5701_v24 = vadd.f32 %v11670_v14, %v5632_v17  ;;  %v5565_v13 = vmax.f32 %v5501_v20, 0.0  ;;  %v8389_v2 = vpop.f32.mrb[72].mxu0 }
 0x4fb   : > { %v5635_v53 = vmul.f32 %v11663_v25, %v5566_v11  ;;  %v5504_v51 = vadd.f32 %v8389_v2, %v11657_v37  ;;  %v5147_v59 = vpop.f32.mrb[73].mxu0 }
 0x4fc   : > { %v5634_v0 = vmul.f32 %v11663_v25, %v5565_v13  ;;  %v5503_v30 = vadd.f32 %v11657_v37, %v5147_v59  ;;  %8485 = vmatprep.mubr.msk.f32.mxu1 %vm1355_vm3, %v5701_v24 }
 0x4fd   : > { %v5568_v16 = vmax.f32 %v5504_v51, 0.0  ;;  %8486 = vmatmul.mubr.msk.f32.gmra.mrb[68].mxu1 %vm1355_vm3, %v5702_v54  ;;  %v5704_v35 = vadd.f32 %v11670_v14, %v5635_v53 }
 0x4fe   : > { %v5703_v29 = vadd.f32 %v11670_v14, %v5634_v0  ;;  %v5567_v22 = vmax.f32 %v5503_v30, 0.0  ;;  %v8392_v63 = vpop.f32.mrb[74].mxu0 }
 0x4ff   : > { %v5637_v21 = vmul.f32 %v11663_v25, %v5568_v16  ;;  %v5506_v5 = vadd.f32 %v8392_v63, %v11657_v37  ;;  %v5157_v47 = vpop.f32.mrb[75].mxu0 }
 0x500   : > { %v5636_v32 = vmul.f32 %v11663_v25, %v5567_v22  ;;  %v5505_v33 = vadd.f32 %v11657_v37, %v5157_v47  ;;  %8488 = vmatprep.mubr.msk.f32.mxu1 %vm1355_vm3, %v5703_v29 }
 0x501   : > { %v5570_v45 = vmax.f32 %v5506_v5, 0.0  ;;  %8489 = vmatmul.mubr.msk.f32.gmra.mrb[70].mxu1 %vm1355_vm3, %v5704_v35  ;;  %v5706_v1 = vadd.f32 %v11670_v14, %v5637_v21 }
 0x502   : > { %v5705_v27 = vadd.f32 %v11670_v14, %v5636_v32  ;;  %v5569_v4 = vmax.f32 %v5505_v33, 0.0  ;;  %v8395_v10 = vpop.f32.mrb[76].mxu0 }
 0x503   : > { %v5639_v58 = vmul.f32 %v11663_v25, %v5570_v45  ;;  %v5508_v26 = vadd.f32 %v8395_v10, %v11657_v37  ;;  %v5167_v15 = vpop.f32.mrb[77].mxu0 }
 0x504   : > { %v5638_v9 = vmul.f32 %v11663_v25, %v5569_v4  ;;  %v5507_v48 = vadd.f32 %v11657_v37, %v5167_v15  ;;  %8491 = vmatprep.mubr.msk.f32.mxu1 %vm1355_vm3, %v5705_v27 }
 0x505   : > { %v5572_v8 = vmax.f32 %v5508_v26, 0.0  ;;  %8492 = vmatmul.mubr.msk.f32.gmra.mrb[72].mxu1 %vm1355_vm3, %v5706_v1  ;;  %v5708_v57 = vadd.f32 %v11670_v14, %v5639_v58 }
 0x506   : > { %v5707_v55 = vadd.f32 %v11670_v14, %v5638_v9  ;;  %v5571_v61 = vmax.f32 %v5507_v48, 0.0  ;;  %v8398_v42 = vpop.f32.mrb[78].mxu0 }
 0x507   : > { %v5641_v31 = vmul.f32 %v11663_v25, %v5572_v8  ;;  %v5510_v49 = vadd.f32 %v8398_v42, %v11657_v37  ;;  %v5177_v6 = vpop.f32.mrb[79].mxu0 }
 0x508   : > { %v5640_v18 = vmul.f32 %v11663_v25, %v5571_v61  ;;  %v5509_v19 = vadd.f32 %v11657_v37, %v5177_v6  ;;  %8494 = vmatprep.mubr.msk.f32.mxu1 %vm1355_vm3, %v5707_v55 }
 0x509   : > { %v5574_v62 = vmax.f32 %v5510_v49, 0.0  ;;  %8495 = vmatmul.mubr.msk.f32.gmra.mrb[74].mxu1 %vm1355_vm3, %v5708_v57  ;;  %v5710_v7 = vadd.f32 %v11670_v14, %v5641_v31 }
 0x50a   : > { %v5709_v3 = vadd.f32 %v11670_v14, %v5640_v18  ;;  %v5573_v60 = vmax.f32 %v5509_v19, 0.0  ;;  %v8401_v41 = vpop.f32.mrb[80].mxu0 }
 0x50b   : > { %v5643_v56 = vmul.f32 %v11663_v25, %v5574_v62  ;;  %v5512_v43 = vadd.f32 %v8401_v41, %v11657_v37  ;;  %v5187_v40 = vpop.f32.mrb[81].mxu0 }
 0x50c   : > { %v5642_v38 = vmul.f32 %v11663_v25, %v5573_v60  ;;  %v5511_v28 = vadd.f32 %v11657_v37, %v5187_v40  ;;  %8497 = vmatprep.mubr.msk.f32.mxu1 %vm1355_vm3, %v5709_v3 }
 0x50d   : > { %v5576_v34 = vmax.f32 %v5512_v43, 0.0  ;;  %8498 = vmatmul.mubr.msk.f32.gmra.mrb[76].mxu1 %vm1355_vm3, %v5710_v7  ;;  %v5712_v12 = vadd.f32 %v11670_v14, %v5643_v56 }
 0x50e   : > { %v5711_v39 = vadd.f32 %v11670_v14, %v5642_v38  ;;  %v5575_v23 = vmax.f32 %v5511_v28, 0.0  ;;  %v8404_v44 = vpop.f32.mrb[82].mxu0 }
 0x50f   : > { %v5645_v36 = vmul.f32 %v11663_v25, %v5576_v34  ;;  %v5514_v52 = vadd.f32 %v8404_v44, %v11657_v37  ;;  %v5197_v50 = vpop.f32.mrb[83].mxu0 }
 0x510   : > { %v5644_v46 = vmul.f32 %v11663_v25, %v5575_v23  ;;  %v5513_v17 = vadd.f32 %v11657_v37, %v5197_v50  ;;  %8500 = vmatprep.mubr.msk.f32.mxu1 %vm1355_vm3, %v5711_v39 }
 0x511   : > { %v5578_v20 = vmax.f32 %v5514_v52, 0.0  ;;  %8501 = vmatmul.mubr.msk.f32.gmra.mrb[78].mxu1 %vm1355_vm3, %v5712_v12  ;;  %v5714_v2 = vadd.f32 %v11670_v14, %v5645_v36 }
 0x512   : > { %v5713_v11 = vadd.f32 %v11670_v14, %v5644_v46  ;;  %v5577_v24 = vmax.f32 %v5513_v17, 0.0  ;;  %v8407_v13 = vpop.f32.mrb[84].mxu0 }
 0x513   : > { %v5647_v54 = vmul.f32 %v11663_v25, %v5578_v20  ;;  %v5516_v53 = vadd.f32 %v8407_v13, %v11657_v37  ;;  %v5207_v51 = vpop.f32.mrb[85].mxu0 }
 0x514   : > { %v5646_v59 = vmul.f32 %v11663_v25, %v5577_v24  ;;  %v5515_v0 = vadd.f32 %v11657_v37, %v5207_v51  ;;  %8503 = vmatprep.mubr.msk.f32.mxu1 %vm1355_vm3, %v5713_v11 }
 0x515   : > { %v5580_v30 = vmax.f32 %v5516_v53, 0.0  ;;  %8504 = vmatmul.mubr.msk.f32.gmra.mrb[80].mxu1 %vm1355_vm3, %v5714_v2  ;;  %v5716_v63 = vadd.f32 %v11670_v14, %v5647_v54 }
 0x516   : > { %v5715_v16 = vadd.f32 %v11670_v14, %v5646_v59  ;;  %v5579_v29 = vmax.f32 %v5515_v0, 0.0  ;;  %v8410_v22 = vpop.f32.mrb[86].mxu0 }
 0x517   : > { %v5649_v35 = vmul.f32 %v11663_v25, %v5580_v30  ;;  %v5518_v21 = vadd.f32 %v8410_v22, %v11657_v37  ;;  %v5217_v5 = vpop.f32.mrb[87].mxu0 }
 0x518   : > { %v5648_v47 = vmul.f32 %v11663_v25, %v5579_v29  ;;  %v5517_v32 = vadd.f32 %v11657_v37, %v5217_v5  ;;  %8506 = vmatprep.mubr.msk.f32.mxu1 %vm1355_vm3, %v5715_v16 }
 0x519   : > { %v5582_v33 = vmax.f32 %v5518_v21, 0.0  ;;  %8507 = vmatmul.mubr.msk.f32.gmra.mrb[82].mxu1 %vm1355_vm3, %v5716_v63  ;;  %v5718_v10 = vadd.f32 %v11670_v14, %v5649_v35 }
 0x51a   : > { %v5717_v45 = vadd.f32 %v11670_v14, %v5648_v47  ;;  %v5581_v27 = vmax.f32 %v5517_v32, 0.0  ;;  %v8413_v4 = vpop.f32.mrb[88].mxu0 }
 0x51b   : > { %v5651_v1 = vmul.f32 %v11663_v25, %v5582_v33  ;;  %v5520_v58 = vadd.f32 %v8413_v4, %v11657_v37  ;;  %v5227_v26 = vpop.f32.mrb[89].mxu0 }
 0x51c   : > { %v5650_v15 = vmul.f32 %v11663_v25, %v5581_v27  ;;  %v5519_v9 = vadd.f32 %v11657_v37, %v5227_v26  ;;  %8509 = vmatprep.mubr.msk.f32.mxu1 %vm1355_vm3, %v5717_v45 }
 0x51d   : > { %v5584_v48 = vmax.f32 %v5520_v58, 0.0  ;;  %8510 = vmatmul.mubr.msk.f32.gmra.mrb[84].mxu1 %vm1355_vm3, %v5718_v10  ;;  %v5720_v42 = vadd.f32 %v11670_v14, %v5651_v1 }
 0x51e   : > { %v5719_v8 = vadd.f32 %v11670_v14, %v5650_v15  ;;  %v5583_v55 = vmax.f32 %v5519_v9, 0.0  ;;  %v8416_v61 = vpop.f32.mrb[90].mxu0 }
 0x51f   : > { %v5653_v57 = vmul.f32 %v11663_v25, %v5584_v48  ;;  %v5522_v31 = vadd.f32 %v8416_v61, %v11657_v37  ;;  %v5237_v49 = vpop.f32.mrb[91].mxu0 }
 0x520   : > { %v5652_v6 = vmul.f32 %v11663_v25, %v5583_v55  ;;  %v5521_v18 = vadd.f32 %v11657_v37, %v5237_v49  ;;  %8512 = vmatprep.mubr.msk.f32.mxu1 %vm1355_vm3, %v5719_v8 }
 0x521   : > { %v5586_v19 = vmax.f32 %v5522_v31, 0.0  ;;  %8513 = vmatmul.mubr.msk.f32.gmra.mrb[86].mxu1 %vm1355_vm3, %v5720_v42  ;;  %v5722_v41 = vadd.f32 %v11670_v14, %v5653_v57 }
 0x522   : > { %v5721_v62 = vadd.f32 %v11670_v14, %v5652_v6  ;;  %v5585_v3 = vmax.f32 %v5521_v18, 0.0  ;;  %v8419_v60 = vpop.f32.mrb[92].mxu0 }
 0x523   : > { %v5655_v7 = vmul.f32 %v11663_v25, %v5586_v19  ;;  %v5524_v56 = vadd.f32 %v8419_v60, %v11657_v37  ;;  %v5247_v43 = vpop.f32.mrb[93].mxu0 }
 0x524   : > { %v5654_v40 = vmul.f32 %v11663_v25, %v5585_v3  ;;  %v5523_v38 = vadd.f32 %v11657_v37, %v5247_v43  ;;  %8515 = vmatprep.mubr.msk.f32.mxu1 %vm1355_vm3, %v5721_v62 }
 0x525   : > { %v5588_v28 = vmax.f32 %v5524_v56, 0.0  ;;  %8516 = vmatmul.mubr.msk.f32.gmra.mrb[88].mxu1 %vm1355_vm3, %v5722_v41  ;;  %v5724_v44 = vadd.f32 %v11670_v14, %v5655_v7 }
 0x526   : > { %v5723_v34 = vadd.f32 %v11670_v14, %v5654_v40  ;;  %v5587_v39 = vmax.f32 %v5523_v38, 0.0  ;;  %v8422_v23 = vpop.f32.mrb[94].mxu0 }
 0x527   : > { %v5657_v12 = vmul.f32 %v11663_v25, %v5588_v28  ;;  %v5526_v36 = vadd.f32 %v8422_v23, %v11657_v37  ;;  %v5257_v52 = vpop.f32.mrb[95].mxu0 }
 0x528   : > { %v5656_v50 = vmul.f32 %v11663_v25, %v5587_v39  ;;  %v5525_v46 = vadd.f32 %v11657_v37, %v5257_v52  ;;  %8518 = vmatprep.mubr.msk.f32.mxu1 %vm1355_vm3, %v5723_v34 }
 0x529   : > { %v5590_v17 = vmax.f32 %v5526_v36, 0.0  ;;  %8519 = vmatmul.mubr.msk.f32.gmra.mrb[90].mxu1 %vm1355_vm3, %v5724_v44  ;;  %v5726_v13 = vadd.f32 %v11670_v14, %v5657_v12 }
 0x52a   : > { %v5725_v20 = vadd.f32 %v11670_v14, %v5656_v50  ;;  %v5589_v11 = vmax.f32 %v5525_v46, 0.0  ;;  %v8425_v24 = vpop.f32.mrb[96].mxu0 }
 0x52b   : > { %v5659_v2 = vmul.f32 %v11663_v25, %v5590_v17  ;;  %v5528_v54 = vadd.f32 %v8425_v24, %v11657_v37  ;;  %v5267_v53 = vpop.f32.mrb[97].mxu0 }
 0x52c   : > { %v5658_v51 = vmul.f32 %v11663_v25, %v5589_v11  ;;  %v5527_v59 = vadd.f32 %v11657_v37, %v5267_v53  ;;  %8521 = vmatprep.mubr.msk.f32.mxu1 %vm1355_vm3, %v5725_v20 }
 0x52d   : > { %v5592_v0 = vmax.f32 %v5528_v54, 0.0  ;;  %8522 = vmatmul.mubr.msk.f32.gmra.mrb[92].mxu1 %vm1355_vm3, %v5726_v13  ;;  %v5728_v22 = vadd.f32 %v11670_v14, %v5659_v2 }
 0x52e   : > { %v5727_v30 = vadd.f32 %v11670_v14, %v5658_v51  ;;  %v5591_v16 = vmax.f32 %v5527_v59, 0.0  ;;  %v8428_v29 = vpop.f32.mrb[98].mxu0 }
 0x52f   : > { %v5661_v63 = vmul.f32 %v11663_v25, %v5592_v0  ;;  %v5530_v35 = vadd.f32 %v8428_v29, %v11657_v37  ;;  %v5277_v21 = vpop.f32.mrb[99].mxu0 }
 0x530   : > { %v5660_v5 = vmul.f32 %v11663_v25, %v5591_v16  ;;  %v5529_v47 = vadd.f32 %v11657_v37, %v5277_v21  ;;  %8524 = vmatprep.mubr.msk.f32.mxu1 %vm1355_vm3, %v5727_v30 }
 0x531   : > { %v5594_v32 = vmax.f32 %v5530_v35, 0.0  ;;  %8525 = vmatmul.mubr.msk.f32.gmra.mrb[94].mxu1 %vm1355_vm3, %v5728_v22  ;;  %v5730_v4 = vadd.f32 %v11670_v14, %v5661_v63 }
 0x532   : > { %v5729_v33 = vadd.f32 %v11670_v14, %v5660_v5  ;;  %v5593_v45 = vmax.f32 %v5529_v47, 0.0  ;;  %v8431_v27 = vpop.f32.mrb[100].mxu0 }
 0x533   : > { %v5663_v10 = vmul.f32 %v11663_v25, %v5594_v32  ;;  %v5532_v1 = vadd.f32 %v8431_v27, %v11657_v37  ;;  %v5287_v58 = vpop.f32.mrb[101].mxu0 }
 0x534   : > { %v5662_v26 = vmul.f32 %v11663_v25, %v5593_v45  ;;  %v5531_v15 = vadd.f32 %v11657_v37, %v5287_v58  ;;  %8527 = vmatprep.mubr.msk.f32.mxu1 %vm1355_vm3, %v5729_v33 }
 0x535   : > { %v5596_v9 = vmax.f32 %v5532_v1, 0.0  ;;  %8528 = vmatmul.mubr.msk.f32.gmra.mrb[96].mxu1 %vm1355_vm3, %v5730_v4  ;;  %v5732_v61 = vadd.f32 %v11670_v14, %v5663_v10 }
 0x536   : > { %v5731_v48 = vadd.f32 %v11670_v14, %v5662_v26  ;;  %v5595_v8 = vmax.f32 %v5531_v15, 0.0  ;;  %v8434_v55 = vpop.f32.mrb[102].mxu0 }
 0x537   : > { %v5665_v42 = vmul.f32 %v11663_v25, %v5596_v9  ;;  %v5534_v57 = vadd.f32 %v8434_v55, %v11657_v37  ;;  %v5297_v31 = vpop.f32.mrb[103].mxu0 }
 0x538   : > { %v5664_v49 = vmul.f32 %v11663_v25, %v5595_v8  ;;  %v5533_v6 = vadd.f32 %v11657_v37, %v5297_v31  ;;  %8530 = vmatprep.mubr.msk.f32.mxu1 %vm1355_vm3, %v5731_v48 }
 0x539   : > { %v5598_v18 = vmax.f32 %v5534_v57, 0.0  ;;  %8531 = vmatmul.mubr.msk.f32.gmra.mrb[98].mxu1 %vm1355_vm3, %v5732_v61  ;;  %v5734_v60 = vadd.f32 %v11670_v14, %v5665_v42 }
 0x53a   : > { %v5733_v19 = vadd.f32 %v11670_v14, %v5664_v49  ;;  %v5597_v62 = vmax.f32 %v5533_v6, 0.0  ;;  %v8437_v3 = vpop.f32.mrb[104].mxu0 }
 0x53b   : > { %v5667_v41 = vmul.f32 %v11663_v25, %v5598_v18  ;;  %v5536_v7 = vadd.f32 %v8437_v3, %v11657_v37  ;;  %v5307_v56 = vpop.f32.mrb[105].mxu0 }
 0x53c   : > { %v5666_v43 = vmul.f32 %v11663_v25, %v5597_v62  ;;  %v5535_v40 = vadd.f32 %v11657_v37, %v5307_v56  ;;  %8533 = vmatprep.mubr.msk.f32.mxu1 %vm1355_vm3, %v5733_v19 }
 0x53d   : > { %v5600_v38 = vmax.f32 %v5536_v7, 0.0  ;;  %8534 = vmatmul.mubr.msk.f32.gmra.mrb[100].mxu1 %vm1355_vm3, %v5734_v60  ;;  %v5736_v23 = vadd.f32 %v11670_v14, %v5667_v41 }
 0x53e   : > { %v5735_v28 = vadd.f32 %v11670_v14, %v5666_v43  ;;  %v5599_v34 = vmax.f32 %v5535_v40, 0.0  ;;  %v8440_v39 = vpop.f32.mrb[106].mxu0 }
 0x53f   : > { %v5669_v44 = vmul.f32 %v11663_v25, %v5600_v38  ;;  %v5538_v12 = vadd.f32 %v8440_v39, %v11657_v37  ;;  %v5317_v36 = vpop.f32.mrb[107].mxu0 }
 0x540   : > { %v5668_v52 = vmul.f32 %v11663_v25, %v5599_v34  ;;  %v5537_v50 = vadd.f32 %v11657_v37, %v5317_v36  ;;  %8536 = vmatprep.mubr.msk.f32.mxu1 %vm1355_vm3, %v5735_v28 }
 0x541   : > { %v5602_v46 = vmax.f32 %v5538_v12, 0.0  ;;  %8537 = vmatmul.mubr.msk.f32.gmra.mrb[102].mxu1 %vm1355_vm3, %v5736_v23  ;;  %v5738_v24 = vadd.f32 %v11670_v14, %v5669_v44 }
 0x542   : > { %v5737_v17 = vadd.f32 %v11670_v14, %v5668_v52  ;;  %v5601_v20 = vmax.f32 %v5537_v50, 0.0  ;;  %v8443_v11 = vpop.f32.mrb[108].mxu0 }
 0x543   : > { %v5671_v13 = vmul.f32 %v11663_v25, %v5602_v46  ;;  %v5540_v2 = vadd.f32 %v8443_v11, %v11657_v37  ;;  %v5327_v54 = vpop.f32.mrb[109].mxu0 }
 0x544   : > { %v5670_v53 = vmul.f32 %v11663_v25, %v5601_v20  ;;  %v5539_v51 = vadd.f32 %v11657_v37, %v5327_v54  ;;  %8539 = vmatprep.mubr.msk.f32.mxu1 %vm1355_vm3, %v5737_v17 }
 0x545   : > { %v5604_v59 = vmax.f32 %v5540_v2, 0.0  ;;  %8540 = vmatmul.mubr.msk.f32.gmra.mrb[104].mxu1 %vm1355_vm3, %v5738_v24  ;;  %v5740_v29 = vadd.f32 %v11670_v14, %v5671_v13 }
 0x546   : > { %v5739_v0 = vadd.f32 %v11670_v14, %v5670_v53  ;;  %v5603_v30 = vmax.f32 %v5539_v51, 0.0  ;;  %v8446_v16 = vpop.f32.mrb[110].mxu0 }
 0x547   : > { %v5673_v22 = vmul.f32 %v11663_v25, %v5604_v59  ;;  %v5542_v63 = vadd.f32 %v8446_v16, %v11657_v37  ;;  %v5337_v35 = vpop.f32.mrb[111].mxu0 }
 0x548   : > { %v5672_v21 = vmul.f32 %v11663_v25, %v5603_v30  ;;  %v5541_v5 = vadd.f32 %v11657_v37, %v5337_v35  ;;  %8542 = vmatprep.mubr.msk.f32.mxu1 %vm1355_vm3, %v5739_v0 }
 0x549   : > { %v5606_v47 = vmax.f32 %v5542_v63, 0.0  ;;  %8543 = vmatmul.mubr.msk.f32.gmra.mrb[106].mxu1 %vm1355_vm3, %v5740_v29  ;;  %v5742_v27 = vadd.f32 %v11670_v14, %v5673_v22 }
 0x54a   : > { %v5741_v32 = vadd.f32 %v11670_v14, %v5672_v21  ;;  %v5605_v33 = vmax.f32 %v5541_v5, 0.0  ;;  %v8449_v45 = vpop.f32.mrb[112].mxu0 }
 0x54b   : > { %v5675_v4 = vmul.f32 %v11663_v25, %v5606_v47  ;;  %v5544_v10 = vadd.f32 %v8449_v45, %v11657_v37  ;;  %v5347_v1 = vpop.f32.mrb[113].mxu0 }
 0x54c   : > { %v5674_v58 = vmul.f32 %v11663_v25, %v5605_v33  ;;  %v5543_v26 = vadd.f32 %v11657_v37, %v5347_v1  ;;  %8545 = vmatprep.mubr.msk.f32.mxu1 %vm1355_vm3, %v5741_v32 }
 0x54d   : > { %v5608_v15 = vmax.f32 %v5544_v10, 0.0  ;;  %8546 = vmatmul.mubr.msk.f32.gmra.mrb[108].mxu1 %vm1355_vm3, %v5742_v27  ;;  %v5744_v55 = vadd.f32 %v11670_v14, %v5675_v4 }
 0x54e   : > { %v5743_v9 = vadd.f32 %v11670_v14, %v5674_v58  ;;  %v5607_v48 = vmax.f32 %v5543_v26, 0.0  ;;  %v8452_v8 = vpop.f32.mrb[114].mxu0 }
 0x54f   : > { %v5677_v61 = vmul.f32 %v11663_v25, %v5608_v15  ;;  %v5546_v42 = vadd.f32 %v8452_v8, %v11657_v37  ;;  %v5357_v57 = vpop.f32.mrb[115].mxu0 }
 0x550   : > { %v5676_v31 = vmul.f32 %v11663_v25, %v5607_v48  ;;  %v5545_v49 = vadd.f32 %v11657_v37, %v5357_v57  ;;  %8548 = vmatprep.mubr.msk.f32.mxu1 %vm1355_vm3, %v5743_v9 }
 0x551   : > { %v5610_v6 = vmax.f32 %v5546_v42, 0.0  ;;  %8549 = vmatmul.mubr.msk.f32.gmra.mrb[110].mxu1 %vm1355_vm3, %v5744_v55  ;;  %v5746_v3 = vadd.f32 %v11670_v14, %v5677_v61 }
 0x552   : > { %v5745_v18 = vadd.f32 %v11670_v14, %v5676_v31  ;;  %v5609_v19 = vmax.f32 %v5545_v49, 0.0  ;;  %v8455_v62 = vpop.f32.mrb[116].mxu0 }
 0x553   : > { %v5679_v60 = vmul.f32 %v11663_v25, %v5610_v6  ;;  %v5548_v41 = vadd.f32 %v8455_v62, %v11657_v37  ;;  %v5367_v7 = vpop.f32.mrb[117].mxu0 }
 0x554   : > { %v5678_v56 = vmul.f32 %v11663_v25, %v5609_v19  ;;  %v5547_v43 = vadd.f32 %v11657_v37, %v5367_v7  ;;  %8551 = vmatprep.mubr.msk.f32.mxu1 %vm1355_vm3, %v5745_v18 }
 0x555   : > { %v5612_v40 = vmax.f32 %v5548_v41, 0.0  ;;  %8552 = vmatmul.mubr.msk.f32.gmra.mrb[112].mxu1 %vm1355_vm3, %v5746_v3  ;;  %v5748_v39 = vadd.f32 %v11670_v14, %v5679_v60  ;;  %v11928_v41 = vld [vmem:[%s12084_s2 + $0x28] sm:$0xff] }
 0x556   : > { %v5747_v38 = vadd.f32 %v11670_v14, %v5678_v56  ;;  %v5611_v28 = vmax.f32 %v5547_v43, 0.0  ;;  %v8458_v34 = vpop.f32.mrb[118].mxu0 }
 0x557   : > { %v5681_v23 = vmul.f32 %v11663_v25, %v5612_v40  ;;  %v5550_v44 = vadd.f32 %v8458_v34, %v11657_v37  ;;  %v5377_v12 = vpop.f32.mrb[119].mxu0  ;;  %v11940_v40 = vld [vmem:[%s12084_s2 + $0x30] sm:$0xff]  ;;  %v11945_v34 = vld [vmem:[%s12084_s2 + $0x38] sm:$0xff] }
 0x558   : > { %v5680_v36 = vmul.f32 %v11663_v25, %v5611_v28  ;;  %v5549_v52 = vadd.f32 %v11657_v37, %v5377_v12  ;;  %8554 = vmatprep.mubr.msk.f32.mxu1 %vm1355_vm3, %v5747_v38 }
 0x559   : > { %v5614_v50 = vmax.f32 %v5550_v44, 0.0  ;;  %8555 = vmatmul.mubr.msk.f32.gmra.mrb[114].mxu1 %vm1355_vm3, %v5748_v39  ;;  %v5750_v11 = vadd.f32 %v11670_v14, %v5681_v23 }
 0x55a   : > { %v5749_v46 = vadd.f32 %v11670_v14, %v5680_v36  ;;  %v5613_v17 = vmax.f32 %v5549_v52, 0.0  ;;  %v8461_v20 = vpop.f32.mrb[120].mxu0 }
 0x55b   : > { %v5683_v24 = vmul.f32 %v11663_v25, %v5614_v50  ;;  %v5552_v13 = vadd.f32 %v8461_v20, %v11657_v37  ;;  %v5387_v2 = vpop.f32.mrb[121].mxu0 }
 0x55c   : > { %v5682_v54 = vmul.f32 %v11663_v25, %v5613_v17  ;;  %v5551_v53 = vadd.f32 %v11657_v37, %v5387_v2  ;;  %8557 = vmatprep.mubr.msk.f32.mxu1 %vm1355_vm3, %v5749_v46 }
 0x55d   : > { %v5616_v51 = vmax.f32 %v5552_v13, 0.0  ;;  %8558 = vmatmul.mubr.msk.f32.gmra.mrb[116].mxu1 %vm1355_vm3, %v5750_v11  ;;  %v5752_v16 = vadd.f32 %v11670_v14, %v5683_v24 }
 0x55e   : > { %v5751_v59 = vadd.f32 %v11670_v14, %v5682_v54  ;;  %v5615_v0 = vmax.f32 %v5551_v53, 0.0  ;;  %v8464_v30 = vpop.f32.mrb[122].mxu0 }
 0x55f   : > { %v5685_v29 = vmul.f32 %v11663_v25, %v5616_v51  ;;  %v5554_v22 = vadd.f32 %v8464_v30, %v11657_v37  ;;  %v5397_v63 = vpop.f32.mrb[123].mxu0 }
 0x560   : > { %v5684_v35 = vmul.f32 %v11663_v25, %v5615_v0  ;;  %v5553_v21 = vadd.f32 %v11657_v37, %v5397_v63  ;;  %8560 = vmatprep.mubr.msk.f32.mxu1 %vm1355_vm3, %v5751_v59 }
 0x561   : > { %v5618_v5 = vmax.f32 %v5554_v22, 0.0  ;;  %8561 = vmatmul.mubr.msk.f32.gmra.mrb[118].mxu1 %vm1355_vm3, %v5752_v16  ;;  %v5754_v45 = vadd.f32 %v11670_v14, %v5685_v29 }
 0x562   : > { %v5753_v47 = vadd.f32 %v11670_v14, %v5684_v35  ;;  %v5617_v32 = vmax.f32 %v5553_v21, 0.0  ;;  %v8467_v33 = vpop.f32.mrb[124].mxu0 }
 0x563   : > { %v5687_v27 = vmul.f32 %v11663_v25, %v5618_v5  ;;  %v5556_v4 = vadd.f32 %v8467_v33, %v11657_v37  ;;  %v5407_v10 = vpop.f32.mrb[125].mxu0 }
 0x564   : > { %v5686_v1 = vmul.f32 %v11663_v25, %v5617_v32  ;;  %v5555_v58 = vadd.f32 %v11657_v37, %v5407_v10  ;;  %8563 = vmatprep.mubr.msk.f32.mxu1 %vm1355_vm3, %v5753_v47 }
 0x565   : > { %v5620_v26 = vmax.f32 %v5556_v4, 0.0  ;;  %8564 = vmatmul.mubr.msk.f32.gmra.mrb[120].mxu1 %vm1355_vm3, %v5754_v45  ;;  %v5756_v8 = vadd.f32 %v11670_v14, %v5687_v27 }
 0x566   : > { %v5755_v15 = vadd.f32 %v11670_v14, %v5686_v1  ;;  %v5619_v9 = vmax.f32 %v5555_v58, 0.0  ;;  %v8470_v48 = vpop.f32.mrb[126].mxu0 }
 0x567   : > { %v5689_v55 = vmul.f32 %v11663_v25, %v5620_v26  ;;  %v5558_v61 = vadd.f32 %v8470_v48, %v11657_v37  ;;  %v5417_v42 = vpop.f32.mrb[127].mxu0 }
 0x568   : > { %v5688_v57 = vmul.f32 %v11663_v25, %v5619_v9  ;;  %v5557_v31 = vadd.f32 %v11657_v37, %v5417_v42  ;;  %8566 = vmatprep.mubr.msk.f32.mxu1 %vm1355_vm3, %v5755_v15 }
 0x569   : > { %v5622_v49 = vmax.f32 %v5558_v61, 0.0  ;;  %8567 = vmatmul.mubr.msk.f32.gmra.mrb[122].mxu1 %vm1355_vm3, %v5756_v8  ;;  %v5758_v19 = vadd.f32 %v11670_v14, %v5689_v55 }
 0x56a   : > { %v5757_v6 = vadd.f32 %v11670_v14, %v5688_v57  ;;  %v5621_v18 = vmax.f32 %v5557_v31, 0.0 }
 0x56b   : > { %v5691_v62 = vmul.f32 %v11663_v25, %v5622_v49 }
 0x56c   : > { %v5690_v3 = vmul.f32 %v11663_v25, %v5621_v18  ;;  %8569 = vmatprep.mubr.msk.f32.mxu1 %vm1355_vm3, %v5757_v6  ;;  %v11933_v25 = vld [vmem:[%s12084_s2 + $0x20] sm:$0xff] }
 0x56d   : > { %8570 = vmatmul.mubr.msk.f32.gmra.mrb[124].mxu1 %vm1355_vm3, %v5758_v19  ;;  %v5760_v60 = vadd.f32 %v11670_v14, %v5691_v62 }
 0x56e   : > { %v5759_v37 = vadd.f32 %v11670_v14, %v5690_v3 }
 0x570   : > { %8572 = vmatprep.mubr.msk.f32.mxu1 %vm1355_vm3, %v5759_v37 }
 0x571   : > { %8573 = vmatmul.mubr.msk.f32.gmra.mrb[126].mxu1 %vm1355_vm3, %v5760_v60 }
 0x5c8   : > { %v8481_v7 = vpop.f32.mrb[64].mxu1 }
 0x5c9   : > { %v6347_v56 = vadd.f32 %v8481_v7, %v11928_v41  ;;  %v6023_v43 = vpop.f32.mrb[65].mxu1 }
 0x5ca   : > { %v6346_v14 = vadd.f32 %v11933_v25, %v6023_v43 }
 0x5cc   : > { %v6410_v38 = vmax.f32 %v6346_v14, %v6347_v56  ;;  %v8484_v28 = vpop.f32.mrb[66].mxu1 }
 0x5cd   : > { %v6033_v39 = vpop.f32.mrb[67].mxu1  ;;  %v6349_v44 = vadd.f32 %v8484_v28, %v11945_v34 }
 0x5ce   : > { %v6348_v23 = vadd.f32 %v11940_v40, %v6033_v39 }
 0x5d0   : > { %v6411_v12 = vmax.f32 %v6410_v38, %v6348_v23  ;;  %v8487_v36 = vpop.f32.mrb[68].mxu1 }
 0x5d1   : > { %v6351_v52 = vadd.f32 %v8487_v36, %v11928_v41  ;;  %v6043_v50 = vpop.f32.mrb[69].mxu1 }
 0x5d2   : > { %v6412_v46 = vmax.f32 %v6411_v12, %v6349_v44  ;;  %v6350_v17 = vadd.f32 %v11933_v25, %v6043_v50 }
 0x5d4   : > { %v6413_v20 = vrot.slane %v6412_v46, 4  ;;  %v6419_v11 = vmax.f32 %v6350_v17, %v6351_v52  ;;  %v8490_v24 = vpop.f32.mrb[70].mxu1 }
 0x5d5   : > { %v6053_v13 = vpop.f32.mrb[71].mxu1  ;;  %v6353_v53 = vadd.f32 %v8490_v24, %v11945_v34 }
 0x5d6   : > { %v6414_v2 = vmax.f32 %v6412_v46, %v6413_v20  ;;  %v6352_v54 = vadd.f32 %v11940_v40, %v6053_v13 }
 0x5d8   : > { %v6420_v51 = vmax.f32 %v6419_v11, %v6352_v54  ;;  %v8493_v59 = vpop.f32.mrb[72].mxu1  ;;  %v6415_v16 = vrot.slane %v6414_v2, 2 }
 0x5d9   : > { %v6355_v0 = vadd.f32 %v8493_v59, %v11928_v41  ;;  %v6063_v30 = vpop.f32.mrb[73].mxu1 }
 0x5da   : > { %v6421_v29 = vmax.f32 %v6420_v51, %v6353_v53  ;;  %v6354_v22 = vadd.f32 %v11933_v25, %v6063_v30  ;;  %v6416_v47 = vmax.f32 %v6414_v2, %v6415_v16 }
 0x5dc   : > { %v6422_v63 = vrot.slane %v6421_v29, 4  ;;  %v6428_v35 = vmax.f32 %v6354_v22, %v6355_v0  ;;  %v8496_v21 = vpop.f32.mrb[74].mxu1  ;;  %v6417_v26 = vrot.slane %v6416_v47, 1 }
 0x5dd   : > { %v6073_v5 = vpop.f32.mrb[75].mxu1  ;;  %v6357_v27 = vadd.f32 %v8496_v21, %v11945_v34 }
 0x5de   : > { %v6423_v32 = vmax.f32 %v6421_v29, %v6422_v63  ;;  %v6356_v33 = vadd.f32 %v11940_v40, %v6073_v5  ;;  %v6418_v31 = vmax.f32 %v6416_v47, %v6417_v26 }
 0x5e0   : > { %v6424_v45 = vrot.slane %v6423_v32, 2  ;;  %v6429_v4 = vmax.f32 %v6428_v35, %v6356_v33  ;;  %v8499_v10 = vpop.f32.mrb[76].mxu1 }
 0x5e1   : > { %v6359_v1 = vadd.f32 %v8499_v10, %v11928_v41  ;;  %v6083_v58 = vpop.f32.mrb[77].mxu1 }
 0x5e2   : > { %v6425_v15 = vmax.f32 %v6423_v32, %v6424_v45  ;;  %v6430_v9 = vmax.f32 %v6429_v4, %v6357_v27  ;;  %v6358_v48 = vadd.f32 %v11933_v25, %v6083_v58 }
 0x5e4   : > { %v6426_v8 = vrot.slane %v6425_v15, 1  ;;  %v6431_v55 = vrot.slane %v6430_v9, 4  ;;  %v6437_v61 = vmax.f32 %v6358_v48, %v6359_v1  ;;  %v8502_v42 = vpop.f32.mrb[78].mxu1 }
 0x5e5   : > { %v6093_v57 = vpop.f32.mrb[79].mxu1  ;;  %v6361_v3 = vadd.f32 %v8502_v42, %v11945_v34 }
 0x5e6   : > { %v6427_v49 = vmax.f32 %v6425_v15, %v6426_v8  ;;  %v6432_v6 = vmax.f32 %v6430_v9, %v6431_v55  ;;  %v6360_v18 = vadd.f32 %v11940_v40, %v6093_v57 }
 0x5e8   : > { %v6571_v19 = vsel %vm6570_vm5, %v6427_v49, %v6418_v31  ;;  %v6433_v62 = vrot.slane %v6432_v6, 2  ;;  %v6438_v37 = vmax.f32 %v6437_v61, %v6360_v18  ;;  %v8505_v60 = vpop.f32.mrb[80].mxu1 }
 0x5e9   : > { %v6363_v7 = vadd.f32 %v8505_v60, %v11928_v41  ;;  %v6103_v56 = vpop.f32.mrb[81].mxu1 }
 0x5ea   : > { %v6434_v43 = vmax.f32 %v6432_v6, %v6433_v62  ;;  %v6439_v14 = vmax.f32 %v6438_v37, %v6361_v3  ;;  %v6362_v38 = vadd.f32 %v11933_v25, %v6103_v56 }
 0x5ec   : > { %v6435_v28 = vrot.slane %v6434_v43, 1  ;;  %v6440_v39 = vrot.slane %v6439_v14, 4  ;;  %v6446_v23 = vmax.f32 %v6362_v38, %v6363_v7  ;;  %v8508_v44 = vpop.f32.mrb[82].mxu1 }
 0x5ed   : > { %v6113_v12 = vpop.f32.mrb[83].mxu1  ;;  %v6365_v20 = vadd.f32 %v8508_v44, %v11945_v34 }
 0x5ee   : > { %v6436_v36 = vmax.f32 %v6434_v43, %v6435_v28  ;;  %v6441_v52 = vmax.f32 %v6439_v14, %v6440_v39  ;;  %v6364_v50 = vadd.f32 %v11940_v40, %v6113_v12 }
 0x5f0   : > { %v6573_v46 = vsel %vm6572_vm6, %v6436_v36, %v6571_v19  ;;  %v6442_v17 = vrot.slane %v6441_v52, 2  ;;  %v6447_v11 = vmax.f32 %v6446_v23, %v6364_v50  ;;  %v8511_v24 = vpop.f32.mrb[84].mxu1 }
 0x5f1   : > { %v6367_v13 = vadd.f32 %v8511_v24, %v11928_v41  ;;  %v6123_v2 = vpop.f32.mrb[85].mxu1 }
 0x5f2   : > { %v6443_v54 = vmax.f32 %v6441_v52, %v6442_v17  ;;  %v6448_v53 = vmax.f32 %v6447_v11, %v6365_v20  ;;  %v6366_v51 = vadd.f32 %v11933_v25, %v6123_v2 }
 0x5f4   : > { %v6444_v59 = vrot.slane %v6443_v54, 1  ;;  %v6449_v0 = vrot.slane %v6448_v53, 4  ;;  %v6455_v30 = vmax.f32 %v6366_v51, %v6367_v13  ;;  %v8514_v16 = vpop.f32.mrb[86].mxu1 }
 0x5f5   : > { %v6133_v29 = vpop.f32.mrb[87].mxu1  ;;  %v6369_v47 = vadd.f32 %v8514_v16, %v11945_v34 }
 0x5f6   : > { %v6445_v22 = vmax.f32 %v6443_v54, %v6444_v59  ;;  %v6450_v63 = vmax.f32 %v6448_v53, %v6449_v0  ;;  %v6368_v35 = vadd.f32 %v11940_v40, %v6133_v29 }
 0x5f8   : > { %v6575_v21 = vsel %vm6574_vm7, %v6445_v22, %v6573_v46  ;;  %v6451_v5 = vrot.slane %v6450_v63, 2  ;;  %v6456_v32 = vmax.f32 %v6455_v30, %v6368_v35  ;;  %v8517_v33 = vpop.f32.mrb[88].mxu1 }
 0x5f9   : > { %v6371_v45 = vadd.f32 %v8517_v33, %v11928_v41  ;;  %v6143_v27 = vpop.f32.mrb[89].mxu1 }
 0x5fa   : > { %v6452_v4 = vmax.f32 %v6450_v63, %v6451_v5  ;;  %v6457_v10 = vmax.f32 %v6456_v32, %v6369_v47  ;;  %v6370_v1 = vadd.f32 %v11933_v25, %v6143_v27 }
 0x5fc   : > { %v6453_v58 = vrot.slane %v6452_v4, 1  ;;  %v6458_v26 = vrot.slane %v6457_v10, 4  ;;  %v6464_v15 = vmax.f32 %v6370_v1, %v6371_v45  ;;  %v8520_v9 = vpop.f32.mrb[90].mxu1 }
 0x5fd   : > { %v6153_v48 = vpop.f32.mrb[91].mxu1  ;;  %v6373_v31 = vadd.f32 %v8520_v9, %v11945_v34 }
 0x5fe   : > { %v6454_v8 = vmax.f32 %v6452_v4, %v6453_v58  ;;  %v6459_v55 = vmax.f32 %v6457_v10, %v6458_v26  ;;  %v6372_v61 = vadd.f32 %v11940_v40, %v6153_v48 }
 0x600   : > { %v6577_v42 = vsel %vm6576_vm8, %v6454_v8, %v6575_v21  ;;  %v6460_v57 = vrot.slane %v6459_v55, 2  ;;  %v6465_v49 = vmax.f32 %v6464_v15, %v6372_v61  ;;  %v8523_v6 = vpop.f32.mrb[92].mxu1 }
 0x601   : > { %v6375_v18 = vadd.f32 %v8523_v6, %v11928_v41  ;;  %v6163_v19 = vpop.f32.mrb[93].mxu1 }
 0x602   : > { %v6461_v62 = vmax.f32 %v6459_v55, %v6460_v57  ;;  %v6466_v3 = vmax.f32 %v6465_v49, %v6373_v31  ;;  %v6374_v37 = vadd.f32 %v11933_v25, %v6163_v19 }
 0x604   : > { %v6462_v60 = vrot.slane %v6461_v62, 1  ;;  %v6467_v7 = vrot.slane %v6466_v3, 4  ;;  %v6473_v56 = vmax.f32 %v6374_v37, %v6375_v18  ;;  %v8526_v43 = vpop.f32.mrb[94].mxu1 }
 0x605   : > { %v6173_v14 = vpop.f32.mrb[95].mxu1  ;;  %v6377_v12 = vadd.f32 %v8526_v43, %v11945_v34 }
 0x606   : > { %v6463_v38 = vmax.f32 %v6461_v62, %v6462_v60  ;;  %v6468_v28 = vmax.f32 %v6466_v3, %v6467_v7  ;;  %v6376_v39 = vadd.f32 %v11940_v40, %v6173_v14 }
 0x608   : > { %v6579_v23 = vsel %vm6578_vm9, %v6463_v38, %v6577_v42  ;;  %v6469_v44 = vrot.slane %v6468_v28, 2  ;;  %v6474_v36 = vmax.f32 %v6473_v56, %v6376_v39  ;;  %v8529_v52 = vpop.f32.mrb[96].mxu1 }
 0x609   : > { %v6379_v50 = vadd.f32 %v8529_v52, %v11928_v41  ;;  %v6183_v46 = vpop.f32.mrb[97].mxu1 }
 0x60a   : > { %v6470_v17 = vmax.f32 %v6468_v28, %v6469_v44  ;;  %v6475_v20 = vmax.f32 %v6474_v36, %v6377_v12  ;;  %v6378_v11 = vadd.f32 %v11933_v25, %v6183_v46 }
 0x60c   : > { %v6471_v24 = vrot.slane %v6470_v17, 1  ;;  %v6476_v13 = vrot.slane %v6475_v20, 4  ;;  %v6482_v2 = vmax.f32 %v6378_v11, %v6379_v50  ;;  %v8532_v54 = vpop.f32.mrb[98].mxu1 }
 0x60d   : > { %v6193_v53 = vpop.f32.mrb[99].mxu1  ;;  %v6381_v16 = vadd.f32 %v8532_v54, %v11945_v34 }
 0x60e   : > { %v6472_v51 = vmax.f32 %v6470_v17, %v6471_v24  ;;  %v6477_v59 = vmax.f32 %v6475_v20, %v6476_v13  ;;  %v6380_v0 = vadd.f32 %v11940_v40, %v6193_v53 }
 0x610   : > { %v6478_v30 = vrot.slane %v6477_v59, 2  ;;  %v6483_v29 = vmax.f32 %v6482_v2, %v6380_v0  ;;  %v8535_v22 = vpop.f32.mrb[100].mxu1  ;;  %v6581_v63 = vsel %vm6580_vm10, %v6472_v51, %v6579_v23 }
 0x611   : > { %v6383_v35 = vadd.f32 %v8535_v22, %v11928_v41  ;;  %v6203_v21 = vpop.f32.mrb[101].mxu1 }
 0x612   : > { %v6479_v5 = vmax.f32 %v6477_v59, %v6478_v30  ;;  %v6484_v47 = vmax.f32 %v6483_v29, %v6381_v16  ;;  %v6382_v32 = vadd.f32 %v11933_v25, %v6203_v21 }
 0x614   : > { %v6480_v33 = vrot.slane %v6479_v5, 1  ;;  %v6485_v45 = vrot.slane %v6484_v47, 4  ;;  %v6491_v27 = vmax.f32 %v6382_v32, %v6383_v35  ;;  %v8538_v4 = vpop.f32.mrb[102].mxu1 }
 0x615   : > { %v6213_v10 = vpop.f32.mrb[103].mxu1  ;;  %v6385_v15 = vadd.f32 %v8538_v4, %v11945_v34 }
 0x616   : > { %v6481_v1 = vmax.f32 %v6479_v5, %v6480_v33  ;;  %v6486_v58 = vmax.f32 %v6484_v47, %v6485_v45  ;;  %v6384_v26 = vadd.f32 %v11940_v40, %v6213_v10 }
 0x618   : > { %v6492_v9 = vmax.f32 %v6491_v27, %v6384_v26  ;;  %v8541_v48 = vpop.f32.mrb[104].mxu1  ;;  %v6583_v8 = vsel %vm6582_vm11, %v6481_v1, %v6581_v63  ;;  %v6487_v42 = vrot.slane %v6486_v58, 2 }
 0x619   : > { %v6387_v55 = vadd.f32 %v8541_v48, %v11928_v41  ;;  %v6223_v61 = vpop.f32.mrb[105].mxu1  ;;  %6593 = vst [vmem:[%s11996_s17] sm:$0xff] %v6583_v8 }
 0x61a   : > { %v6493_v57 = vmax.f32 %v6492_v9, %v6385_v15  ;;  %v6386_v31 = vadd.f32 %v11933_v25, %v6223_v61  ;;  %v6488_v62 = vmax.f32 %v6486_v58, %v6487_v42 }
 0x61c   : > { %v6494_v49 = vrot.slane %v6493_v57, 4  ;;  %v6500_v6 = vmax.f32 %v6386_v31, %v6387_v55  ;;  %v8544_v18 = vpop.f32.mrb[106].mxu1  ;;  %v6489_v28 = vrot.slane %v6488_v62, 1 }
 0x61d   : > { %v6233_v19 = vpop.f32.mrb[107].mxu1  ;;  %v6389_v7 = vadd.f32 %v8544_v18, %v11945_v34 }
 0x61e   : > { %v6495_v3 = vmax.f32 %v6493_v57, %v6494_v49  ;;  %v6388_v37 = vadd.f32 %v11940_v40, %v6233_v19  ;;  %v6490_v17 = vmax.f32 %v6488_v62, %v6489_v28 }
 0x620   : > { %v6496_v60 = vrot.slane %v6495_v3, 2  ;;  %v6501_v56 = vmax.f32 %v6500_v6, %v6388_v37  ;;  %v8547_v43 = vpop.f32.mrb[108].mxu1 }
 0x621   : > { %v6391_v14 = vadd.f32 %v8547_v43, %v11928_v41  ;;  %v6243_v38 = vpop.f32.mrb[109].mxu1 }
 0x622   : > { %v6497_v39 = vmax.f32 %v6495_v3, %v6496_v60  ;;  %v6502_v23 = vmax.f32 %v6501_v56, %v6389_v7  ;;  %v6390_v44 = vadd.f32 %v11933_v25, %v6243_v38 }
 0x624   : > { %v6498_v12 = vrot.slane %v6497_v39, 1  ;;  %v6503_v36 = vrot.slane %v6502_v23, 4  ;;  %v6509_v52 = vmax.f32 %v6390_v44, %v6391_v14  ;;  %v8550_v50 = vpop.f32.mrb[110].mxu1 }
 0x625   : > { %v6253_v46 = vpop.f32.mrb[111].mxu1  ;;  %v6393_v54 = vadd.f32 %v8550_v50, %v11945_v34 }
 0x626   : > { %v6499_v20 = vmax.f32 %v6497_v39, %v6498_v12  ;;  %v6504_v11 = vmax.f32 %v6502_v23, %v6503_v36  ;;  %v6392_v24 = vadd.f32 %v11940_v40, %v6253_v46 }
 0x628   : > { %v6584_v13 = vsel %vm6570_vm5, %v6499_v20, %v6490_v17  ;;  %v6505_v2 = vrot.slane %v6504_v11, 2  ;;  %v6510_v53 = vmax.f32 %v6509_v52, %v6392_v24  ;;  %v8553_v51 = vpop.f32.mrb[112].mxu1 }
 0x629   : > { %v6395_v59 = vadd.f32 %v8553_v51, %v11928_v41  ;;  %v6263_v0 = vpop.f32.mrb[113].mxu1 }
 0x62a   : > { %v6506_v30 = vmax.f32 %v6504_v11, %v6505_v2  ;;  %v6511_v16 = vmax.f32 %v6510_v53, %v6393_v54  ;;  %v6394_v29 = vadd.f32 %v11933_v25, %v6263_v0 }
 0x62c   : > { %v6507_v22 = vrot.slane %v6506_v30, 1  ;;  %v6512_v63 = vrot.slane %v6511_v16, 4  ;;  %v6518_v35 = vmax.f32 %v6394_v29, %v6395_v59  ;;  %v8556_v21 = vpop.f32.mrb[114].mxu1 }
 0x62d   : > { %v6273_v5 = vpop.f32.mrb[115].mxu1  ;;  %v6397_v4 = vadd.f32 %v8556_v21, %v11945_v34 }
 0x62e   : > { %v6508_v47 = vmax.f32 %v6506_v30, %v6507_v22  ;;  %v6513_v32 = vmax.f32 %v6511_v16, %v6512_v63  ;;  %v6396_v33 = vadd.f32 %v11940_v40, %v6273_v5 }
 0x630   : > { %v6585_v45 = vsel %vm6572_vm6, %v6508_v47, %v6584_v13  ;;  %v6514_v27 = vrot.slane %v6513_v32, 2  ;;  %v6519_v10 = vmax.f32 %v6518_v35, %v6396_v33  ;;  %v8559_v1 = vpop.f32.mrb[116].mxu1 }
 0x631   : > { %v6399_v58 = vadd.f32 %v8559_v1, %v11928_v41  ;;  %v6283_v26 = vpop.f32.mrb[117].mxu1 }
 0x632   : > { %v6515_v15 = vmax.f32 %v6513_v32, %v6514_v27  ;;  %v6520_v9 = vmax.f32 %v6519_v10, %v6397_v4  ;;  %v6398_v48 = vadd.f32 %v11933_v25, %v6283_v26 }
 0x634   : > { %v6516_v8 = vrot.slane %v6515_v15, 1  ;;  %v6521_v55 = vrot.slane %v6520_v9, 4  ;;  %v6527_v61 = vmax.f32 %v6398_v48, %v6399_v58  ;;  %v8562_v42 = vpop.f32.mrb[118].mxu1 }
 0x635   : > { %v6293_v57 = vpop.f32.mrb[119].mxu1  ;;  %v6401_v62 = vadd.f32 %v8562_v42, %v11945_v34 }
 0x636   : > { %v6517_v31 = vmax.f32 %v6515_v15, %v6516_v8  ;;  %v6522_v49 = vmax.f32 %v6520_v9, %v6521_v55  ;;  %v6400_v6 = vadd.f32 %v11940_v40, %v6293_v57 }
 0x638   : > { %v6586_v18 = vsel %vm6574_vm7, %v6517_v31, %v6585_v45  ;;  %v6523_v19 = vrot.slane %v6522_v49, 2  ;;  %v6528_v3 = vmax.f32 %v6527_v61, %v6400_v6  ;;  %v8565_v37 = vpop.f32.mrb[120].mxu1 }
 0x639   : > { %v6403_v60 = vadd.f32 %v8565_v37, %v11928_v41  ;;  %v6303_v7 = vpop.f32.mrb[121].mxu1 }
 0x63a   : > { %v6524_v56 = vmax.f32 %v6522_v49, %v6523_v19  ;;  %v6529_v43 = vmax.f32 %v6528_v3, %v6401_v62  ;;  %v6402_v14 = vadd.f32 %v11933_v25, %v6303_v7 }
 0x63c   : > { %v6525_v38 = vrot.slane %v6524_v56, 1  ;;  %v6530_v28 = vrot.slane %v6529_v43, 4  ;;  %v6536_v39 = vmax.f32 %v6402_v14, %v6403_v60  ;;  %v8568_v23 = vpop.f32.mrb[122].mxu1 }
 0x63d   : > { %v6313_v44 = vpop.f32.mrb[123].mxu1  ;;  %v6405_v17 = vadd.f32 %v8568_v23, %v11945_v34 }
 0x63e   : > { %v6526_v12 = vmax.f32 %v6524_v56, %v6525_v38  ;;  %v6531_v36 = vmax.f32 %v6529_v43, %v6530_v28  ;;  %v6404_v52 = vadd.f32 %v11940_v40, %v6313_v44 }
 0x640   : > { %v6587_v50 = vsel %vm6576_vm8, %v6526_v12, %v6586_v18  ;;  %v6532_v46 = vrot.slane %v6531_v36, 2  ;;  %v6537_v20 = vmax.f32 %v6536_v39, %v6404_v52  ;;  %v8571_v11 = vpop.f32.mrb[124].mxu1 }
 0x641   : > { %v6407_v24 = vadd.f32 %v8571_v11, %v11928_v41  ;;  %v6323_v13 = vpop.f32.mrb[125].mxu1 }
 0x642   : > { %v6533_v2 = vmax.f32 %v6531_v36, %v6532_v46  ;;  %v6538_v54 = vmax.f32 %v6537_v20, %v6405_v17  ;;  %v6406_v53 = vadd.f32 %v11933_v25, %v6323_v13 }
 0x644   : > { %v6534_v51 = vrot.slane %v6533_v2, 1  ;;  %v6539_v59 = vrot.slane %v6538_v54, 4  ;;  %v6545_v0 = vmax.f32 %v6406_v53, %v6407_v24  ;;  %v8574_v30 = vpop.f32.mrb[126].mxu1 }
 0x645   : > { %v6333_v16 = vpop.f32.mrb[127].mxu1  ;;  %v6409_v41 = vadd.f32 %v8574_v30, %v11945_v34 }
 0x646   : > { %v6535_v29 = vmax.f32 %v6533_v2, %v6534_v51  ;;  %v6540_v22 = vmax.f32 %v6538_v54, %v6539_v59  ;;  %v6408_v63 = vadd.f32 %v11940_v40, %v6333_v16 }
 0x648   : > { %v6588_v35 = vsel %vm6578_vm9, %v6535_v29, %v6587_v50  ;;  %v6541_v21 = vrot.slane %v6540_v22, 2  ;;  %v6546_v5 = vmax.f32 %v6545_v0, %v6408_v63 }
 0x64a   : > { %v6542_v47 = vmax.f32 %v6540_v22, %v6541_v21  ;;  %v6547_v25 = vmax.f32 %v6546_v5, %v6409_v41 }
 0x64c   : > { %v6543_v32 = vrot.slane %v6542_v47, 1  ;;  %v6548_v33 = vrot.slane %v6547_v25, 4 }
 0x64e   : > { %v6544_v45 = vmax.f32 %v6542_v47, %v6543_v32  ;;  %v6549_v27 = vmax.f32 %v6547_v25, %v6548_v33 }
 0x650   : > { %v6550_v4 = vrot.slane %v6549_v27, 2  ;;  %v6589_v10 = vsel %vm6580_vm10, %v6544_v45, %v6588_v35 }
 0x652   : > { %v6551_v1 = vmax.f32 %v6549_v27, %v6550_v4 }
 0x654   : > { %v6552_v40 = vrot.slane %v6551_v1, 1 }
 0x656   : > { %v6553_v58 = vmax.f32 %v6551_v1, %v6552_v40 }
 0x658   : > { %v6590_v34 = vsel %vm6582_vm11, %v6553_v58, %v6589_v10 }
 0x659   : > { %6594 = vst [vmem:[%s11996_s17 + $0x8] sm:$0xff] %v6590_v34 }
 0x65a   : > { %8951 = shalt.err (!%p8948_p3)
}
 0x65b   : > { %s8952_s4 = scalar_lea.hbm %s12033_s26, 256  ;;  %s8956_s7 = scalar_lea.hbm %s12085_s3, 512 }
 0x65c   : > { %p8953_p4 = scmp.ne.s32.totalorder %s12033_s26, %s8952_s4  ;;  %p8957_p9 = scmp.lt.u32.totalorder %s12033_s26, %s12085_s3 }
 0x65d   : > { %p8958_p10 = scmp.lt.u32.totalorder %s8956_s7, %s8952_s4  ;;  %p8960_p12 = scmp.lt.u32.totalorder %s8952_s4, %s12033_s26 }
 0x65e   : > { %p8954_p7 = pnand %p8953_p4, %p9063_p5 }
 0x65f   : > { %p8959_p11 = por %p8958_p10, %p8957_p9 }
 0x660   : > { %p8955_p8 = pneg %p8954_p7 }
 0x661   : > { %p8961_p13 = por %p8960_p12, %p8959_p11 }
 0x663   : > { %p8962_p0 = pnand %p8961_p13, %p8955_p8 }
 0x665   : > { %8965 = shalt.err (!%p8962_p0)
}
 0x666   : > { %s9003_s10 = smov 128   ;;  %s9004_s11 = smov 8  }
 0x667   : > { %8891 = dma.vmem_to_hbm [thread:$0]  (%p9063_p5), %s12035_s20, 256, %s12033_s26, %s12041_s27, %s9003_s10, %s9003_s10, %s9004_s11  }
 0x668 PF: > { %p8897_p1 = scmp.ge.s32.totalorder %s9000_s15, 2  ;;  %s6624_s17 = sand.u32 1, %s8988_s12  }
 0x669   : > { %s6625_s19 = scalar_lea.sflag [#allocation3], %s6624_s17 }
 0x66a   : > { %p8894_p2 = pnand %p8897_p1, %p9067_p6 }
 0x66c   : > { %8983 = dma.done.wait (!%p8894_p2), %s6625_s19, 256  }
 0x66d   : > { %8985 = vsyncadd (!%p8894_p2), %s6625_s19, 4294967040  ;;  %p13_p3 = scmp.ge.s32.totalorder %s9050_s18, 4   ;;  %s12318_s12 = smov %s8992_s13 }
 0x66e   : > { %s12319_s13 = smov %s8996_s14  ;;  %s12320_s14 = smov %s9061_s21 }
 0x66f   : > { %s12321_s15 = smov %s9050_s18  ;;  %15 = sbr.rel (!%p13_p3) target bundleno = 3 (0x3), region = 67 }
 0x676   :  { %6630 = vsyncpa [#allocation3], 1 }
 0x677   :  { %6632 = vsyncpa [#allocation3 + $0x1], 1 }

</bundles_post_ra>
